<compile_context>
chip_gen: v6e
topology: v6e:2x2x1
jax: 0.10.0
libtpu: 0.0.40
codegen_flags: <defaults>
</compile_context>

<pallas_src>
import functools

import jax
import jax.numpy as jnp
from jax.experimental import pallas as pl
from jax.experimental.pallas import tpu as pltpu

VMEM_SPEC = pl.BlockSpec(memory_space=pltpu.MemorySpace.VMEM)
SMEM_SPEC = pl.BlockSpec(memory_space=pltpu.MemorySpace.SMEM)

LANE = 128
NEG_BIAS = -1e30           # additive attention bias for non-edges


# ---------------------------------------------------------------------------
# Fused forward kernel (single block; x stays VMEM/vreg resident throughout)
# ---------------------------------------------------------------------------
def _fused_forward_kernel(x_ref, adj_ref, src_idx_ref, dst_idx_ref, e_ref,
                          w0_ref, b0_ref, mp_w_ref, mp_b_ref, beta_ref,
                          w1_ref, mlp_w_ref, mlp_b_ref,
                          o_ref, *, num_mp, n_mlp_rest, leak):
    DT = jnp.bfloat16          # MXU operand dtype; accumulation always f32
    F32 = jnp.float32

    # --- lin0 (node BatchNorm folded into w0/b0 on the host) ----------------
    x = jnp.dot(x_ref[...], w0_ref[...], preferred_element_type=F32) + b0_ref[...]

    # --- num_mp x (AGNNConv -> Linear) ---------------------------------------
    for i in range(num_mp):
        # F.normalize(x, p=2, dim=-1) via rsqrt-multiply (EUP path)
        ssq = jnp.sum(x * x, axis=-1, keepdims=True)
        xn = x * jax.lax.rsqrt(jnp.maximum(ssq, 1e-24))
        # beta folded into the (N,128) query operand, not the (N,N) logits
        xq = (xn * beta_ref[i]).astype(DT)
        xk = xn.astype(DT)
        # S = beta * xn @ xn.T  (contract on feature axis, no transpose op)
        s = jax.lax.dot_general(xq, xk, (((1,), (1,)), ((), ())),
                                preferred_element_type=F32)
        # additive adjacency bias (0 / -1e30); re-read per step so the N^2
        # value is not live across the whole unrolled MP loop
        logits = s + adj_ref[...]
        m = jnp.max(logits, axis=-1, keepdims=True)
        p = jnp.exp(logits - m)                    # non-edges underflow to 0
        inv_denom = pl.reciprocal(jnp.sum(p, axis=-1, keepdims=True),
                                  approx=True)
        # aggregate first, normalize after: (N,128) multiply instead of (N,N)
        x = jnp.dot(p.astype(DT), x.astype(DT),
                    preferred_element_type=F32) * inv_denom
        # per-step Linear(node_dim, node_dim)
        x = jnp.dot(x.astype(DT), mp_w_ref[i],
                    preferred_element_type=F32) + mp_b_ref[i:i + 1, :]

    # --- per-edge gather: one-hots rebuilt in-kernel from int32 indices ------
    xb = x.astype(DT)
    e_p, n_p = src_idx_ref.shape[0], xb.shape[0]
    col = jax.lax.broadcasted_iota(jnp.int32, (e_p, n_p), 1)
    src_oh = (col == src_idx_ref[...]).astype(DT)
    dst_oh = (col == dst_idx_ref[...]).astype(DT)
    src_feat = jnp.dot(src_oh, xb, preferred_element_type=F32)
    dst_feat = jnp.dot(dst_oh, xb, preferred_element_type=F32)

    # --- edge MLP head: one K=384 matmul on cat[src|dst|e] (edge BN folded) --
    cat = jnp.concatenate(
        [src_feat.astype(DT), dst_feat.astype(DT), e_ref[...]], axis=-1)
    h = jnp.dot(cat, w1_ref[...], preferred_element_type=F32) + mlp_b_ref[0:1, :]
    h = jnp.maximum(h, leak * h)                       # LeakyReLU as one vmax

    for j in range(n_mlp_rest):
        h = jnp.dot(h.astype(DT), mlp_w_ref[j],
                    preferred_element_type=F32) + mlp_b_ref[j + 1:j + 2, :]
        if j < n_mlp_rest - 1:
            h = jnp.maximum(h, leak * h)

    o_ref[...] = h                                     # lane-dense (E_P, 128) store


# ---------------------------------------------------------------------------
# Host-side helpers
# ---------------------------------------------------------------------------
def _round_up(n, m):
    return ((n + m - 1) // m) * m


def _pad2d(a, rows, cols):
    r, c = a.shape
    return jnp.pad(a, ((0, rows - r), (0, cols - c)))


def _pad1d(a, n):
    return jnp.pad(a, (0, n - a.shape[0]))


def prepare_params(params):
    """Fold eval-mode BatchNorms into adjacent linears, pad to 128 lanes,
    cast MXU operands to bf16.  Do this ONCE per parameter set and reuse."""
    eps = 1e-5
    D_P = LANE

    g_n, be_n, m_n, v_n = params["bn_node"]
    scale_n = g_n / jnp.sqrt(v_n + eps)
    shift_n = be_n - m_n * scale_n
    g_e, be_e, m_e, v_e = params["bn_edge"]
    scale_e = g_e / jnp.sqrt(v_e + eps)
    shift_e = be_e - m_e * scale_e

    w0, b0 = params["lin0"]
    node_dim = w0.shape[1]
    w0_p = _pad2d(scale_n[:, None] * w0, D_P, D_P).astype(jnp.bfloat16)
    b0_p = _pad2d((shift_n @ w0 + b0)[None, :], 1, D_P).astype(jnp.float32)

    mp_w = jnp.stack([_pad2d(w, D_P, D_P) for (w, _) in
                      params["lin"]]).astype(jnp.bfloat16)
    mp_b = jnp.stack([_pad1d(b, D_P) for (_, b) in
                      params["lin"]]).astype(jnp.float32)
    betas = jnp.stack([jnp.asarray(b, jnp.float32).reshape(())
                       for b in params["attn_beta"]])

    mlp = params["edge_mlp"]                 # [w1, b1, w2, b2, ...]
    w1, b1 = mlp[0], mlp[1]
    w1s = _pad2d(w1[:node_dim], D_P, D_P)
    w1d = _pad2d(w1[node_dim:2 * node_dim], D_P, D_P)
    w1e = w1[2 * node_dim:]
    w1e_p = _pad2d(scale_e[:, None] * w1e, D_P, D_P)   # edge BN scale folded
    w1_stack = jnp.concatenate([w1s, w1d, w1e_p], axis=0).astype(jnp.bfloat16)
    b1_f = shift_e @ w1e + b1                           # edge BN shift folded

    n_layers = len(mlp) // 2
    mlp_w = jnp.stack([_pad2d(mlp[2 * i], D_P, D_P)
                       for i in range(1, n_layers)]).astype(jnp.bfloat16)
    mlp_b = jnp.stack([_pad1d(b1_f, D_P)]
                      + [_pad1d(mlp[2 * i + 1], D_P)
                         for i in range(1, n_layers)]).astype(jnp.float32)

    arrays = dict(w0=w0_p, b0=b0_p, mp_w=mp_w, mp_b=mp_b, betas=betas,
                  w1=w1_stack, mlp_w=mlp_w, mlp_b=mlp_b)
    meta = dict(num_mp=len(params["lin"]), n_mlp_rest=n_layers - 1,
                leak=float(params["leak"]), out_dim=int(mlp[-1].shape[-1]))
    return arrays, meta


def prepare_graph(edge_index, num_nodes, num_edges):
    """Build the additive adjacency bias (bf16) and padded int32 index vectors.
    Do this ONCE per graph and reuse."""
    N_P = _round_up(max(num_nodes, 1), LANE)
    E_P = _round_up(max(num_edges, 1), 8)
    src = jnp.asarray(edge_index[0], jnp.int32)
    dst = jnp.asarray(edge_index[1], jnp.int32)

    bias = jnp.full((N_P, N_P), NEG_BIAS, jnp.float32)
    bias = bias.at[dst, src].set(0.0)                       # edge j -> i
    bias = bias.at[jnp.arange(num_nodes),
                   jnp.arange(num_nodes)].set(0.0)          # self loops (real nodes)
    bias = bias.astype(jnp.bfloat16)

    src_p = jnp.pad(src, (0, E_P - num_edges)).reshape(E_P, 1)
    dst_p = jnp.pad(dst, (0, E_P - num_edges)).reshape(E_P, 1)
    return dict(adj_bias=bias, src_idx=src_p, dst_idx=dst_p, N_P=N_P, E_P=E_P)


def attention_forward(arrays, meta, graph, x, e):
    """Per-call work only: pad/cast x, e and launch the fused kernel."""
    N, _ = x.shape
    E, _ = e.shape
    N_P, E_P, D_P = graph["N_P"], graph["E_P"], LANE

    x_p = _pad2d(jnp.asarray(x, jnp.float32), N_P, D_P).astype(jnp.bfloat16)
    e_p = _pad2d(jnp.asarray(e, jnp.float32), E_P, D_P).astype(jnp.bfloat16)

    kernel = functools.partial(_fused_forward_kernel,
                               num_mp=meta["num_mp"],
                               n_mlp_rest=meta["n_mlp_rest"],
                               leak=meta["leak"])

    # VMEM budget: resident inputs/output + a few N^2 f32 softmax temporaries
    # and the in-kernel bf16 one-hots; generous headroom, capped for v7x/v6e.
    resident = (x_p.size * 2 + graph["adj_bias"].size * 2 + e_p.size * 2
                + arrays["w0"].size * 2 + arrays["mp_w"].size * 2
                + arrays["w1"].size * 2 + arrays["mlp_w"].size * 2
                + E_P * D_P * 4 + 4 * N_P * N_P * 4 + 2 * E_P * N_P * 2)
    vmem_limit = int(min(max(2 * resident + (4 << 20), 32 << 20), 96 << 20))

    out_p = pl.pallas_call(
        kernel,
        out_shape=jax.ShapeDtypeStruct((E_P, D_P), jnp.float32),
        in_specs=[VMEM_SPEC] * 9 + [SMEM_SPEC] + [VMEM_SPEC] * 3,
        out_specs=VMEM_SPEC,
        compiler_params=pltpu.CompilerParams(vmem_limit_bytes=vmem_limit),
    )(x_p, graph["adj_bias"], graph["src_idx"], graph["dst_idx"], e_p,
      arrays["w0"], arrays["b0"], arrays["mp_w"], arrays["mp_b"],
      arrays["betas"], arrays["w1"], arrays["mlp_w"], arrays["mlp_b"])

    return out_p[:E, :meta["out_dim"]]


def basic_attention_forward(params, x, edge_index, e, xbatch):
    """Convenience wrapper matching the PyTorch module's forward signature."""
    del xbatch  # EdgeModel ignores batch / u (MetaLayer passes them through)
    arrays, meta = prepare_params(params)
    graph = prepare_graph(edge_index, x.shape[0], e.shape[0])
    return {"edge_pred": [attention_forward(arrays, meta, graph, x, e)]}


# ---------------------------------------------------------------------------
# Parameter init (matches the PyTorch module's shapes / defaults)
# ---------------------------------------------------------------------------
def init_params(key, node_in=16, edge_in=10, num_mp=3, leak=0.1):
    node_dim = 2 * node_in
    mlp_dims = [2 * node_dim + edge_in, 64, 32, 16, 8, 2]

    def dense(k, fan_in, fan_out):
        kw, kb = jax.random.split(k)
        w = jax.random.normal(kw, (fan_in, fan_out), jnp.float32) * 0.1
        b = jax.random.normal(kb, (fan_out,), jnp.float32) * 0.1
        return w, b

    keys = jax.random.split(key, 16)
    params = {
        "leak": leak,
        # BatchNorm1d (eval mode): gamma, beta, running_mean, running_var
        "bn_node": (1.0 + 0.1 * jax.random.normal(keys[0], (node_in,), jnp.float32),
                    0.1 * jax.random.normal(keys[1], (node_in,), jnp.float32),
                    jnp.zeros((node_in,), jnp.float32),
                    jnp.ones((node_in,), jnp.float32)),
        "bn_edge": (1.0 + 0.1 * jax.random.normal(keys[2], (edge_in,), jnp.float32),
                    0.1 * jax.random.normal(keys[3], (edge_in,), jnp.float32),
                    jnp.zeros((edge_in,), jnp.float32),
                    jnp.ones((edge_in,), jnp.float32)),
    }
    params["lin0"] = dense(keys[4], node_in, node_dim)
    params["attn_beta"] = [jnp.ones((), jnp.float32) for _ in range(num_mp)]  # AGNN beta = 1
    params["lin"] = [dense(keys[5 + i], node_dim, node_dim) for i in range(num_mp)]

    mlp = []
    for i in range(len(mlp_dims) - 1):
        w, b = dense(keys[9 + i], mlp_dims[i], mlp_dims[i + 1])
        mlp.append(w)
        mlp.append(b)
    params["edge_mlp"] = mlp
    return params


# ---------------------------------------------------------------------------
if __name__ == "__main__":
    key = jax.random.PRNGKey(0)
    k_param, k_x, k_e = jax.random.split(key, 3)

    node_in, edge_in, num_mp, leak = 16, 10, 3, 0.1
    N, E = 8, 16

    params = init_params(k_param, node_in=node_in, edge_in=edge_in,
                         num_mp=num_mp, leak=leak)

    x = jax.random.normal(k_x, (N, node_in), jnp.float32)
    e = jax.random.normal(k_e, (E, edge_in), jnp.float32)
    base = jnp.arange(N, dtype=jnp.int32)
    edge_index = jnp.stack([
        jnp.concatenate([base, base]),                       # sources
        jnp.concatenate([(base + 1) % N, (base + 2) % N]),   # targets
    ])                                                       # (2, 16), no duplicates
    xbatch = jnp.zeros((N,), jnp.int32)

    # Hoisted prep: once per params / once per graph, reused across calls.
    arrays, meta = prepare_params(params)
    graph = prepare_graph(edge_index, N, E)

    pred = attention_forward(arrays, meta, graph, x, e)
    pred = jax.block_until_ready(pred)
    assert pred.shape == (E, 2) and pred.dtype == jnp.float32
    assert bool(jnp.all(jnp.isfinite(pred)))

    # Signature-compatible convenience path also works.
    out = basic_attention_forward(params, x, edge_index, e, xbatch)
    jax.block_until_ready(out["edge_pred"][0])

    print("KERNEL_OK")
</pallas_src>

<mosaic_0001>
module attributes {stable_mosaic.version = 11 : i64} {
  func.func @_fused_forward_kernel(%arg0: memref<128x128xbf16, #tpu.memory_space<vmem>>, %arg1: memref<128x128xbf16, #tpu.memory_space<vmem>>, %arg2: memref<16x1xi32, #tpu.memory_space<vmem>>, %arg3: memref<16x1xi32, #tpu.memory_space<vmem>>, %arg4: memref<16x128xbf16, #tpu.memory_space<vmem>>, %arg5: memref<128x128xbf16, #tpu.memory_space<vmem>>, %arg6: memref<1x128xf32, #tpu.memory_space<vmem>>, %arg7: memref<3x128x128xbf16, #tpu.memory_space<vmem>>, %arg8: memref<3x128xf32, #tpu.memory_space<vmem>>, %arg9: memref<3xf32, #tpu.memory_space<smem>>, %arg10: memref<384x128xbf16, #tpu.memory_space<vmem>>, %arg11: memref<4x128x128xbf16, #tpu.memory_space<vmem>>, %arg12: memref<5x128xf32, #tpu.memory_space<vmem>>, %arg13: memref<16x128xf32, #tpu.memory_space<vmem>>) attributes {dimension_semantics = [], scalar_prefetch = 0 : i64, scratch_operands = 0 : i64, tpu.core_type = #tpu.core_type<tc>} {
    %c0 = arith.constant 0 : index
    %c0_0 = arith.constant 0 : index
    %0 = vector.load %arg0[%c0, %c0_0] : memref<128x128xbf16, #tpu.memory_space<vmem>>, vector<128x128xbf16>
    %c0_1 = arith.constant 0 : index
    %c0_2 = arith.constant 0 : index
    %1 = vector.load %arg5[%c0_1, %c0_2] : memref<128x128xbf16, #tpu.memory_space<vmem>>, vector<128x128xbf16>
    %cst = arith.constant dense<0.000000e+00> : vector<128x128xf32>
    %2 = tpu.matmul %0, %1, %cst {dimension_numbers = #tpu.dot_dimension_numbers<[1], [0], [0], [1], [0, 0, 1, 1], [], []>} : vector<128x128xbf16>, vector<128x128xbf16>, vector<128x128xf32> -> vector<128x128xf32>
    %c0_3 = arith.constant 0 : index
    %c0_4 = arith.constant 0 : index
    %3 = vector.load %arg6[%c0_3, %c0_4] : memref<1x128xf32, #tpu.memory_space<vmem>>, vector<1x128xf32>
    %4 = vector.broadcast %3 : vector<1x128xf32> to vector<128x128xf32>
    %5 = arith.addf %2, %4 : vector<128x128xf32>
    %6 = arith.mulf %5, %5 : vector<128x128xf32>
    %cst_5 = arith.constant dense<0.000000e+00> : vector<128xf32>
    %7 = vector.multi_reduction <add>, %6, %cst_5 [1] : vector<128x128xf32> to vector<128xf32>
    %8 = vector.shape_cast %7 : vector<128xf32> to vector<128x1xf32>
    %cst_6 = arith.constant 1.000000e-24 : f32
    %9 = vector.broadcast %cst_6 : f32 to vector<128x1xf32>
    %10 = arith.maximumf %8, %9 : vector<128x1xf32>
    %11 = math.rsqrt %10 : vector<128x1xf32>
    %12 = vector.broadcast %11 : vector<128x1xf32> to vector<128x128xf32>
    %13 = arith.mulf %5, %12 : vector<128x128xf32>
    %c0_7 = arith.constant 0 : index
    %14 = memref.load %arg9[%c0_7] : memref<3xf32, #tpu.memory_space<smem>>
    %15 = vector.broadcast %14 : f32 to vector<128x128xf32>
    %16 = arith.mulf %13, %15 : vector<128x128xf32>
    %17 = arith.truncf %16 : vector<128x128xf32> to vector<128x128xbf16>
    %18 = arith.truncf %13 : vector<128x128xf32> to vector<128x128xbf16>
    %cst_8 = arith.constant dense<0.000000e+00> : vector<128x128xf32>
    %19 = tpu.matmul %17, %18, %cst_8 {dimension_numbers = #tpu.dot_dimension_numbers<[1], [1], [0], [0], [0, 0, 1, 0], [], []>} : vector<128x128xbf16>, vector<128x128xbf16>, vector<128x128xf32> -> vector<128x128xf32>
    %c0_9 = arith.constant 0 : index
    %c0_10 = arith.constant 0 : index
    %20 = vector.load %arg1[%c0_9, %c0_10] : memref<128x128xbf16, #tpu.memory_space<vmem>>, vector<128x128xbf16>
    %21 = arith.extf %20 : vector<128x128xbf16> to vector<128x128xf32>
    %22 = arith.addf %19, %21 : vector<128x128xf32>
    %cst_11 = arith.constant dense<0xFF800000> : vector<128xf32>
    %23 = vector.multi_reduction <maximumf>, %22, %cst_11 [1] : vector<128x128xf32> to vector<128xf32>
    %24 = vector.shape_cast %23 : vector<128xf32> to vector<128x1xf32>
    %25 = vector.broadcast %24 : vector<128x1xf32> to vector<128x128xf32>
    %26 = arith.subf %22, %25 : vector<128x128xf32>
    %27 = math.exp %26 : vector<128x128xf32>
    %cst_12 = arith.constant dense<0.000000e+00> : vector<128xf32>
    %28 = vector.multi_reduction <add>, %27, %cst_12 [1] : vector<128x128xf32> to vector<128xf32>
    %29 = vector.shape_cast %28 : vector<128xf32> to vector<128x1xf32>
    %30 = tpu.reciprocal %29 {approx = true} : vector<128x1xf32> -> vector<128x1xf32>
    %31 = arith.truncf %27 : vector<128x128xf32> to vector<128x128xbf16>
    %32 = arith.truncf %5 : vector<128x128xf32> to vector<128x128xbf16>
    %cst_13 = arith.constant dense<0.000000e+00> : vector<128x128xf32>
    %33 = tpu.matmul %31, %32, %cst_13 {dimension_numbers = #tpu.dot_dimension_numbers<[1], [0], [0], [1], [0, 0, 1, 1], [], []>} : vector<128x128xbf16>, vector<128x128xbf16>, vector<128x128xf32> -> vector<128x128xf32>
    %34 = vector.broadcast %30 : vector<128x1xf32> to vector<128x128xf32>
    %35 = arith.mulf %33, %34 : vector<128x128xf32>
    %36 = arith.truncf %35 : vector<128x128xf32> to vector<128x128xbf16>
    %c0_14 = arith.constant 0 : index
    %c0_15 = arith.constant 0 : index
    %c0_16 = arith.constant 0 : index
    %37 = vector.load %arg7[%c0_14, %c0_15, %c0_16] : memref<3x128x128xbf16, #tpu.memory_space<vmem>>, vector<1x128x128xbf16>
    %38 = vector.shape_cast %37 : vector<1x128x128xbf16> to vector<128x128xbf16>
    %cst_17 = arith.constant dense<0.000000e+00> : vector<128x128xf32>
    %39 = tpu.matmul %36, %38, %cst_17 {dimension_numbers = #tpu.dot_dimension_numbers<[1], [0], [0], [1], [0, 0, 1, 1], [], []>} : vector<128x128xbf16>, vector<128x128xbf16>, vector<128x128xf32> -> vector<128x128xf32>
    %c0_18 = arith.constant 0 : index
    %c0_19 = arith.constant 0 : index
    %40 = vector.load %arg8[%c0_18, %c0_19] : memref<3x128xf32, #tpu.memory_space<vmem>>, vector<1x128xf32>
    %41 = vector.broadcast %40 : vector<1x128xf32> to vector<128x128xf32>
    %42 = arith.addf %39, %41 : vector<128x128xf32>
    %43 = arith.mulf %42, %42 : vector<128x128xf32>
    %cst_20 = arith.constant dense<0.000000e+00> : vector<128xf32>
    %44 = vector.multi_reduction <add>, %43, %cst_20 [1] : vector<128x128xf32> to vector<128xf32>
    %45 = vector.shape_cast %44 : vector<128xf32> to vector<128x1xf32>
    %cst_21 = arith.constant 1.000000e-24 : f32
    %46 = vector.broadcast %cst_21 : f32 to vector<128x1xf32>
    %47 = arith.maximumf %45, %46 : vector<128x1xf32>
    %48 = math.rsqrt %47 : vector<128x1xf32>
    %49 = vector.broadcast %48 : vector<128x1xf32> to vector<128x128xf32>
    %50 = arith.mulf %42, %49 : vector<128x128xf32>
    %c1 = arith.constant 1 : index
    %51 = memref.load %arg9[%c1] : memref<3xf32, #tpu.memory_space<smem>>
    %52 = vector.broadcast %51 : f32 to vector<128x128xf32>
    %53 = arith.mulf %50, %52 : vector<128x128xf32>
    %54 = arith.truncf %53 : vector<128x128xf32> to vector<128x128xbf16>
    %55 = arith.truncf %50 : vector<128x128xf32> to vector<128x128xbf16>
    %cst_22 = arith.constant dense<0.000000e+00> : vector<128x128xf32>
    %56 = tpu.matmul %54, %55, %cst_22 {dimension_numbers = #tpu.dot_dimension_numbers<[1], [1], [0], [0], [0, 0, 1, 0], [], []>} : vector<128x128xbf16>, vector<128x128xbf16>, vector<128x128xf32> -> vector<128x128xf32>
    %c0_23 = arith.constant 0 : index
    %c0_24 = arith.constant 0 : index
    %57 = vector.load %arg1[%c0_23, %c0_24] : memref<128x128xbf16, #tpu.memory_space<vmem>>, vector<128x128xbf16>
    %58 = arith.extf %57 : vector<128x128xbf16> to vector<128x128xf32>
    %59 = arith.addf %56, %58 : vector<128x128xf32>
    %cst_25 = arith.constant dense<0xFF800000> : vector<128xf32>
    %60 = vector.multi_reduction <maximumf>, %59, %cst_25 [1] : vector<128x128xf32> to vector<128xf32>
    %61 = vector.shape_cast %60 : vector<128xf32> to vector<128x1xf32>
    %62 = vector.broadcast %61 : vector<128x1xf32> to vector<128x128xf32>
    %63 = arith.subf %59, %62 : vector<128x128xf32>
    %64 = math.exp %63 : vector<128x128xf32>
    %cst_26 = arith.constant dense<0.000000e+00> : vector<128xf32>
    %65 = vector.multi_reduction <add>, %64, %cst_26 [1] : vector<128x128xf32> to vector<128xf32>
    %66 = vector.shape_cast %65 : vector<128xf32> to vector<128x1xf32>
    %67 = tpu.reciprocal %66 {approx = true} : vector<128x1xf32> -> vector<128x1xf32>
    %68 = arith.truncf %64 : vector<128x128xf32> to vector<128x128xbf16>
    %69 = arith.truncf %42 : vector<128x128xf32> to vector<128x128xbf16>
    %cst_27 = arith.constant dense<0.000000e+00> : vector<128x128xf32>
    %70 = tpu.matmul %68, %69, %cst_27 {dimension_numbers = #tpu.dot_dimension_numbers<[1], [0], [0], [1], [0, 0, 1, 1], [], []>} : vector<128x128xbf16>, vector<128x128xbf16>, vector<128x128xf32> -> vector<128x128xf32>
    %71 = vector.broadcast %67 : vector<128x1xf32> to vector<128x128xf32>
    %72 = arith.mulf %70, %71 : vector<128x128xf32>
    %73 = arith.truncf %72 : vector<128x128xf32> to vector<128x128xbf16>
    %c1_28 = arith.constant 1 : index
    %c0_29 = arith.constant 0 : index
    %c0_30 = arith.constant 0 : index
    %74 = vector.load %arg7[%c1_28, %c0_29, %c0_30] : memref<3x128x128xbf16, #tpu.memory_space<vmem>>, vector<1x128x128xbf16>
    %75 = vector.shape_cast %74 : vector<1x128x128xbf16> to vector<128x128xbf16>
    %cst_31 = arith.constant dense<0.000000e+00> : vector<128x128xf32>
    %76 = tpu.matmul %73, %75, %cst_31 {dimension_numbers = #tpu.dot_dimension_numbers<[1], [0], [0], [1], [0, 0, 1, 1], [], []>} : vector<128x128xbf16>, vector<128x128xbf16>, vector<128x128xf32> -> vector<128x128xf32>
    %c1_32 = arith.constant 1 : index
    %c0_33 = arith.constant 0 : index
    %77 = vector.load %arg8[%c1_32, %c0_33] : memref<3x128xf32, #tpu.memory_space<vmem>>, vector<1x128xf32>
    %78 = vector.broadcast %77 : vector<1x128xf32> to vector<128x128xf32>
    %79 = arith.addf %76, %78 : vector<128x128xf32>
    %80 = arith.mulf %79, %79 : vector<128x128xf32>
    %cst_34 = arith.constant dense<0.000000e+00> : vector<128xf32>
    %81 = vector.multi_reduction <add>, %80, %cst_34 [1] : vector<128x128xf32> to vector<128xf32>
    %82 = vector.shape_cast %81 : vector<128xf32> to vector<128x1xf32>
    %cst_35 = arith.constant 1.000000e-24 : f32
    %83 = vector.broadcast %cst_35 : f32 to vector<128x1xf32>
    %84 = arith.maximumf %82, %83 : vector<128x1xf32>
    %85 = math.rsqrt %84 : vector<128x1xf32>
    %86 = vector.broadcast %85 : vector<128x1xf32> to vector<128x128xf32>
    %87 = arith.mulf %79, %86 : vector<128x128xf32>
    %c2 = arith.constant 2 : index
    %88 = memref.load %arg9[%c2] : memref<3xf32, #tpu.memory_space<smem>>
    %89 = vector.broadcast %88 : f32 to vector<128x128xf32>
    %90 = arith.mulf %87, %89 : vector<128x128xf32>
    %91 = arith.truncf %90 : vector<128x128xf32> to vector<128x128xbf16>
    %92 = arith.truncf %87 : vector<128x128xf32> to vector<128x128xbf16>
    %cst_36 = arith.constant dense<0.000000e+00> : vector<128x128xf32>
    %93 = tpu.matmul %91, %92, %cst_36 {dimension_numbers = #tpu.dot_dimension_numbers<[1], [1], [0], [0], [0, 0, 1, 0], [], []>} : vector<128x128xbf16>, vector<128x128xbf16>, vector<128x128xf32> -> vector<128x128xf32>
    %c0_37 = arith.constant 0 : index
    %c0_38 = arith.constant 0 : index
    %94 = vector.load %arg1[%c0_37, %c0_38] : memref<128x128xbf16, #tpu.memory_space<vmem>>, vector<128x128xbf16>
    %95 = arith.extf %94 : vector<128x128xbf16> to vector<128x128xf32>
    %96 = arith.addf %93, %95 : vector<128x128xf32>
    %cst_39 = arith.constant dense<0xFF800000> : vector<128xf32>
    %97 = vector.multi_reduction <maximumf>, %96, %cst_39 [1] : vector<128x128xf32> to vector<128xf32>
    %98 = vector.shape_cast %97 : vector<128xf32> to vector<128x1xf32>
    %99 = vector.broadcast %98 : vector<128x1xf32> to vector<128x128xf32>
    %100 = arith.subf %96, %99 : vector<128x128xf32>
    %101 = math.exp %100 : vector<128x128xf32>
    %cst_40 = arith.constant dense<0.000000e+00> : vector<128xf32>
    %102 = vector.multi_reduction <add>, %101, %cst_40 [1] : vector<128x128xf32> to vector<128xf32>
    %103 = vector.shape_cast %102 : vector<128xf32> to vector<128x1xf32>
    %104 = tpu.reciprocal %103 {approx = true} : vector<128x1xf32> -> vector<128x1xf32>
    %105 = arith.truncf %101 : vector<128x128xf32> to vector<128x128xbf16>
    %106 = arith.truncf %79 : vector<128x128xf32> to vector<128x128xbf16>
    %cst_41 = arith.constant dense<0.000000e+00> : vector<128x128xf32>
    %107 = tpu.matmul %105, %106, %cst_41 {dimension_numbers = #tpu.dot_dimension_numbers<[1], [0], [0], [1], [0, 0, 1, 1], [], []>} : vector<128x128xbf16>, vector<128x128xbf16>, vector<128x128xf32> -> vector<128x128xf32>
    %108 = vector.broadcast %104 : vector<128x1xf32> to vector<128x128xf32>
    %109 = arith.mulf %107, %108 : vector<128x128xf32>
    %110 = arith.truncf %109 : vector<128x128xf32> to vector<128x128xbf16>
    %c2_42 = arith.constant 2 : index
    %c0_43 = arith.constant 0 : index
    %c0_44 = arith.constant 0 : index
    %111 = vector.load %arg7[%c2_42, %c0_43, %c0_44] : memref<3x128x128xbf16, #tpu.memory_space<vmem>>, vector<1x128x128xbf16>
    %112 = vector.shape_cast %111 : vector<1x128x128xbf16> to vector<128x128xbf16>
    %cst_45 = arith.constant dense<0.000000e+00> : vector<128x128xf32>
    %113 = tpu.matmul %110, %112, %cst_45 {dimension_numbers = #tpu.dot_dimension_numbers<[1], [0], [0], [1], [0, 0, 1, 1], [], []>} : vector<128x128xbf16>, vector<128x128xbf16>, vector<128x128xf32> -> vector<128x128xf32>
    %c2_46 = arith.constant 2 : index
    %c0_47 = arith.constant 0 : index
    %114 = vector.load %arg8[%c2_46, %c0_47] : memref<3x128xf32, #tpu.memory_space<vmem>>, vector<1x128xf32>
    %115 = vector.broadcast %114 : vector<1x128xf32> to vector<128x128xf32>
    %116 = arith.addf %113, %115 : vector<128x128xf32>
    %117 = arith.truncf %116 : vector<128x128xf32> to vector<128x128xbf16>
    %118 = tpu.iota {dimensions = array<i32: 1>} : vector<16x128xi32>
    %c0_48 = arith.constant 0 : index
    %c0_49 = arith.constant 0 : index
    %119 = vector.load %arg2[%c0_48, %c0_49] : memref<16x1xi32, #tpu.memory_space<vmem>>, vector<16x1xi32>
    %120 = vector.broadcast %119 : vector<16x1xi32> to vector<16x128xi32>
    %121 = arith.cmpi eq, %118, %120 : vector<16x128xi32>
    %122 = arith.extui %121 : vector<16x128xi1> to vector<16x128xi32>
    %123 = arith.sitofp %122 : vector<16x128xi32> to vector<16x128xf32>
    %124 = arith.truncf %123 : vector<16x128xf32> to vector<16x128xbf16>
    %c0_50 = arith.constant 0 : index
    %c0_51 = arith.constant 0 : index
    %125 = vector.load %arg3[%c0_50, %c0_51] : memref<16x1xi32, #tpu.memory_space<vmem>>, vector<16x1xi32>
    %126 = vector.broadcast %125 : vector<16x1xi32> to vector<16x128xi32>
    %127 = arith.cmpi eq, %118, %126 : vector<16x128xi32>
    %128 = arith.extui %127 : vector<16x128xi1> to vector<16x128xi32>
    %129 = arith.sitofp %128 : vector<16x128xi32> to vector<16x128xf32>
    %130 = arith.truncf %129 : vector<16x128xf32> to vector<16x128xbf16>
    %cst_52 = arith.constant dense<0.000000e+00> : vector<16x128xf32>
    %131 = tpu.matmul %124, %117, %cst_52 {dimension_numbers = #tpu.dot_dimension_numbers<[1], [0], [0], [1], [0, 0, 1, 1], [], []>} : vector<16x128xbf16>, vector<128x128xbf16>, vector<16x128xf32> -> vector<16x128xf32>
    %cst_53 = arith.constant dense<0.000000e+00> : vector<16x128xf32>
    %132 = tpu.matmul %130, %117, %cst_53 {dimension_numbers = #tpu.dot_dimension_numbers<[1], [0], [0], [1], [0, 0, 1, 1], [], []>} : vector<16x128xbf16>, vector<128x128xbf16>, vector<16x128xf32> -> vector<16x128xf32>
    %133 = arith.truncf %131 : vector<16x128xf32> to vector<16x128xbf16>
    %134 = arith.truncf %132 : vector<16x128xf32> to vector<16x128xbf16>
    %c0_54 = arith.constant 0 : index
    %c0_55 = arith.constant 0 : index
    %135 = vector.load %arg4[%c0_54, %c0_55] : memref<16x128xbf16, #tpu.memory_space<vmem>>, vector<16x128xbf16>
    %136 = tpu.concatenate %133, %134, %135 in 1 : vector<16x128xbf16>, vector<16x128xbf16>, vector<16x128xbf16> -> vector<16x384xbf16>
    %c0_56 = arith.constant 0 : index
    %c0_57 = arith.constant 0 : index
    %137 = vector.load %arg10[%c0_56, %c0_57] : memref<384x128xbf16, #tpu.memory_space<vmem>>, vector<384x128xbf16>
    %cst_58 = arith.constant dense<0.000000e+00> : vector<16x128xf32>
    %138 = tpu.matmul %136, %137, %cst_58 {dimension_numbers = #tpu.dot_dimension_numbers<[1], [0], [0], [1], [0, 0, 1, 1], [], []>} : vector<16x384xbf16>, vector<384x128xbf16>, vector<16x128xf32> -> vector<16x128xf32>
    %c0_59 = arith.constant 0 : index
    %c0_60 = arith.constant 0 : index
    %139 = vector.load %arg12[%c0_59, %c0_60] : memref<5x128xf32, #tpu.memory_space<vmem>>, vector<1x128xf32>
    %140 = vector.broadcast %139 : vector<1x128xf32> to vector<16x128xf32>
    %141 = arith.addf %138, %140 : vector<16x128xf32>
    %cst_61 = arith.constant 1.000000e-01 : f32
    %142 = vector.broadcast %cst_61 : f32 to vector<16x128xf32>
    %143 = arith.mulf %142, %141 : vector<16x128xf32>
    %144 = arith.maximumf %141, %143 : vector<16x128xf32>
    %145 = arith.truncf %144 : vector<16x128xf32> to vector<16x128xbf16>
    %c0_62 = arith.constant 0 : index
    %c0_63 = arith.constant 0 : index
    %c0_64 = arith.constant 0 : index
    %146 = vector.load %arg11[%c0_62, %c0_63, %c0_64] : memref<4x128x128xbf16, #tpu.memory_space<vmem>>, vector<1x128x128xbf16>
    %147 = vector.shape_cast %146 : vector<1x128x128xbf16> to vector<128x128xbf16>
    %cst_65 = arith.constant dense<0.000000e+00> : vector<16x128xf32>
    %148 = tpu.matmul %145, %147, %cst_65 {dimension_numbers = #tpu.dot_dimension_numbers<[1], [0], [0], [1], [0, 0, 1, 1], [], []>} : vector<16x128xbf16>, vector<128x128xbf16>, vector<16x128xf32> -> vector<16x128xf32>
    %c1_66 = arith.constant 1 : index
    %c0_67 = arith.constant 0 : index
    %149 = vector.load %arg12[%c1_66, %c0_67] : memref<5x128xf32, #tpu.memory_space<vmem>>, vector<1x128xf32>
    %150 = vector.broadcast %149 : vector<1x128xf32> to vector<16x128xf32>
    %151 = arith.addf %148, %150 : vector<16x128xf32>
    %cst_68 = arith.constant 1.000000e-01 : f32
    %152 = vector.broadcast %cst_68 : f32 to vector<16x128xf32>
    %153 = arith.mulf %152, %151 : vector<16x128xf32>
    %154 = arith.maximumf %151, %153 : vector<16x128xf32>
    %155 = arith.truncf %154 : vector<16x128xf32> to vector<16x128xbf16>
    %c1_69 = arith.constant 1 : index
    %c0_70 = arith.constant 0 : index
    %c0_71 = arith.constant 0 : index
    %156 = vector.load %arg11[%c1_69, %c0_70, %c0_71] : memref<4x128x128xbf16, #tpu.memory_space<vmem>>, vector<1x128x128xbf16>
    %157 = vector.shape_cast %156 : vector<1x128x128xbf16> to vector<128x128xbf16>
    %cst_72 = arith.constant dense<0.000000e+00> : vector<16x128xf32>
    %158 = tpu.matmul %155, %157, %cst_72 {dimension_numbers = #tpu.dot_dimension_numbers<[1], [0], [0], [1], [0, 0, 1, 1], [], []>} : vector<16x128xbf16>, vector<128x128xbf16>, vector<16x128xf32> -> vector<16x128xf32>
    %c2_73 = arith.constant 2 : index
    %c0_74 = arith.constant 0 : index
    %159 = vector.load %arg12[%c2_73, %c0_74] : memref<5x128xf32, #tpu.memory_space<vmem>>, vector<1x128xf32>
    %160 = vector.broadcast %159 : vector<1x128xf32> to vector<16x128xf32>
    %161 = arith.addf %158, %160 : vector<16x128xf32>
    %cst_75 = arith.constant 1.000000e-01 : f32
    %162 = vector.broadcast %cst_75 : f32 to vector<16x128xf32>
    %163 = arith.mulf %162, %161 : vector<16x128xf32>
    %164 = arith.maximumf %161, %163 : vector<16x128xf32>
    %165 = arith.truncf %164 : vector<16x128xf32> to vector<16x128xbf16>
    %c2_76 = arith.constant 2 : index
    %c0_77 = arith.constant 0 : index
    %c0_78 = arith.constant 0 : index
    %166 = vector.load %arg11[%c2_76, %c0_77, %c0_78] : memref<4x128x128xbf16, #tpu.memory_space<vmem>>, vector<1x128x128xbf16>
    %167 = vector.shape_cast %166 : vector<1x128x128xbf16> to vector<128x128xbf16>
    %cst_79 = arith.constant dense<0.000000e+00> : vector<16x128xf32>
    %168 = tpu.matmul %165, %167, %cst_79 {dimension_numbers = #tpu.dot_dimension_numbers<[1], [0], [0], [1], [0, 0, 1, 1], [], []>} : vector<16x128xbf16>, vector<128x128xbf16>, vector<16x128xf32> -> vector<16x128xf32>
    %c3 = arith.constant 3 : index
    %c0_80 = arith.constant 0 : index
    %169 = vector.load %arg12[%c3, %c0_80] : memref<5x128xf32, #tpu.memory_space<vmem>>, vector<1x128xf32>
    %170 = vector.broadcast %169 : vector<1x128xf32> to vector<16x128xf32>
    %171 = arith.addf %168, %170 : vector<16x128xf32>
    %cst_81 = arith.constant 1.000000e-01 : f32
    %172 = vector.broadcast %cst_81 : f32 to vector<16x128xf32>
    %173 = arith.mulf %172, %171 : vector<16x128xf32>
    %174 = arith.maximumf %171, %173 : vector<16x128xf32>
    %175 = arith.truncf %174 : vector<16x128xf32> to vector<16x128xbf16>
    %c3_82 = arith.constant 3 : index
    %c0_83 = arith.constant 0 : index
    %c0_84 = arith.constant 0 : index
    %176 = vector.load %arg11[%c3_82, %c0_83, %c0_84] : memref<4x128x128xbf16, #tpu.memory_space<vmem>>, vector<1x128x128xbf16>
    %177 = vector.shape_cast %176 : vector<1x128x128xbf16> to vector<128x128xbf16>
    %cst_85 = arith.constant dense<0.000000e+00> : vector<16x128xf32>
    %178 = tpu.matmul %175, %177, %cst_85 {dimension_numbers = #tpu.dot_dimension_numbers<[1], [0], [0], [1], [0, 0, 1, 1], [], []>} : vector<16x128xbf16>, vector<128x128xbf16>, vector<16x128xf32> -> vector<16x128xf32>
    %c4 = arith.constant 4 : index
    %c0_86 = arith.constant 0 : index
    %179 = vector.load %arg12[%c4, %c0_86] : memref<5x128xf32, #tpu.memory_space<vmem>>, vector<1x128xf32>
    %180 = vector.broadcast %179 : vector<1x128xf32> to vector<16x128xf32>
    %181 = arith.addf %178, %180 : vector<16x128xf32>
    %c0_87 = arith.constant 0 : index
    %c0_88 = arith.constant 0 : index
    %182 = vector.load %arg13[%c0_87, %c0_88] : memref<16x128xf32, #tpu.memory_space<vmem>>, vector<16x128xf32>
    tpu.vector_store %arg13[%c0_87, %c0_88], %181 {strides = array<i32>} : memref<16x128xf32, #tpu.memory_space<vmem>>, vector<16x128xf32>,
    return
  }
}

</mosaic_0001>

<bundles_post_ra>
// kernel: tpu_custom_call.1
= control target key start
LH: loop header
LB: loop body
LE: loop exit
PB: predicated region body
PF: predicated region fallthrough
CT: control target
= control target key end

     0   :  { %18 = vsyncpa [#allocation3], 0  ;;  %s5586_s0 = inlined_call_operand.hbm [shape: bf16[128,128], index: 0, kind: input, shape index: {}]   ;;  %s5587_s1 = inlined_call_operand.hbm [shape: bf16[128,128], index: 1, kind: input, shape index: {}]   ;;  %s5588_s2 = inlined_call_operand.vmem [shape: s32[16,1], index: 2, kind: input, shape index: {}]   ;;  %s5589_s3 = inlined_call_operand.vmem [shape: s32[16,1], index: 3, kind: input, shape index: {}]   ;;  %s5590_s4 = inlined_call_operand.vmem [shape: bf16[16,128], index: 4, kind: input, shape index: {}]   ;;  %s5591_s5 = inlined_call_operand.hbm [shape: bf16[128,128], index: 5, kind: input, shape index: {}]   ;;  %s5592_s6 = inlined_call_operand.vmem [shape: f32[1,128], index: 6, kind: input, shape index: {}]   ;;  %s5593_s7 = inlined_call_operand.hbm [shape: bf16[3,128,128], index: 7, kind: input, shape index: {}]   ;;  %s5594_s8 = inlined_call_operand.vmem [shape: f32[3,128], index: 8, kind: input, shape index: {}]   ;;  %s5595_s9 = inlined_call_operand.vmem [shape: f32[3], index: 9, kind: input, shape index: {}]   ;;  %s5596_s10 = inlined_call_operand.hbm [shape: bf16[384,128], index: 10, kind: input, shape index: {}]   ;;  %s5597_s11 = inlined_call_operand.hbm [shape: bf16[4,128,128], index: 11, kind: input, shape index: {}]   ;;  %s5598_s12 = inlined_call_operand.vmem [shape: f32[5,128], index: 12, kind: input, shape index: {}]   ;;  %s5599_s13 = inlined_call_operand.hbm [shape: f32[16,128], index: 13, kind: output, shape index: {}]  }
   0x1   :  { %19 = vsyncpa [#allocation7], 0 }
   0x2   :  { %20 = vsyncpa [#allocation10], 0 }
   0x3   :  { %21 = vsyncpa [#allocation5], 0 }
   0x4   :  { %22 = vsyncpa [#allocation14], 0 }
   0x5   :  { %23 = vsyncpa [#allocation4], 0  ;;  %s4707_s25 = smov [#allocation6]   ;;  %s4708_s27 = smov [#allocation9]  }
   0x6   :  { %s41_s26 = sshll.u32 %s4707_s25, 4  ;;  %s73_s28 = sshll.u32 %s4708_s27, 4  ;;  %s42_s26 = int_to_ptr.vmem [resolvable:$true] %s41_s26  ;;  %s74_s28 = int_to_ptr.vmem [resolvable:$true] %s73_s28 }
   0x7   :  { %s4549_s29 = scalar_lea.vmem %s42_s26, 1024  ;;  %p4554_p1 = scmp.lt.s32.totalorder %s42_s26, %s42_s26 }
   0x8   :  { %p4550_p0 = scmp.ne.s32.totalorder %s42_s26, %s4549_s29  ;;  %p4555_p2 = scmp.lt.s32.totalorder %s4549_s29, %s4549_s29 }
   0xa   :  { %p4556_p3 = por %p4555_p2, %p4554_p1 }
   0xc   :  { %p4557_p4 = pnand %p4556_p3, %p4550_p0 }
   0xe   :  { %4560 = shalt.err (!%p4557_p4)
}
   0xf   :  { %s4709_s30 = smov 64   ;;  %s4710_s14 = smov 4  }
  0x10   :  { %47 = dma.hbm_to_vmem [thread:$0]  %s5587_s1, 1024, %s42_s26, [#allocation7], %s4709_s30, %s4709_s30, %s4710_s14  }
  0x11   :  { %s4569_s17 = scalar_lea.vmem %s74_s28, 3072  ;;  %p4574_p6 = scmp.lt.s32.totalorder %s74_s28, %s74_s28 }
  0x12   :  { %p4570_p5 = scmp.ne.s32.totalorder %s74_s28, %s4569_s17  ;;  %p4575_p7 = scmp.lt.s32.totalorder %s4569_s17, %s4569_s17 }
  0x14   :  { %p4576_p8 = por %p4575_p7, %p4574_p6 }
  0x16   :  { %p4577_p9 = pnand %p4576_p8, %p4570_p5 }
  0x18   :  { %4580 = shalt.err (!%p4577_p9)
}
  0x19   :  { %79 = dma.hbm_to_vmem [thread:$0]  %s5593_s7, 3072, %s74_s28, [#allocation10], %s4709_s30, %s4709_s30, %s4710_s14  }
  0x1a   :  { %s4711_s20 = smov [#allocation2]   ;;  %s4712_s22 = smov [#allocation8]  }
  0x1b   :  { %s29_s21 = sshll.u32 %s4711_s20, 4  ;;  %s59_s23 = sshll.u32 %s4712_s22, 4  ;;  %s30_s21 = int_to_ptr.vmem [resolvable:$true] %s29_s21  ;;  %s60_s23 = int_to_ptr.vmem [resolvable:$true] %s59_s23 }
  0x1c   :  { %s4589_s1 = scalar_lea.vmem %s30_s21, 1024  ;;  %p4594_p11 = scmp.lt.s32.totalorder %s30_s21, %s30_s21 }
  0x1d   :  { %p4590_p10 = scmp.ne.s32.totalorder %s30_s21, %s4589_s1  ;;  %p4595_p12 = scmp.lt.s32.totalorder %s4589_s1, %s4589_s1 }
  0x1f   :  { %p4596_p13 = por %p4595_p12, %p4594_p11 }
  0x21   :  { %p4597_p0 = pnand %p4596_p13, %p4590_p10 }
  0x23   :  { %4600 = shalt.err (!%p4597_p0)
}
  0x24   :  { %35 = dma.hbm_to_vmem [thread:$0]  %s5586_s0, 1024, %s30_s21, [#allocation3], %s4709_s30, %s4709_s30, %s4710_s14  }
  0x25   :  { %s4609_s7 = scalar_lea.vmem %s60_s23, 1024  ;;  %p4614_p2 = scmp.lt.s32.totalorder %s60_s23, %s60_s23 }
  0x26   :  { %p4610_p1 = scmp.ne.s32.totalorder %s60_s23, %s4609_s7  ;;  %p4615_p3 = scmp.lt.s32.totalorder %s4609_s7, %s4609_s7 }
  0x28   :  { %p4616_p4 = por %p4615_p3, %p4614_p2 }
  0x2a   :  { %p4617_p5 = pnand %p4616_p4, %p4610_p1 }
  0x2c   :  { %4620 = shalt.err (!%p4617_p5)
}
  0x2d   :  { %65 = dma.hbm_to_vmem [thread:$0]  %s5591_s5, 1024, %s60_s23, [#allocation7], %s4709_s30, %s4709_s30, %s4710_s14  }
  0x2e   :  { %s88_s15 = sshll.u32 %s5595_s9, 4  ;;  %s89_s15 = int_to_ptr.vmem [resolvable:$true] %s88_s15 }
  0x2f   :  { %s4621_s0 = scalar_lea.vmem %s89_s15, 16  ;;  %p4626_p7 = scmp.lt.s32.totalorder %s89_s15, %s89_s15 }
  0x30   :  { %p4622_p6 = scmp.ne.s32.totalorder %s89_s15, %s4621_s0  ;;  %p4627_p8 = scmp.lt.s32.totalorder %s4621_s0, %s4621_s0 }
  0x32   :  { %p4628_p9 = por %p4627_p8, %p4626_p7 }
  0x34   :  { %p4629_p10 = pnand %p4628_p9, %p4622_p6 }
  0x36   :  { %4632 = shalt.err (!%p4629_p10)
}
  0x37   :  { %s4713_s16 = smov [#allocation11]   ;;  %s4714_s17 = smov [#allocation12]  }
  0x38   :  { %91 = dma.vmem_to_smem %s89_s15, 16, %s4713_s16, [#allocation5]  }
  0x39   :  { %s97_s18 = sshll.u32 %s4714_s17, 4  ;;  %s4715_s19 = smov [#allocation13]   ;;  %s98_s18 = int_to_ptr.vmem [resolvable:$true] %s97_s18 }
  0x3a   :  { %s109_s20 = sshll.u32 %s4715_s19, 4  ;;  %s4641_s5 = scalar_lea.vmem %s98_s18, 3072  ;;  %s110_s20 = int_to_ptr.vmem [resolvable:$true] %s109_s20 }
  0x3b   :  { %p4642_p11 = scmp.ne.s32.totalorder %s98_s18, %s4641_s5  ;;  %p4646_p12 = scmp.lt.s32.totalorder %s98_s18, %s98_s18 }
  0x3c   :  { %p4647_p13 = scmp.lt.s32.totalorder %s4641_s5, %s4641_s5 }
  0x3e   :  { %p4648_p0 = por %p4647_p13, %p4646_p12 }
  0x40   :  { %p4649_p1 = pnand %p4648_p0, %p4642_p11 }
  0x42   :  { %4652 = shalt.err (!%p4649_p1)
}
  0x43   :  { %103 = dma.hbm_to_vmem [thread:$0]  %s5596_s10, 3072, %s98_s18, [#allocation10], %s4709_s30, %s4709_s30, %s4710_s14  }
  0x44   :  { %s4661_s22 = scalar_lea.vmem %s110_s20, 4096  ;;  %p4666_p3 = scmp.lt.s32.totalorder %s110_s20, %s110_s20 }
  0x45   :  { %p4662_p2 = scmp.ne.s32.totalorder %s110_s20, %s4661_s22  ;;  %p4667_p4 = scmp.lt.s32.totalorder %s4661_s22, %s4661_s22 }
  0x47   :  { %p4668_p5 = por %p4667_p4, %p4666_p3 }
  0x49   :  { %p4669_p6 = pnand %p4668_p5, %p4662_p2 }
  0x4b   :  { %4672 = shalt.err (!%p4669_p6)
}
  0x4c   :  { %115 = dma.hbm_to_vmem [thread:$0]  %s5597_s11, 4096, %s110_s20, [#allocation14], %s4709_s30, %s4709_s30, %s4710_s14  }
  0x4d   :  { %4693 = dma.done.wait [#allocation3], 1024  }
  0x4e   :  { %4694 = vsyncadd [#allocation3], 4294966272 }
  0x4f   :  { %4695 = dma.done.wait [#allocation7], 2048  }
  0x50   :  { %4696 = vsyncadd [#allocation7], 4294965248 }
  0x51   :  { %4697 = dma.done.wait [#allocation10], 3072  }
  0x52   :  { %4698 = vsyncadd [#allocation10], 4294964224 }
  0x53   :  { %4699 = dma.done.wait [#allocation5], 16  }
  0x54   :  { %4700 = vsyncadd [#allocation5], 4294967280 }
  0x55   :  { %4701 = dma.done.wait [#allocation10], 3072  }
  0x56   :  { %4702 = vsyncadd [#allocation10], 4294964224 }
  0x57   :  { %4703 = dma.done.wait [#allocation14], 4096  }
  0x58   :  { %4704 = vsyncadd [#allocation14], 4294963200 }
  0x59   :  { %139 = sfence }
  0x5a   :  { %v4156_v0 = vld [vmem:[#allocation8 + $0x38] sm:$0xff]   ;;  %v4157_v1 = vld [vmem:[#allocation8 + $0x30] sm:$0xff]   ;;  %v4158_v2 = vld [vmem:[#allocation8 + $0x28] sm:$0xff]   ;;  %s3304_s24 = sld [smem:[#allocation11 + $0x1]]  ;;  %vm4718_vm0 = vmmov 0  }
  0x5b   :  { %3678 = vmatprep.subr.bf16.mxu0 %v4156_v0  ;;  %v4159_v3 = vld [vmem:[#allocation8 + $0x20] sm:$0xff]   ;;  %v4160_v5 = vld [vmem:[#allocation8 + $0x18] sm:$0xff]   ;;  %v4161_v6 = vld [vmem:[#allocation8 + $0x10] sm:$0xff]   ;;  %s3314_s26 = sld [smem:[#allocation11 + $0x2]] }
  0x5c   :  { %3679 = vmatpush3.bf16.msra.mxu0 %v4156_v0  ;;  %v4164_v4 = vld [vmem:[#allocation2] sm:$0xff]   ;;  %v4162_v7 = vld [vmem:[#allocation8 + $0x8] sm:$0xff]   ;;  %v4166_v10 = vld [vmem:[#allocation2 + $0x10] sm:$0xff]  }
  0x5d   :  { %3680 = vmatprep.subr.bf16.mxu0 %v4157_v1  ;;  %3694 = vmatprep.mubr.bf16.mxu0 %v4164_v4  ;;  %v4163_v8 = vld [vmem:[#allocation8] sm:$0xff]   ;;  %v4165_v9 = vld [vmem:[#allocation2 + $0x8] sm:$0xff]   ;;  %v4167_v11 = vld [vmem:[#allocation2 + $0x18] sm:$0xff]  }
  0x5e   :  { %v4168_v12 = vld [vmem:[#allocation2 + $0x20] sm:$0xff]   ;;  %v4169_v13 = vld [vmem:[#allocation2 + $0x28] sm:$0xff]   ;;  %v4170_v14 = vld [vmem:[#allocation2 + $0x30] sm:$0xff]  }
  0x5f   :  { %v4171_v15 = vld [vmem:[#allocation2 + $0x38] sm:$0xff]   ;;  %v3278_v28 = vld [vmem:[%s5592_s6] ss:$0 sm:$0xff]  ;;  %s469_s6 = sld [smem:[#allocation11]] }
  0x60   :  { %3681 = vmatpush3.bf16.msra.mxu0 %v4157_v1 }
  0x61   :  { %3682 = vmatprep.subr.bf16.mxu0 %v4158_v2 }
  0x64   :  { %3683 = vmatpush3.bf16.msra.mxu0 %v4158_v2 }
  0x65   :  { %3684 = vmatprep.subr.bf16.mxu0 %v4159_v3 }
  0x68   :  { %3685 = vmatpush3.bf16.msra.mxu0 %v4159_v3 }
  0x69   :  { %3686 = vmatprep.subr.bf16.mxu0 %v4160_v5 }
  0x6c   :  { %3687 = vmatpush3.bf16.msra.mxu0 %v4160_v5 }
  0x6d   :  { %3688 = vmatprep.subr.bf16.mxu0 %v4161_v6 }
  0x70   :  { %3689 = vmatpush3.bf16.msra.mxu0 %v4161_v6 }
  0x71   :  { %3690 = vmatprep.subr.bf16.mxu0 %v4162_v7 }
  0x74   :  { %3691 = vmatpush3.bf16.msra.mxu0 %v4162_v7 }
  0x75   :  { %3692 = vmatprep.subr.bf16.mxu0 %v4163_v8 }
  0x78   :  { %3693 = vmatpush3.bf16.msra.mxu0 %v4163_v8 }
  0x7b   :  { %3695 = vmatmul.mubr.bf16.vlgmr.msra.gmra.mxu0 %v4165_v9 }
  0x7c   :  { %3698 = vmatprep.mubr.bf16.mxu0 %v4166_v10 }
  0x83   :  { %3699 = vmatmul.mubr.bf16.gmra.mxu0 %v4167_v11 }
  0x84   :  { %3702 = vmatprep.mubr.bf16.mxu0 %v4168_v12 }
  0x8b   :  { %3703 = vmatmul.mubr.bf16.gmra.mxu0 %v4169_v13 }
  0x8c   :  { %3706 = vmatprep.mubr.bf16.mxu0 %v4170_v14 }
  0x93   :  { %3707 = vmatmul.mubr.bf16.gmra.mxu0 %v4171_v15 }
 0x13b   :  { %v3696_v16 = vpop.f32.mrf.mxu0 }
 0x13c   :  { %v4895_v60 = vadd.f32 %v3696_v16, %v3278_v28 }
 0x13d   :  { %v4832_v17 = vpop.f32.mrf.mxu0 }
 0x13e   :  { %v4907_v1 = vadd.f32 %v3278_v28, %v4832_v17  ;;  %v375_v2 = vmul.f32 %v4895_v60, %v4895_v60 }
 0x13f   :  { %v4834_v18 = vpop.f32.mrf.mxu0 }
 0x140   :  { %v4900_v62 = vadd.f32 %v4834_v18, %v3278_v28  ;;  %v373_v6 = vmul.f32 %v4907_v1, %v4907_v1 }
 0x141   :  { %v4836_v19 = vpop.f32.mrf.mxu0 }
 0x142   :  { %v4912_v3 = vadd.f32 %v3278_v28, %v4836_v19  ;;  %v376_v4 = vmul.f32 %v4900_v62, %v4900_v62  ;;  %v769_v5 = vpack.c.bf16 %v4900_v62, %v4895_v60 }
 0x143   :  { %v3700_v20 = vpop.f32.mrf.mxu0 }
 0x144   :  { %v4875_v50 = vadd.f32 %v3700_v20, %v3278_v28  ;;  %v374_v7 = vmul.f32 %v4912_v3, %v4912_v3  ;;  %v768_v8 = vpack.c.bf16 %v4912_v3, %v4907_v1 }
 0x145   :  { %v326_v21 = vpop.f32.mrf.mxu0 }
 0x146   :  { %v4885_v55 = vadd.f32 %v3278_v28, %v326_v21  ;;  %v379_v56 = vmul.f32 %v4875_v50, %v4875_v50 }
 0x147   :  { %v3701_v22 = vpop.f32.mrf.mxu0 }
 0x148   :  { %v4879_v52 = vadd.f32 %v3701_v22, %v3278_v28  ;;  %v377_v61 = vmul.f32 %v4885_v55, %v4885_v55 }
 0x149   :  { %v329_v23 = vpop.f32.mrf.mxu0 }
 0x14a   :  { %v4889_v57 = vadd.f32 %v3278_v28, %v329_v23  ;;  %v380_v58 = vmul.f32 %v4879_v52, %v4879_v52  ;;  %v771_v59 = vpack.c.bf16 %v4879_v52, %v4875_v50 }
 0x14b   :  { %v3704_v24 = vpop.f32.mrf.mxu0 }
 0x14c   :  { %v4851_v38 = vadd.f32 %v3704_v24, %v3278_v28  ;;  %v378_v63 = vmul.f32 %v4889_v57, %v4889_v57  ;;  %v770_v0 = vpack.c.bf16 %v4889_v57, %v4885_v55 }
 0x14d   :  { %v342_v25 = vpop.f32.mrf.mxu0 }
 0x14e   :  { %v4865_v45 = vadd.f32 %v3278_v28, %v342_v25  ;;  %v383_v46 = vmul.f32 %v4851_v38, %v4851_v38 }
 0x14f   :  { %v3705_v26 = vpop.f32.mrf.mxu0 }
 0x150   :  { %v4859_v42 = vadd.f32 %v3705_v26, %v3278_v28  ;;  %v381_v51 = vmul.f32 %v4865_v45, %v4865_v45 }
 0x151   :  { %v345_v27 = vpop.f32.mrf.mxu0 }
 0x152   :  { %v4869_v47 = vadd.f32 %v3278_v28, %v345_v27  ;;  %v773_v48 = vpack.c.bf16 %v4859_v42, %v4851_v38  ;;  %v384_v49 = vmul.f32 %v4859_v42, %v4859_v42 }
 0x153   :  { %v3708_v29 = vpop.f32.mrf.mxu0 }
 0x154   :  { %v4841_v30 = vadd.f32 %v3708_v29, %v3278_v28  ;;  %v382_v53 = vmul.f32 %v4869_v47, %v4869_v47  ;;  %v772_v54 = vpack.c.bf16 %v4869_v47, %v4865_v45 }
 0x155   :  { %v358_v31 = vpop.f32.mrf.mxu0 }
 0x156   :  { %v4843_v32 = vadd.f32 %v3278_v28, %v358_v31  ;;  %v387_v33 = vmul.f32 %v4841_v30, %v4841_v30 }
 0x157   :  { %v3709_v34 = vpop.f32.mrf.mxu0 }
 0x158   :  { %v4847_v35 = vadd.f32 %v3709_v34, %v3278_v28  ;;  %417 = vadd.xlane.f32.xlu0 %v387_v33  ;;  %v385_v36 = vmul.f32 %v4843_v32, %v4843_v32  ;;  %v4925_v34 = vstv %s469_s6  ;;  %s4720_s6 = smov [#allocation15]  }
 0x159   :  { %v361_v37 = vpop.f32.mrf.mxu0  ;;  %s3262_s30 = sshll.u32 %s4720_s6, 4  ;;  %s3263_s30 = int_to_ptr.vmem [resolvable:$true] %s3262_s30 }
 0x15a   :  { %v4853_v39 = vadd.f32 %v3278_v28, %v361_v37  ;;  %413 = vadd.xlane.f32.xlu1 %v385_v36  ;;  %v775_v40 = vpack.c.bf16 %v4847_v35, %v4841_v30  ;;  %v388_v41 = vmul.f32 %v4847_v35, %v4847_v35  ;;  %s4673_s14 = scalar_lea.vmem %s3263_s30, 256  ;;  %p4678_p8 = scmp.lt.s32.totalorder %s3263_s30, %s3263_s30 }
 0x15b   :  { %p4674_p7 = scmp.ne.s32.totalorder %s3263_s30, %s4673_s14  ;;  %p4679_p9 = scmp.lt.s32.totalorder %s4673_s14, %s4673_s14 }
 0x15c   :  { %3742 = vmatprep.subr.bf16.mxu0 %v775_v40  ;;  %419 = vadd.xlane.f32.xlu0 %v388_v41  ;;  %v774_v43 = vpack.c.bf16 %v4853_v39, %v4843_v32  ;;  %v386_v44 = vmul.f32 %v4853_v39, %v4853_v39 }
 0x15d   :  { %3743 = vmatpush3.bf16.msra.mxu0 %v775_v40  ;;  %p4680_p10 = por %p4679_p9, %p4678_p8 }
 0x15e   :  { %3744 = vmatprep.subr.bf16.mxu0 %v774_v43  ;;  %415 = vadd.xlane.f32.xlu1 %v386_v44 }
 0x15f   :  { %p4681_p11 = pnand %p4680_p10, %p4674_p7 }
 0x160   :  { %409 = vadd.xlane.f32.xlu0 %v383_v46 }
 0x161   :  { %3745 = vmatpush3.bf16.msra.mxu0 %v774_v43 }
 0x162   :  { %3746 = vmatprep.subr.bf16.mxu0 %v773_v48  ;;  %411 = vadd.xlane.f32.xlu1 %v384_v49 }
 0x164   :  { %405 = vadd.xlane.f32.xlu0 %v381_v51 }
 0x165   :  { %3747 = vmatpush3.bf16.msra.mxu0 %v773_v48 }
 0x166   :  { %407 = vadd.xlane.f32.xlu1 %v382_v53  ;;  %3748 = vmatprep.subr.bf16.mxu0 %v772_v54 }
 0x168   :  { %401 = vadd.xlane.f32.xlu0 %v379_v56 }
 0x169   :  { %3749 = vmatpush3.bf16.msra.mxu0 %v772_v54 }
 0x16a   :  { %403 = vadd.xlane.f32.xlu1 %v380_v58  ;;  %3750 = vmatprep.subr.bf16.mxu0 %v771_v59 }
 0x16c   :  { %397 = vadd.xlane.f32.xlu0 %v377_v61 }
 0x16d   :  { %3751 = vmatpush3.bf16.msra.mxu0 %v771_v59 }
 0x16e   :  { %399 = vadd.xlane.f32.xlu1 %v378_v63  ;;  %3752 = vmatprep.subr.bf16.mxu0 %v770_v0 }
 0x170   :  { %393 = vadd.xlane.f32.xlu0 %v375_v2 }
 0x171   :  { %3753 = vmatpush3.bf16.msra.mxu0 %v770_v0 }
 0x172   :  { %395 = vadd.xlane.f32.xlu1 %v376_v4  ;;  %3754 = vmatprep.subr.bf16.mxu0 %v769_v5 }
 0x174   :  { %389 = vadd.xlane.f32.xlu0 %v373_v6 }
 0x175   :  { %3755 = vmatpush3.bf16.msra.mxu0 %v769_v5 }
 0x176   :  { %391 = vadd.xlane.f32.xlu1 %v374_v7  ;;  %3756 = vmatprep.subr.bf16.mxu0 %v768_v8 }
 0x179   :  { %3757 = vmatpush3.bf16.msra.mxu0 %v768_v8 }
 0x1e1   :  { %v418_v9 = vpop.xlane.xlu0 %417 }
 0x1e2   :  { %v435_v10 = vmax.f32 %v418_v9, 1e-24 }
 0x1e3   :  { %v414_v11 = vpop.xlane.xlu1 %413 }
 0x1e4   :  { %4253 = vrsqrt.f32 %v435_v10  ;;  %v433_v12 = vmax.f32 %v414_v11, 1e-24 }
 0x1e5   :  { %v420_v13 = vpop.xlane.xlu0 %419 }
 0x1e6   :  { %v436_v14 = vmax.f32 %v420_v13, 1e-24  ;;  %4255 = vrsqrt.f32 %v433_v12 }
 0x1e7   :  { %v416_v15 = vpop.xlane.xlu1 %415 }
 0x1e8   :  { %4257 = vrsqrt.f32 %v436_v14  ;;  %v434_v16 = vmax.f32 %v416_v15, 1e-24 }
 0x1e9   :  { %v410_v17 = vpop.xlane.xlu0 %409 }
 0x1ea   :  { %4259 = vrsqrt.f32 %v434_v16  ;;  %v431_v18 = vmax.f32 %v410_v17, 1e-24 }
 0x1eb   :  { %v412_v19 = vpop.xlane.xlu1 %411 }
 0x1ec   :  { %4261 = vrsqrt.f32 %v431_v18  ;;  %v432_v20 = vmax.f32 %v412_v19, 1e-24 }
 0x1ed   :  { %v406_v21 = vpop.xlane.xlu0 %405 }
 0x1ee   :  { %4263 = vrsqrt.f32 %v432_v20  ;;  %v429_v28 = vmax.f32 %v406_v21, 1e-24 }
 0x1ef   :  { %v408_v22 = vpop.xlane.xlu1 %407 }
 0x1f0   :  { %v430_v25 = vmax.f32 %v408_v22, 1e-24 }
 0x1f1   :  { %v4254_v23 = vpop.eup %4253  ;;  %v402_v24 = vpop.xlane.xlu0 %401 }
 0x1f2   :  { %v467_v29 = vmul.f32 %v4254_v23, %v4841_v30  ;;  %4265 = vrsqrt.f32 %v430_v25  ;;  %v427_v51 = vmax.f32 %v402_v24, 1e-24 }
 0x1f3   :  { %v404_v26 = vpop.xlane.xlu1 %403  ;;  %v4256_v27 = vpop.eup %4255  ;;  %4267 = vrsqrt.f32 %v429_v28 }
 0x1f4   :  { %v465_v41 = vmul.f32 %v4256_v27, %v4843_v32  ;;  %v4930_v43 = vmul.f32 %v4925_v34, %v467_v29  ;;  %v428_v53 = vmax.f32 %v404_v26, 1e-24 }
 0x1f5   :  { %v4258_v31 = vpop.eup %4257  ;;  %v398_v33 = vpop.xlane.xlu0 %397 }
 0x1f6   :  { %v468_v36 = vmul.f32 %v4258_v31, %v4847_v35  ;;  %v4940_v59 = vmul.f32 %v4925_v34, %v465_v41  ;;  %4269 = vrsqrt.f32 %v428_v53  ;;  %v425_v10 = vmax.f32 %v398_v33, 1e-24 }
 0x1f7   :  { %v4260_v37 = vpop.eup %4259  ;;  %v400_v40 = vpop.xlane.xlu1 %399  ;;  %4271 = vrsqrt.f32 %v427_v51 }
 0x1f8   :  { %v4933_v44 = vmul.f32 %v4925_v34, %v468_v36  ;;  %v502_v46 = vpack.c.bf16 %v468_v36, %v467_v29  ;;  %v466_v49 = vmul.f32 %v4260_v37, %v4853_v39  ;;  %v426_v7 = vmax.f32 %v400_v40, 1e-24 }
 0x1f9   :  { %v4262_v30 = vpop.eup %4261  ;;  %v394_v48 = vpop.xlane.xlu0 %393 }
 0x1fa   :  { %3710 = vmatprep.subr.bf16.mxu1 %v502_v46  ;;  %v494_v35 = vpack.c.bf16 %v4933_v44, %v4930_v43  ;;  %v501_v56 = vpack.c.bf16 %v466_v49, %v465_v41  ;;  %v463_v58 = vmul.f32 %v4262_v30, %v4851_v38  ;;  %v4943_v61 = vmul.f32 %v4925_v34, %v466_v49 }
 0x1fb   :  { %v4264_v54 = vpop.eup %4263  ;;  %3711 = vmatpush3.bf16.xpose.msra.mxu1 %v502_v46  ;;  %v396_v32 = vpop.xlane.xlu1 %395  ;;  %v423_v18 = vmax.f32 %v394_v48, 1e-24 }
 0x1fc   :  { %v464_v39 = vmul.f32 %v4264_v54, %v4859_v42  ;;  %3712 = vmatprep.subr.bf16.mxu1 %v501_v56  ;;  %v493_v0 = vpack.c.bf16 %v4943_v61, %v4940_v59  ;;  %v4949_v5 = vmul.f32 %v4925_v34, %v463_v58  ;;  %v424_v14 = vmax.f32 %v396_v32, 1e-24  ;;  %v3395_v54 = vld [vmem:[#allocation6] sm:$0xff]   ;;  %v3427_v59 = vld [vmem:[#allocation6 + $0x10] sm:$0xff]  }
 0x1fd   :  { %v390_v63 = vpop.xlane.xlu0 %389  ;;  %v4985_v32 = vunpack.c.l.bf16 %v3395_v54 }
 0x1fe   :  { %v421_v2 = vmax.f32 %v390_v63, 1e-24  ;;  %v4952_v38 = vmul.f32 %v4925_v34, %v464_v39  ;;  %v500_v8 = vpack.c.bf16 %v464_v39, %v463_v58 }
 0x1ff   :  { %v392_v4 = vpop.xlane.xlu1 %391  ;;  %v4266_v9 = vpop.eup %4265 }
 0x200   :  { %4273 = vrsqrt.f32 %v421_v2  ;;  %v422_v6 = vmax.f32 %v392_v4, 1e-24  ;;  %v492_v42 = vpack.c.bf16 %v4952_v38, %v4949_v5  ;;  %v4268_v11 = vpop.eup %4267  ;;  %v462_v12 = vmul.f32 %v4266_v9, %v4869_v47  ;;  %v3428_v5 = vld [vmem:[#allocation6 + $0x18] sm:$0xff]  }
 0x201   :  { %v461_v13 = vmul.f32 %v4268_v11, %v4865_v45  ;;  %v4992_v2 = vunpack.c.h.bf16 %v3395_v54  ;;  %v5015_v9 = vunpack.c.h.bf16 %v3427_v59  ;;  %v3429_v11 = vld [vmem:[#allocation6 + $0x20] sm:$0xff]  }
 0x202   :  { %4275 = vrsqrt.f32 %v422_v6 }
 0x203   :  { %3713 = vmatpush3.bf16.xpose.msra.mxu1 %v501_v56  ;;  %4277 = vrsqrt.f32 %v426_v7  ;;  %v499_v15 = vpack.c.bf16 %v462_v12, %v461_v13  ;;  %v4270_v16 = vpop.eup %4269  ;;  %v479_v49 = vmul.f32 %v4925_v34, %v461_v13  ;;  %v5010_v7 = vunpack.c.l.bf16 %v3428_v5 }
 0x204   :  { %3714 = vmatprep.subr.bf16.mxu1 %v500_v8  ;;  %4279 = vrsqrt.f32 %v425_v10  ;;  %v4272_v17 = vpop.eup %4271  ;;  %v460_v20 = vmul.f32 %v4270_v16, %v4879_v52  ;;  %v5027_v16 = vunpack.c.l.bf16 %v3429_v11 }
 0x205   :  { %4281 = vrsqrt.f32 %v424_v14  ;;  %v459_v47 = vmul.f32 %v4272_v17, %v4875_v50  ;;  %v5022_v14 = vunpack.c.h.bf16 %v3428_v5  ;;  %v3430_v17 = vld [vmem:[#allocation6 + $0x28] sm:$0xff]  }
 0x206   :  { %4283 = vrsqrt.f32 %v423_v18 }
 0x207   :  { %v498_v45 = vpack.c.bf16 %v460_v20, %v459_v47  ;;  %v477_v48 = vmul.f32 %v4925_v34, %v459_v47  ;;  %v5039_v47 = vunpack.c.h.bf16 %v3429_v11 }
 0x20b   :  { %3715 = vmatpush3.bf16.xpose.msra.mxu1 %v500_v8 }
 0x20c   :  { %3716 = vmatprep.subr.bf16.mxu1 %v499_v15 }
 0x20d   :  { %v4274_v19 = vpop.eup %4273 }
 0x20e   :  { %v453_v21 = vmul.f32 %v4274_v19, %v4907_v1 }
 0x20f   :  { %v4276_v22 = vpop.eup %4275 }
 0x210   :  { %v454_v23 = vmul.f32 %v4276_v22, %v4912_v3  ;;  %v471_v24 = vmul.f32 %v4925_v34, %v453_v21  ;;  %v4278_v26 = vpop.eup %4277 }
 0x211   :  { %v4280_v28 = vpop.eup %4279  ;;  %v458_v52 = vmul.f32 %v4278_v26, %v4889_v57  ;;  %v5046_v26 = vunpack.c.h.bf16 %v3430_v17 }
 0x212   :  { %v472_v25 = vmul.f32 %v4925_v34, %v454_v23  ;;  %v457_v1 = vmul.f32 %v4280_v28, %v4885_v55  ;;  %v4282_v31 = vpop.eup %4281  ;;  %v495_v37 = vpack.c.bf16 %v454_v23, %v453_v21  ;;  %v5034_v21 = vunpack.c.l.bf16 %v3430_v17 }
 0x213   :  { %3717 = vmatpush3.bf16.xpose.msra.mxu1 %v499_v15  ;;  %v4284_v50 = vpop.eup %4283  ;;  %v456_v3 = vmul.f32 %v4282_v31, %v4900_v62  ;;  %v476_v55 = vmul.f32 %v4925_v34, %v458_v52  ;;  %v480_v62 = vmul.f32 %v4925_v34, %v462_v12 }
 0x214   :  { %3718 = vmatprep.subr.bf16.mxu1 %v498_v45  ;;  %v487_v27 = vpack.c.bf16 %v472_v25, %v471_v24  ;;  %v497_v29 = vpack.c.bf16 %v458_v52, %v457_v1  ;;  %v455_v33 = vmul.f32 %v4284_v50, %v4895_v60  ;;  %v475_v41 = vmul.f32 %v4925_v34, %v457_v1  ;;  %v3432_v52 = vld [vmem:[#allocation6 + $0x38] sm:$0xff]  }
 0x215   :  { %v474_v57 = vmul.f32 %v4925_v34, %v456_v3  ;;  %v478_v60 = vmul.f32 %v4925_v34, %v460_v20  ;;  %v491_v53 = vpack.c.bf16 %v480_v62, %v479_v49  ;;  %v5058_v50 = vunpack.c.l.bf16 %v3432_v52 }
 0x216   :  { %3726 = vmatprep.mubr.bf16.mxu1 %v487_v27  ;;  %v496_v36 = vpack.c.bf16 %v456_v3, %v455_v33  ;;  %v473_v40 = vmul.f32 %v4925_v34, %v455_v33  ;;  %v489_v30 = vpack.c.bf16 %v476_v55, %v475_v41  ;;  %v3426_v34 = vld [vmem:[#allocation6 + $0x8] sm:$0xff]   ;;  %v5070_v55 = vunpack.c.h.bf16 %v3432_v52 }
 0x217   :  { %v490_v51 = vpack.c.bf16 %v478_v60, %v477_v48  ;;  %v4987_v39 = vunpack.c.l.bf16 %v3426_v34  ;;  %v4998_v44 = vunpack.c.h.bf16 %v3426_v34 }
 0x218   :  { %v488_v46 = vpack.c.bf16 %v474_v57, %v473_v40 }
 0x21b   :  { %3719 = vmatpush3.bf16.xpose.msra.mxu1 %v498_v45  ;;  %v3431_v45 = vld [vmem:[#allocation6 + $0x30] sm:$0xff]  }
 0x21c   :  { %3720 = vmatprep.subr.bf16.mxu1 %v497_v29  ;;  %v5051_v28 = vunpack.c.l.bf16 %v3431_v45  ;;  %v5063_v33 = vunpack.c.h.bf16 %v3431_v45 }
 0x223   :  { %3721 = vmatpush3.bf16.xpose.msra.mxu1 %v497_v29 }
 0x224   :  { %3722 = vmatprep.subr.bf16.mxu1 %v496_v36 }
 0x22b   :  { %3723 = vmatpush3.bf16.xpose.msra.mxu1 %v496_v36 }
 0x22c   :  { %3724 = vmatprep.subr.bf16.mxu1 %v495_v37 }
 0x233   :  { %3725 = vmatpush3.bf16.xpose.msra.mxu1 %v495_v37 }
 0x23a   :  { %3727 = vmatmul.mubr.bf16.vlgmr.msra.gmra.mxu1 %v488_v46 }
 0x23b   :  { %3730 = vmatprep.mubr.bf16.mxu1 %v489_v30 }
 0x242   :  { %3731 = vmatmul.mubr.bf16.gmra.mxu1 %v490_v51 }
 0x243   :  { %3734 = vmatprep.mubr.bf16.mxu1 %v491_v53 }
 0x24a   :  { %3735 = vmatmul.mubr.bf16.gmra.mxu1 %v492_v42 }
 0x24b   :  { %3738 = vmatprep.mubr.bf16.mxu1 %v493_v0  ;;  %v5003_v0 = vunpack.c.l.bf16 %v3427_v59 }
 0x252   :  { %3739 = vmatmul.mubr.bf16.gmra.mxu1 %v494_v35 }
 0x2fa   :  { %v3728_v56 = vpop.f32.mrf.mxu1 }
 0x2fb   :  { %v4996_v43 = vadd.f32 %v3728_v56, %v4987_v39 }
 0x2fc   :  { %v569_v58 = vpop.f32.mrf.mxu1 }
 0x2fd   :  { %v4990_v63 = vadd.f32 %v4985_v32, %v569_v58 }
 0x2fe   :  { %v3729_v4 = vpop.f32.mrf.mxu1 }
 0x2ff   :  { %632 = vmax.xlane.f32.xlu0 %v4990_v63  ;;  %v5008_v42 = vadd.f32 %v3729_v4, %v4998_v44 }
 0x300   :  { %v572_v61 = vpop.f32.mrf.mxu1 }
 0x301   :  { %v5001_v35 = vadd.f32 %v4992_v2, %v572_v61 }
 0x302   :  { %v3732_v38 = vpop.f32.mrf.mxu1 }
 0x303   :  { %634 = vmax.xlane.f32.xlu1 %v5001_v35  ;;  %636 = vmax.xlane.f32.xlu0 %v4996_v43  ;;  %v5020_v13 = vadd.f32 %v3732_v38, %v5010_v7 }
 0x304   :  { %v585_v6 = vpop.f32.mrf.mxu1 }
 0x305   :  { %v5013_v8 = vadd.f32 %v5003_v0, %v585_v6 }
 0x306   :  { %v3733_v10 = vpop.f32.mrf.mxu1 }
 0x307   :  { %638 = vmax.xlane.f32.xlu1 %v5008_v42  ;;  %640 = vmax.xlane.f32.xlu0 %v5013_v8  ;;  %v5032_v20 = vadd.f32 %v3733_v10, %v5022_v14 }
 0x308   :  { %v588_v12 = vpop.f32.mrf.mxu1 }
 0x309   :  { %v5025_v15 = vadd.f32 %v5015_v9, %v588_v12 }
 0x30a   :  { %v3736_v18 = vpop.f32.mrf.mxu1 }
 0x30b   :  { %642 = vmax.xlane.f32.xlu1 %v5025_v15  ;;  %644 = vmax.xlane.f32.xlu0 %v5020_v13  ;;  %v5044_v25 = vadd.f32 %v3736_v18, %v5034_v21 }
 0x30c   :  { %v601_v19 = vpop.f32.mrf.mxu1 }
 0x30d   :  { %v5037_v22 = vadd.f32 %v5027_v16, %v601_v19 }
 0x30e   :  { %v3737_v23 = vpop.f32.mrf.mxu1 }
 0x30f   :  { %646 = vmax.xlane.f32.xlu1 %v5032_v20  ;;  %648 = vmax.xlane.f32.xlu0 %v5037_v22  ;;  %v5056_v31 = vadd.f32 %v3737_v23, %v5046_v26 }
 0x310   :  { %v604_v24 = vpop.f32.mrf.mxu1 }
 0x311   :  { %v5049_v27 = vadd.f32 %v5039_v47, %v604_v24 }
 0x312   :  { %v3740_v1 = vpop.f32.mrf.mxu1 }
 0x313   :  { %650 = vmax.xlane.f32.xlu1 %v5049_v27  ;;  %652 = vmax.xlane.f32.xlu0 %v5044_v25  ;;  %v5068_v57 = vadd.f32 %v3740_v1, %v5058_v50 }
 0x314   :  { %v617_v29 = vpop.f32.mrf.mxu1 }
 0x315   :  { %v5061_v3 = vadd.f32 %v5051_v28, %v617_v29 }
 0x316   :  { %v3741_v36 = vpop.f32.mrf.mxu1 }
 0x317   :  { %654 = vmax.xlane.f32.xlu1 %v5056_v31  ;;  %656 = vmax.xlane.f32.xlu0 %v5061_v3  ;;  %v5078_v41 = vadd.f32 %v3741_v36, %v5070_v55 }
 0x318   :  { %v620_v37 = vpop.f32.mrf.mxu1 }
 0x319   :  { %v5073_v40 = vadd.f32 %v5063_v33, %v620_v37 }
 0x31b   :  { %658 = vmax.xlane.f32.xlu1 %v5073_v40  ;;  %660 = vmax.xlane.f32.xlu0 %v5068_v57 }
 0x31f   :  { %662 = vmax.xlane.f32.xlu1 %v5078_v41 }
 0x388   :  { %v633_v46 = vpop.xlane.xlu0 %632 }
 0x389   :  { %v664_v30 = vsub.f32 %v4990_v63, %v633_v46 }
 0x38b   :  { %v680_v60 = vmul.f32 1.442695, %v664_v30 }
 0x38c   :  { %v635_v62 = vpop.xlane.xlu1 %634  ;;  %v637_v48 = vpop.xlane.xlu0 %636 }
 0x38d   :  { %4285 = vpow2.f32 %v680_v60  ;;  %v665_v49 = vsub.f32 %v5001_v35, %v635_v62  ;;  %v666_v51 = vsub.f32 %v4996_v43, %v637_v48 }
 0x38f   :  { %v682_v53 = vmul.f32 1.442695, %v665_v49  ;;  %v684_v54 = vmul.f32 1.442695, %v666_v51 }
 0x390   :  { %v639_v34 = vpop.xlane.xlu1 %638  ;;  %v641_v56 = vpop.xlane.xlu0 %640 }
 0x391   :  { %4287 = vpow2.f32 %v682_v53  ;;  %v667_v58 = vsub.f32 %v5008_v42, %v639_v34  ;;  %v668_v4 = vsub.f32 %v5013_v8, %v641_v56 }
 0x392   :  { %4289 = vpow2.f32 %v684_v54 }
 0x393   :  { %v686_v59 = vmul.f32 1.442695, %v667_v58  ;;  %v688_v63 = vmul.f32 1.442695, %v668_v4 }
 0x394   :  { %v643_v61 = vpop.xlane.xlu1 %642  ;;  %v645_v5 = vpop.xlane.xlu0 %644 }
 0x395   :  { %4291 = vpow2.f32 %v686_v59  ;;  %v669_v38 = vsub.f32 %v5025_v15, %v643_v61  ;;  %v670_v35 = vsub.f32 %v5020_v13, %v645_v5 }
 0x396   :  { %4293 = vpow2.f32 %v688_v63 }
 0x397   :  { %v690_v43 = vmul.f32 1.442695, %v669_v38  ;;  %v692_v6 = vmul.f32 1.442695, %v670_v35 }
 0x398   :  { %v647_v10 = vpop.xlane.xlu1 %646  ;;  %v649_v11 = vpop.xlane.xlu0 %648 }
 0x399   :  { %4295 = vpow2.f32 %v690_v43  ;;  %v671_v42 = vsub.f32 %v5032_v20, %v647_v10  ;;  %v672_v8 = vsub.f32 %v5037_v22, %v649_v11 }
 0x39a   :  { %v4286_v12 = vpop.eup %4285  ;;  %4297 = vpow2.f32 %v692_v6 }
 0x39b   :  { %v694_v17 = vmul.f32 1.442695, %v671_v42  ;;  %v696_v18 = vmul.f32 1.442695, %v672_v8  ;;  %712 = vadd.xlane.f32.xlu0 %v4286_v12  ;;  %v4172_v8 = vld [vmem:[#allocation9 + $0x38] sm:$0xff]  }
 0x39c   :  { %v651_v19 = vpop.xlane.xlu1 %650  ;;  %v653_v23 = vpop.xlane.xlu0 %652  ;;  %3774 = vmatprep.subr.bf16.mxu0 %v4172_v8 }
 0x39d   :  { %4299 = vpow2.f32 %v694_v17  ;;  %v673_v13 = vsub.f32 %v5049_v27, %v651_v19  ;;  %v674_v15 = vsub.f32 %v5044_v25, %v653_v23  ;;  %v4174_v17 = vld [vmem:[#allocation9 + $0x28] sm:$0xff]   ;;  %v4176_v19 = vld [vmem:[#allocation9 + $0x18] sm:$0xff]   ;;  %v4177_v23 = vld [vmem:[#allocation9 + $0x10] sm:$0xff]  }
 0x39e   :  { %v4288_v45 = vpop.eup %4287  ;;  %4301 = vpow2.f32 %v696_v18  ;;  %v4175_v18 = vld [vmem:[#allocation9 + $0x20] sm:$0xff]  }
 0x39f   :  { %v4290_v24 = vpop.eup %4289  ;;  %v698_v52 = vmul.f32 1.442695, %v673_v13  ;;  %v700_v1 = vmul.f32 1.442695, %v674_v15  ;;  %714 = vadd.xlane.f32.xlu1 %v4288_v45  ;;  %v760_v20 = vpack.c.bf16 %v4288_v45, %v4286_v12  ;;  %v4173_v12 = vld [vmem:[#allocation9 + $0x30] sm:$0xff]   ;;  %v4178_v13 = vld [vmem:[#allocation9 + $0x8] sm:$0xff]  }
 0x3a0   :  { %716 = vadd.xlane.f32.xlu0 %v4290_v24  ;;  %v655_v22 = vpop.xlane.xlu1 %654  ;;  %v657_v29 = vpop.xlane.xlu0 %656  ;;  %v4179_v15 = vld [vmem:[#allocation9] sm:$0xff]  }
 0x3a1   :  { %4303 = vpow2.f32 %v698_v52  ;;  %v675_v36 = vsub.f32 %v5056_v31, %v655_v22  ;;  %v676_v37 = vsub.f32 %v5061_v3, %v657_v29  ;;  %3758 = vmatprep.mubr.bf16.mxu0 %v760_v20 }
 0x3a2   :  { %v4292_v46 = vpop.eup %4291  ;;  %4305 = vpow2.f32 %v700_v1 }
 0x3a3   :  { %v4294_v27 = vpop.eup %4293  ;;  %v702_v25 = vmul.f32 1.442695, %v675_v36  ;;  %v704_v30 = vmul.f32 1.442695, %v676_v37  ;;  %718 = vadd.xlane.f32.xlu1 %v4292_v46  ;;  %v761_v60 = vpack.c.bf16 %v4292_v46, %v4290_v24 }
 0x3a4   :  { %720 = vadd.xlane.f32.xlu0 %v4294_v27  ;;  %v659_v62 = vpop.xlane.xlu1 %658  ;;  %v661_v48 = vpop.xlane.xlu0 %660 }
 0x3a5   :  { %4307 = vpow2.f32 %v702_v25  ;;  %v677_v49 = vsub.f32 %v5073_v40, %v659_v62  ;;  %v678_v51 = vsub.f32 %v5068_v57, %v661_v48  ;;  %3759 = vmatmul.mubr.bf16.vlgmr.msra.gmra.mxu0 %v761_v60 }
 0x3a6   :  { %v4296_v31 = vpop.eup %4295  ;;  %4309 = vpow2.f32 %v704_v30  ;;  %3775 = vmatpush3.bf16.msra.mxu0 %v4172_v8 }
 0x3a7   :  { %v4298_v3 = vpop.eup %4297  ;;  %v706_v53 = vmul.f32 1.442695, %v677_v49  ;;  %v708_v54 = vmul.f32 1.442695, %v678_v51  ;;  %722 = vadd.xlane.f32.xlu1 %v4296_v31  ;;  %v762_v34 = vpack.c.bf16 %v4296_v31, %v4294_v27  ;;  %3776 = vmatprep.subr.bf16.mxu0 %v4173_v12 }
 0x3a8   :  { %724 = vadd.xlane.f32.xlu0 %v4298_v3  ;;  %v663_v56 = vpop.xlane.xlu1 %662 }
 0x3a9   :  { %4311 = vpow2.f32 %v706_v53  ;;  %v679_v58 = vsub.f32 %v5078_v41, %v663_v56  ;;  %3762 = vmatprep.mubr.bf16.mxu0 %v762_v34 }
 0x3aa   :  { %v4300_v4 = vpop.eup %4299  ;;  %4313 = vpow2.f32 %v708_v54  ;;  %3777 = vmatpush3.bf16.msra.mxu0 %v4173_v12 }
 0x3ab   :  { %v4302_v59 = vpop.eup %4301  ;;  %v710_v40 = vmul.f32 1.442695, %v679_v58  ;;  %726 = vadd.xlane.f32.xlu1 %v4300_v4  ;;  %v763_v57 = vpack.c.bf16 %v4300_v4, %v4298_v3  ;;  %3778 = vmatprep.subr.bf16.mxu0 %v4174_v17 }
 0x3ac   :  { %728 = vadd.xlane.f32.xlu0 %v4302_v59 }
 0x3ad   :  { %4315 = vpow2.f32 %v710_v40  ;;  %3763 = vmatmul.mubr.bf16.gmra.mxu0 %v763_v57 }
 0x3ae   :  { %v4304_v63 = vpop.eup %4303  ;;  %3779 = vmatpush3.bf16.msra.mxu0 %v4174_v17 }
 0x3af   :  { %v4306_v61 = vpop.eup %4305  ;;  %730 = vadd.xlane.f32.xlu1 %v4304_v63  ;;  %v764_v5 = vpack.c.bf16 %v4304_v63, %v4302_v59  ;;  %3780 = vmatprep.subr.bf16.mxu0 %v4175_v18 }
 0x3b0   :  { %732 = vadd.xlane.f32.xlu0 %v4306_v61 }
 0x3b1   :  { %3766 = vmatprep.mubr.bf16.mxu0 %v764_v5 }
 0x3b2   :  { %v4308_v38 = vpop.eup %4307  ;;  %3781 = vmatpush3.bf16.msra.mxu0 %v4175_v18 }
 0x3b3   :  { %v4310_v35 = vpop.eup %4309  ;;  %734 = vadd.xlane.f32.xlu1 %v4308_v38  ;;  %v765_v41 = vpack.c.bf16 %v4308_v38, %v4306_v61  ;;  %3782 = vmatprep.subr.bf16.mxu0 %v4176_v19 }
 0x3b4   :  { %736 = vadd.xlane.f32.xlu0 %v4310_v35 }
 0x3b5   :  { %3767 = vmatmul.mubr.bf16.gmra.mxu0 %v765_v41 }
 0x3b6   :  { %v4312_v43 = vpop.eup %4311  ;;  %3783 = vmatpush3.bf16.msra.mxu0 %v4176_v19 }
 0x3b7   :  { %v4314_v6 = vpop.eup %4313  ;;  %738 = vadd.xlane.f32.xlu1 %v4312_v43  ;;  %v766_v10 = vpack.c.bf16 %v4312_v43, %v4310_v35  ;;  %3784 = vmatprep.subr.bf16.mxu0 %v4177_v23 }
 0x3b8   :  { %740 = vadd.xlane.f32.xlu0 %v4314_v6 }
 0x3b9   :  { %3770 = vmatprep.mubr.bf16.mxu0 %v766_v10 }
 0x3ba   :  { %v4316_v11 = vpop.eup %4315  ;;  %3785 = vmatpush3.bf16.msra.mxu0 %v4177_v23 }
 0x3bb   :  { %742 = vadd.xlane.f32.xlu1 %v4316_v11  ;;  %v767_v42 = vpack.c.bf16 %v4316_v11, %v4314_v6  ;;  %3786 = vmatprep.subr.bf16.mxu0 %v4178_v13 }
 0x3bd   :  { %3771 = vmatmul.mubr.bf16.gmra.mxu0 %v767_v42 }
 0x3be   :  { %3787 = vmatpush3.bf16.msra.mxu0 %v4178_v13 }
 0x3bf   :  { %3788 = vmatprep.subr.bf16.mxu0 %v4179_v15 }
 0x3c2   :  { %3789 = vmatpush3.bf16.msra.mxu0 %v4179_v15 }
 0x424   :  { %v713_v24 = vpop.xlane.xlu0 %712 }
 0x425   :  { %4317 = vrcp.f32 %v713_v24 }
 0x428   :  { %v715_v45 = vpop.xlane.xlu1 %714 }
 0x429   :  { %v717_v1 = vpop.xlane.xlu0 %716 }
 0x42c   :  { %v719_v52 = vpop.xlane.xlu1 %718 }
 0x42d   :  { %v721_v22 = vpop.xlane.xlu0 %720  ;;  %4319 = vrcp.f32 %v719_v52 }
 0x42e   :  { %4321 = vrcp.f32 %v715_v45 }
 0x42f   :  { %4323 = vrcp.f32 %v717_v1 }
 0x430   :  { %v723_v20 = vpop.xlane.xlu1 %722  ;;  %4325 = vrcp.f32 %v721_v22 }
 0x431   :  { %v725_v36 = vpop.xlane.xlu0 %724 }
 0x432   :  { %v4318_v62 = vpop.eup %4317 }
 0x434   :  { %v727_v29 = vpop.xlane.xlu1 %726 }
 0x435   :  { %v729_v46 = vpop.xlane.xlu0 %728  ;;  %4327 = vrcp.f32 %v727_v29 }
 0x436   :  { %4329 = vrcp.f32 %v723_v20 }
 0x437   :  { %4331 = vrcp.f32 %v725_v36 }
 0x438   :  { %v731_v37 = vpop.xlane.xlu1 %730  ;;  %4333 = vrcp.f32 %v729_v46 }
 0x439   :  { %v733_v60 = vpop.xlane.xlu0 %732 }
 0x43a   :  { %v4320_v49 = vpop.eup %4319 }
 0x43b   :  { %v4322_v51 = vpop.eup %4321 }
 0x43c   :  { %v735_v25 = vpop.xlane.xlu1 %734  ;;  %v4324_v53 = vpop.eup %4323 }
 0x43d   :  { %4335 = vrcp.f32 %v735_v25  ;;  %v737_v59 = vpop.xlane.xlu0 %736  ;;  %v4326_v61 = vpop.eup %4325 }
 0x43e   :  { %4337 = vrcp.f32 %v731_v37 }
 0x43f   :  { %4339 = vrcp.f32 %v733_v60 }
 0x440   :  { %v739_v54 = vpop.xlane.xlu1 %738  ;;  %4341 = vrcp.f32 %v737_v59 }
 0x441   :  { %v741_v11 = vpop.xlane.xlu0 %740 }
 0x442   :  { %v4328_v38 = vpop.eup %4327 }
 0x443   :  { %v4330_v41 = vpop.eup %4329 }
 0x444   :  { %v743_v35 = vpop.xlane.xlu1 %742  ;;  %v4332_v10 = vpop.eup %4331 }
 0x445   :  { %4343 = vrcp.f32 %v743_v35  ;;  %v4334_v13 = vpop.eup %4333 }
 0x446   :  { %4345 = vrcp.f32 %v739_v54 }
 0x447   :  { %4347 = vrcp.f32 %v741_v11 }
 0x44a   :  { %v4336_v45 = vpop.eup %4335 }
 0x44b   :  { %v4338_v24 = vpop.eup %4337 }
 0x44c   :  { %v4340_v20 = vpop.eup %4339 }
 0x465   :  { %v3760_v27 = vpop.f32.mrf.mxu0 }
 0x466   :  { %v875_v58 = vmul.f32 %v4324_v53, %v3760_v27 }
 0x467   :  { %v810_v30 = vpop.f32.mrf.mxu0 }
 0x468   :  { %v873_v34 = vmul.f32 %v4318_v62, %v810_v30  ;;  %v4342_v30 = vpop.eup %4341 }
 0x469   :  { %v3761_v48 = vpop.f32.mrf.mxu0  ;;  %v4344_v62 = vpop.eup %4343 }
 0x46a   :  { %v876_v31 = vmul.f32 %v4320_v49, %v3761_v48  ;;  %v4346_v48 = vpop.eup %4345 }
 0x46b   :  { %v813_v3 = vpop.f32.mrf.mxu0 }
 0x46c   :  { %v874_v56 = vmul.f32 %v4322_v51, %v813_v3  ;;  %v890_v57 = vpack.c.bf16 %v876_v31, %v875_v58  ;;  %v4348_v31 = vpop.eup %4347 }
 0x46d   :  { %v3764_v4 = vpop.f32.mrf.mxu0 }
 0x46e   :  { %v889_v40 = vpack.c.bf16 %v874_v56, %v873_v34  ;;  %v879_v12 = vmul.f32 %v4332_v10, %v3764_v4 }
 0x46f   :  { %v826_v63 = vpop.f32.mrf.mxu0 }
 0x470   :  { %3790 = vmatprep.mubr.bf16.mxu0 %v889_v40  ;;  %v877_v42 = vmul.f32 %v4326_v61, %v826_v63 }
 0x471   :  { %v3765_v5 = vpop.f32.mrf.mxu0  ;;  %3791 = vmatmul.mubr.bf16.vlgmr.msra.gmra.mxu0 %v890_v57 }
 0x472   :  { %v880_v43 = vmul.f32 %v4328_v38, %v3765_v5 }
 0x473   :  { %v829_v6 = vpop.f32.mrf.mxu0 }
 0x474   :  { %v878_v8 = vmul.f32 %v4330_v41, %v829_v6  ;;  %v892_v19 = vpack.c.bf16 %v880_v43, %v879_v12  ;;  %v3295_v6 = vld [vmem:[%s5594_s8] ss:$0 sm:$0xff] }
 0x475   :  { %v3768_v17 = vpop.f32.mrf.mxu0 }
 0x476   :  { %v891_v18 = vpack.c.bf16 %v878_v8, %v877_v42  ;;  %v883_v36 = vmul.f32 %v4340_v20, %v3768_v17 }
 0x477   :  { %v842_v23 = vpop.f32.mrf.mxu0 }
 0x478   :  { %3794 = vmatprep.mubr.bf16.mxu0 %v891_v18  ;;  %v881_v22 = vmul.f32 %v4334_v13, %v842_v23 }
 0x479   :  { %v3769_v15 = vpop.f32.mrf.mxu0  ;;  %3795 = vmatmul.mubr.bf16.gmra.mxu0 %v892_v19 }
 0x47a   :  { %v884_v52 = vmul.f32 %v4336_v45, %v3769_v15 }
 0x47b   :  { %v845_v1 = vpop.f32.mrf.mxu0 }
 0x47c   :  { %v882_v29 = vmul.f32 %v4338_v24, %v845_v1  ;;  %v894_v27 = vpack.c.bf16 %v884_v52, %v883_v36 }
 0x47d   :  { %v3772_v37 = vpop.f32.mrf.mxu0 }
 0x47e   :  { %v893_v46 = vpack.c.bf16 %v882_v29, %v881_v22  ;;  %v887_v54 = vmul.f32 %v4348_v31, %v3772_v37 }
 0x47f   :  { %v858_v25 = vpop.f32.mrf.mxu0 }
 0x480   :  { %3798 = vmatprep.mubr.bf16.mxu0 %v893_v46  ;;  %v885_v3 = vmul.f32 %v4342_v30, %v858_v25 }
 0x481   :  { %v3773_v60 = vpop.f32.mrf.mxu0  ;;  %3799 = vmatmul.mubr.bf16.gmra.mxu0 %v894_v27 }
 0x482   :  { %v888_v49 = vmul.f32 %v4344_v62, %v3773_v60 }
 0x483   :  { %v861_v51 = vpop.f32.mrf.mxu0 }
 0x484   :  { %v886_v53 = vmul.f32 %v4346_v48, %v861_v51  ;;  %v896_v56 = vpack.c.bf16 %v888_v49, %v887_v54 }
 0x486   :  { %v895_v34 = vpack.c.bf16 %v886_v53, %v885_v3 }
 0x488   :  { %3802 = vmatprep.mubr.bf16.mxu0 %v895_v34 }
 0x489   :  { %3803 = vmatmul.mubr.bf16.gmra.mxu0 %v896_v56 }
 0x531   :  { %v3792_v58 = vpop.f32.mrf.mxu0 }
 0x532   :  { %v5158_v53 = vadd.f32 %v3792_v58, %v3295_v6 }
 0x533   :  { %v5097_v4 = vpop.f32.mrf.mxu0 }
 0x534   :  { %v1065_v58 = vmul.f32 %v5158_v53, %v5158_v53 }
 0x535   :  { %v3793_v59 = vpop.f32.mrf.mxu0 }
 0x536   :  { %v5162_v34 = vadd.f32 %v3793_v59, %v3295_v6 }
 0x537   :  { %v5099_v40 = vpop.f32.mrf.mxu0 }
 0x538   :  { %v1427_v59 = vpack.c.bf16 %v5162_v34, %v5158_v53 }
 0x539   :  { %v3796_v57 = vpop.f32.mrf.mxu0 }
 0x53a   :  { %v5138_v27 = vadd.f32 %v3796_v57, %v3295_v6 }
 0x53b   :  { %v1016_v63 = vpop.f32.mrf.mxu0 }
 0x53c   :  { %v5148_v48 = vadd.f32 %v3295_v6, %v1016_v63  ;;  %v1069_v49 = vmul.f32 %v5138_v27, %v5138_v27  ;;  %v5169_v63 = vadd.f32 %v3295_v6, %v5097_v4 }
 0x53d   :  { %v3797_v61 = vpop.f32.mrf.mxu0 }
 0x53e   :  { %v5142_v30 = vadd.f32 %v3797_v61, %v3295_v6  ;;  %v1067_v54 = vmul.f32 %v5148_v48, %v5148_v48  ;;  %v5174_v61 = vadd.f32 %v3295_v6, %v5099_v40  ;;  %v1063_v4 = vmul.f32 %v5169_v63, %v5169_v63 }
 0x53f   :  { %v1019_v5 = vpop.f32.mrf.mxu0 }
 0x540   :  { %v5152_v51 = vadd.f32 %v3295_v6, %v1019_v5  ;;  %v1429_v31 = vpack.c.bf16 %v5142_v30, %v5138_v27  ;;  %v1070_v3 = vmul.f32 %v5142_v30, %v5142_v30  ;;  %v1066_v5 = vmul.f32 %v5162_v34, %v5162_v34 }
 0x541   :  { %v3800_v38 = vpop.f32.mrf.mxu0  ;;  %v1064_v40 = vmul.f32 %v5174_v61, %v5174_v61 }
 0x542   :  { %v5118_v45 = vadd.f32 %v3800_v38, %v3295_v6  ;;  %v1428_v56 = vpack.c.bf16 %v5152_v51, %v5148_v48  ;;  %v1068_v57 = vmul.f32 %v5152_v51, %v5152_v51  ;;  %v1426_v38 = vpack.c.bf16 %v5174_v61, %v5169_v63 }
 0x543   :  { %v1032_v35 = vpop.f32.mrf.mxu0 }
 0x544   :  { %v5128_v22 = vadd.f32 %v3295_v6, %v1032_v35  ;;  %v1073_v29 = vmul.f32 %v5118_v45, %v5118_v45 }
 0x545   :  { %v3801_v41 = vpop.f32.mrf.mxu0 }
 0x546   :  { %v5122_v52 = vadd.f32 %v3801_v41, %v3295_v6  ;;  %v1071_v25 = vmul.f32 %v5128_v22, %v5128_v22 }
 0x547   :  { %v1035_v43 = vpop.f32.mrf.mxu0 }
 0x548   :  { %v5132_v36 = vadd.f32 %v3295_v6, %v1035_v43  ;;  %v1431_v37 = vpack.c.bf16 %v5122_v52, %v5118_v45  ;;  %v1074_v46 = vmul.f32 %v5122_v52, %v5122_v52 }
 0x549   :  { %v3804_v10 = vpop.f32.mrf.mxu0 }
 0x54a   :  { %v5104_v11 = vadd.f32 %v3804_v10, %v3295_v6  ;;  %v1430_v60 = vpack.c.bf16 %v5132_v36, %v5128_v22  ;;  %v1072_v62 = vmul.f32 %v5132_v36, %v5132_v36 }
 0x54b   :  { %v1048_v42 = vpop.f32.mrf.mxu0 }
 0x54c   :  { %v1077_v8 = vmul.f32 %v5104_v11, %v5104_v11  ;;  %v5108_v12 = vadd.f32 %v3295_v6, %v1048_v42 }
 0x54d   :  { %v3805_v17 = vpop.f32.mrf.mxu0 }
 0x54e   :  { %v5110_v18 = vadd.f32 %v3805_v17, %v3295_v6  ;;  %1107 = vadd.xlane.f32.xlu0 %v1077_v8  ;;  %v1075_v24 = vmul.f32 %v5108_v12, %v5108_v12 }
 0x54f   :  { %v1051_v19 = vpop.f32.mrf.mxu0 }
 0x550   :  { %v5112_v23 = vadd.f32 %v3295_v6, %v1051_v19  ;;  %v1433_v13 = vpack.c.bf16 %v5110_v18, %v5104_v11  ;;  %v1078_v15 = vmul.f32 %v5110_v18, %v5110_v18 }
 0x552   :  { %3838 = vmatprep.subr.bf16.mxu0 %v1433_v13  ;;  %1109 = vadd.xlane.f32.xlu1 %v1078_v15  ;;  %v1432_v1 = vpack.c.bf16 %v5112_v23, %v5108_v12  ;;  %v1076_v20 = vmul.f32 %v5112_v23, %v5112_v23 }
 0x553   :  { %1103 = vadd.xlane.f32.xlu0 %v1075_v24  ;;  %3839 = vmatpush3.bf16.msra.mxu0 %v1433_v13 }
 0x554   :  { %3840 = vmatprep.subr.bf16.mxu0 %v1432_v1 }
 0x556   :  { %1105 = vadd.xlane.f32.xlu1 %v1076_v20 }
 0x557   :  { %1099 = vadd.xlane.f32.xlu0 %v1073_v29  ;;  %3841 = vmatpush3.bf16.msra.mxu0 %v1432_v1 }
 0x558   :  { %3842 = vmatprep.subr.bf16.mxu0 %v1431_v37 }
 0x55a   :  { %1101 = vadd.xlane.f32.xlu1 %v1074_v46 }
 0x55b   :  { %1095 = vadd.xlane.f32.xlu0 %v1071_v25  ;;  %3843 = vmatpush3.bf16.msra.mxu0 %v1431_v37 }
 0x55c   :  { %3844 = vmatprep.subr.bf16.mxu0 %v1430_v60 }
 0x55e   :  { %1097 = vadd.xlane.f32.xlu1 %v1072_v62 }
 0x55f   :  { %1091 = vadd.xlane.f32.xlu0 %v1069_v49  ;;  %3845 = vmatpush3.bf16.msra.mxu0 %v1430_v60 }
 0x560   :  { %3846 = vmatprep.subr.bf16.mxu0 %v1429_v31 }
 0x562   :  { %1093 = vadd.xlane.f32.xlu1 %v1070_v3 }
 0x563   :  { %1087 = vadd.xlane.f32.xlu0 %v1067_v54  ;;  %3847 = vmatpush3.bf16.msra.mxu0 %v1429_v31  ;;  %v5187_v31 = vstv %s3304_s24 }
 0x564   :  { %3848 = vmatprep.subr.bf16.mxu0 %v1428_v56 }
 0x566   :  { %1089 = vadd.xlane.f32.xlu1 %v1068_v57 }
 0x567   :  { %1083 = vadd.xlane.f32.xlu0 %v1065_v58  ;;  %3849 = vmatpush3.bf16.msra.mxu0 %v1428_v56 }
 0x568   :  { %3850 = vmatprep.subr.bf16.mxu0 %v1427_v59 }
 0x56a   :  { %1085 = vadd.xlane.f32.xlu1 %v1066_v5 }
 0x56b   :  { %1079 = vadd.xlane.f32.xlu0 %v1063_v4  ;;  %3851 = vmatpush3.bf16.msra.mxu0 %v1427_v59 }
 0x56c   :  { %3852 = vmatprep.subr.bf16.mxu0 %v1426_v38 }
 0x56e   :  { %1081 = vadd.xlane.f32.xlu1 %v1064_v40 }
 0x56f   :  { %3853 = vmatpush3.bf16.msra.mxu0 %v1426_v38 }
 0x5d7   :  { %v1108_v35 = vpop.xlane.xlu0 %1107 }
 0x5d8   :  { %v1125_v41 = vmax.f32 %v1108_v35, 1e-24 }
 0x5da   :  { %4349 = vrsqrt.f32 %v1125_v41 }
 0x5db   :  { %v1110_v43 = vpop.xlane.xlu1 %1109 }
 0x5dc   :  { %v1126_v6 = vmax.f32 %v1110_v43, 1e-24  ;;  %v1104_v10 = vpop.xlane.xlu0 %1103 }
 0x5dd   :  { %v1123_v42 = vmax.f32 %v1104_v10, 1e-24 }
 0x5de   :  { %4351 = vrsqrt.f32 %v1126_v6 }
 0x5df   :  { %4353 = vrsqrt.f32 %v1123_v42  ;;  %v1106_v8 = vpop.xlane.xlu1 %1105 }
 0x5e0   :  { %v1124_v17 = vmax.f32 %v1106_v8, 1e-24  ;;  %v1100_v19 = vpop.xlane.xlu0 %1099 }
 0x5e1   :  { %v1121_v13 = vmax.f32 %v1100_v19, 1e-24 }
 0x5e2   :  { %4355 = vrsqrt.f32 %v1124_v17 }
 0x5e3   :  { %4357 = vrsqrt.f32 %v1121_v13  ;;  %v1102_v15 = vpop.xlane.xlu1 %1101 }
 0x5e4   :  { %v1122_v24 = vmax.f32 %v1102_v15, 1e-24  ;;  %v1096_v1 = vpop.xlane.xlu0 %1095 }
 0x5e5   :  { %v1119_v25 = vmax.f32 %v1096_v1, 1e-24 }
 0x5e6   :  { %4359 = vrsqrt.f32 %v1122_v24 }
 0x5e7   :  { %v4350_v20 = vpop.eup %4349  ;;  %v1098_v29 = vpop.xlane.xlu1 %1097 }
 0x5e8   :  { %v1120_v37 = vmax.f32 %v1098_v29, 1e-24  ;;  %v1092_v46 = vpop.xlane.xlu0 %1091  ;;  %v1157_v60 = vmul.f32 %v4350_v20, %v5104_v11 }
 0x5e9   :  { %v1117_v43 = vmax.f32 %v1092_v46, 1e-24 }
 0x5ea   :  { %4361 = vrsqrt.f32 %v1120_v37  ;;  %v5192_v59 = vmul.f32 %v5187_v31, %v1157_v60 }
 0x5eb   :  { %v4352_v62 = vpop.eup %4351  ;;  %v1094_v49 = vpop.xlane.xlu1 %1093  ;;  %4363 = vrsqrt.f32 %v1119_v25 }
 0x5ec   :  { %v4354_v3 = vpop.eup %4353  ;;  %v1088_v54 = vpop.xlane.xlu0 %1087  ;;  %v1158_v56 = vmul.f32 %v4352_v62, %v5110_v18  ;;  %v1118_v40 = vmax.f32 %v1094_v49, 1e-24 }
 0x5ed   :  { %v1155_v58 = vmul.f32 %v4354_v3, %v5108_v12 }
 0x5ee   :  { %v1192_v57 = vpack.c.bf16 %v1158_v56, %v1157_v60  ;;  %v5195_v5 = vmul.f32 %v5187_v31, %v1158_v56  ;;  %4365 = vrsqrt.f32 %v1118_v40  ;;  %v1115_v60 = vmax.f32 %v1088_v54, 1e-24 }
 0x5ef   :  { %v4356_v11 = vpop.eup %4355  ;;  %v1090_v4 = vpop.xlane.xlu1 %1089  ;;  %v5202_v10 = vmul.f32 %v5187_v31, %v1155_v58  ;;  %4367 = vrsqrt.f32 %v1117_v43 }
 0x5f0   :  { %v4358_v38 = vpop.eup %4357  ;;  %v1084_v35 = vpop.xlane.xlu0 %1083  ;;  %3806 = vmatprep.subr.bf16.mxu1 %v1192_v57  ;;  %v1156_v41 = vmul.f32 %v4356_v11, %v5112_v23  ;;  %v1184_v18 = vpack.c.bf16 %v5195_v5, %v5192_v59  ;;  %v1116_v20 = vmax.f32 %v1090_v4, 1e-24 }
 0x5f1   :  { %3807 = vmatpush3.bf16.xpose.msra.mxu1 %v1192_v57  ;;  %v1153_v6 = vmul.f32 %v4358_v38, %v5118_v45 }
 0x5f2   :  { %v1191_v12 = vpack.c.bf16 %v1156_v41, %v1155_v58  ;;  %v5205_v42 = vmul.f32 %v5187_v31, %v1156_v41  ;;  %v1113_v58 = vmax.f32 %v1084_v35, 1e-24 }
 0x5f3   :  { %v4360_v8 = vpop.eup %4359  ;;  %v1086_v17 = vpop.xlane.xlu1 %1085  ;;  %v5211_v45 = vmul.f32 %v5187_v31, %v1153_v6 }
 0x5f4   :  { %v1080_v19 = vpop.xlane.xlu0 %1079  ;;  %3808 = vmatprep.subr.bf16.mxu1 %v1191_v12  ;;  %v1154_v23 = vmul.f32 %v4360_v8, %v5122_v52  ;;  %v1183_v13 = vpack.c.bf16 %v5205_v42, %v5202_v10  ;;  %v1114_v3 = vmax.f32 %v1086_v17, 1e-24 }
 0x5f5   :  { %v1111_v15 = vmax.f32 %v1080_v19, 1e-24 }
 0x5f6   :  { %v5214_v24 = vmul.f32 %v5187_v31, %v1154_v23  ;;  %v1190_v37 = vpack.c.bf16 %v1154_v23, %v1153_v6 }
 0x5f7   :  { %4369 = vrsqrt.f32 %v1111_v15  ;;  %v1082_v1 = vpop.xlane.xlu1 %1081  ;;  %v4362_v52 = vpop.eup %4361 }
 0x5f8   :  { %v1112_v29 = vmax.f32 %v1082_v1, 1e-24  ;;  %v1182_v46 = vpack.c.bf16 %v5214_v24, %v5211_v45  ;;  %v4364_v25 = vpop.eup %4363  ;;  %v1152_v62 = vmul.f32 %v4362_v52, %v5132_v36 }
 0x5f9   :  { %3809 = vmatpush3.bf16.xpose.msra.mxu1 %v1191_v12  ;;  %v1151_v49 = vmul.f32 %v4364_v25, %v5128_v22 }
 0x5fa   :  { %4371 = vrsqrt.f32 %v1112_v29  ;;  %3810 = vmatprep.subr.bf16.mxu1 %v1190_v37 }
 0x5fb   :  { %4373 = vrsqrt.f32 %v1116_v20  ;;  %v1189_v56 = vpack.c.bf16 %v1152_v62, %v1151_v49  ;;  %v4366_v57 = vpop.eup %4365 }
 0x5fc   :  { %4375 = vrsqrt.f32 %v1115_v60  ;;  %v4368_v11 = vpop.eup %4367  ;;  %v1150_v38 = vmul.f32 %v4366_v57, %v5142_v30  ;;  %v1169_v60 = vmul.f32 %v5187_v31, %v1151_v49 }
 0x5fd   :  { %4377 = vrsqrt.f32 %v1114_v3  ;;  %v1149_v54 = vmul.f32 %v4368_v11, %v5138_v27 }
 0x5fe   :  { %4379 = vrsqrt.f32 %v1113_v58 }
 0x5ff   :  { %v1188_v41 = vpack.c.bf16 %v1150_v38, %v1149_v54  ;;  %v1167_v25 = vmul.f32 %v5187_v31, %v1149_v54 }
 0x601   :  { %3811 = vmatpush3.bf16.xpose.msra.mxu1 %v1190_v37 }
 0x602   :  { %3812 = vmatprep.subr.bf16.mxu1 %v1189_v56 }
 0x604   :  { %v4370_v4 = vpop.eup %4369 }
 0x605   :  { %v1143_v40 = vmul.f32 %v4370_v4, %v5169_v63 }
 0x607   :  { %v4372_v36 = vpop.eup %4371  ;;  %v1161_v35 = vmul.f32 %v5187_v31, %v1143_v40 }
 0x608   :  { %v1144_v22 = vmul.f32 %v4372_v36, %v5174_v61  ;;  %v4374_v43 = vpop.eup %4373 }
 0x609   :  { %3813 = vmatpush3.bf16.xpose.msra.mxu1 %v1189_v56  ;;  %v4376_v6 = vpop.eup %4375  ;;  %v1148_v30 = vmul.f32 %v4374_v43, %v5152_v51 }
 0x60a   :  { %3814 = vmatprep.subr.bf16.mxu1 %v1188_v41  ;;  %v1162_v12 = vmul.f32 %v5187_v31, %v1144_v22  ;;  %v1147_v27 = vmul.f32 %v4376_v6, %v5148_v48  ;;  %v4378_v63 = vpop.eup %4377  ;;  %v1185_v1 = vpack.c.bf16 %v1144_v22, %v1143_v40 }
 0x60b   :  { %v4380_v19 = vpop.eup %4379  ;;  %v1146_v61 = vmul.f32 %v4378_v63, %v5162_v34  ;;  %v1166_v48 = vmul.f32 %v5187_v31, %v1148_v30  ;;  %v1170_v34 = vmul.f32 %v5187_v31, %v1152_v62 }
 0x60c   :  { %v1177_v8 = vpack.c.bf16 %v1162_v12, %v1161_v35  ;;  %v1187_v17 = vpack.c.bf16 %v1148_v30, %v1147_v27  ;;  %v1145_v23 = vmul.f32 %v4380_v19, %v5158_v53  ;;  %v1165_v29 = vmul.f32 %v5187_v31, %v1147_v27 }
 0x60d   :  { %v1164_v51 = vmul.f32 %v5187_v31, %v1146_v61  ;;  %v1168_v53 = vmul.f32 %v5187_v31, %v1150_v38  ;;  %v1181_v56 = vpack.c.bf16 %v1170_v34, %v1169_v60 }
 0x60e   :  { %3822 = vmatprep.mubr.bf16.mxu1 %v1177_v8  ;;  %v1186_v15 = vpack.c.bf16 %v1146_v61, %v1145_v23  ;;  %v1163_v20 = vmul.f32 %v5187_v31, %v1145_v23  ;;  %v1179_v52 = vpack.c.bf16 %v1166_v48, %v1165_v29 }
 0x60f   :  { %v1180_v3 = vpack.c.bf16 %v1168_v53, %v1167_v25 }
 0x610   :  { %v1178_v37 = vpack.c.bf16 %v1164_v51, %v1163_v20 }
 0x611   :  { %3815 = vmatpush3.bf16.xpose.msra.mxu1 %v1188_v41 }
 0x612   :  { %3816 = vmatprep.subr.bf16.mxu1 %v1187_v17 }
 0x619   :  { %3817 = vmatpush3.bf16.xpose.msra.mxu1 %v1187_v17 }
 0x61a   :  { %3818 = vmatprep.subr.bf16.mxu1 %v1186_v15 }
 0x621   :  { %3819 = vmatpush3.bf16.xpose.msra.mxu1 %v1186_v15 }
 0x622   :  { %3820 = vmatprep.subr.bf16.mxu1 %v1185_v1 }
 0x629   :  { %3821 = vmatpush3.bf16.xpose.msra.mxu1 %v1185_v1 }
 0x630   :  { %3823 = vmatmul.mubr.bf16.vlgmr.msra.gmra.mxu1 %v1178_v37 }
 0x631   :  { %3826 = vmatprep.mubr.bf16.mxu1 %v1179_v52 }
 0x638   :  { %3827 = vmatmul.mubr.bf16.gmra.mxu1 %v1180_v3 }
 0x639   :  { %3830 = vmatprep.mubr.bf16.mxu1 %v1181_v56 }
 0x640   :  { %3831 = vmatmul.mubr.bf16.gmra.mxu1 %v1182_v46 }
 0x641   :  { %3834 = vmatprep.mubr.bf16.mxu1 %v1183_v13 }
 0x648   :  { %3835 = vmatmul.mubr.bf16.gmra.mxu1 %v1184_v18 }
 0x6f0   :  { %v3824_v62 = vpop.f32.mrf.mxu1 }
 0x6f1   :  { %v1236_v11 = vadd.f32 %v3824_v62, %v4987_v39 }
 0x6f2   :  { %v1227_v57 = vpop.f32.mrf.mxu1 }
 0x6f3   :  { %v1228_v31 = vadd.f32 %v4985_v32, %v1227_v57 }
 0x6f4   :  { %v3825_v49 = vpop.f32.mrf.mxu1 }
 0x6f5   :  { %1290 = vmax.xlane.f32.xlu0 %v1228_v31  ;;  %v1239_v42 = vadd.f32 %v3825_v49, %v4998_v44 }
 0x6f6   :  { %v1230_v58 = vpop.f32.mrf.mxu1 }
 0x6f7   :  { %v1231_v45 = vadd.f32 %v4992_v2, %v1230_v58 }
 0x6f8   :  { %v3828_v24 = vpop.f32.mrf.mxu1 }
 0x6f9   :  { %1292 = vmax.xlane.f32.xlu1 %v1231_v45  ;;  %1294 = vmax.xlane.f32.xlu0 %v1236_v11  ;;  %v1252_v13 = vadd.f32 %v3828_v24, %v5010_v7 }
 0x6fa   :  { %v1243_v10 = vpop.f32.mrf.mxu1 }
 0x6fb   :  { %v1244_v59 = vadd.f32 %v5003_v0, %v1243_v10 }
 0x6fc   :  { %v3829_v5 = vpop.f32.mrf.mxu1 }
 0x6fd   :  { %1296 = vmax.xlane.f32.xlu1 %v1239_v42  ;;  %1298 = vmax.xlane.f32.xlu0 %v1244_v59  ;;  %v1255_v54 = vadd.f32 %v3829_v5, %v5022_v14 }
 0x6fe   :  { %v1246_v18 = vpop.f32.mrf.mxu1 }
 0x6ff   :  { %v1247_v46 = vadd.f32 %v5015_v9, %v1246_v18 }
 0x700   :  { %v3832_v4 = vpop.f32.mrf.mxu1 }
 0x701   :  { %1300 = vmax.xlane.f32.xlu1 %v1247_v46  ;;  %1302 = vmax.xlane.f32.xlu0 %v1252_v13  ;;  %v5257_v22 = vadd.f32 %v3832_v4, %v5034_v21 }
 0x702   :  { %v1259_v38 = vpop.f32.mrf.mxu1 }
 0x703   :  { %v1260_v40 = vadd.f32 %v5027_v16, %v1259_v38 }
 0x704   :  { %v3833_v36 = vpop.f32.mrf.mxu1 }
 0x705   :  { %1304 = vmax.xlane.f32.xlu1 %v1255_v54  ;;  %1306 = vmax.xlane.f32.xlu0 %v1260_v40  ;;  %v5262_v6 = vadd.f32 %v3833_v36, %v5046_v26 }
 0x706   :  { %v1262_v41 = vpop.f32.mrf.mxu1 }
 0x707   :  { %v1263_v43 = vadd.f32 %v5039_v47, %v1262_v41 }
 0x708   :  { %v3836_v35 = vpop.f32.mrf.mxu1 }
 0x709   :  { %1308 = vmax.xlane.f32.xlu1 %v1263_v43  ;;  %1310 = vmax.xlane.f32.xlu0 %v5257_v22  ;;  %v5270_v17 = vadd.f32 %v3836_v35, %v5058_v50 }
 0x70a   :  { %v1275_v12 = vpop.f32.mrf.mxu1 }
 0x70b   :  { %v5265_v8 = vadd.f32 %v5051_v28, %v1275_v12 }
 0x70c   :  { %v3837_v30 = vpop.f32.mrf.mxu1 }
 0x70d   :  { %1312 = vmax.xlane.f32.xlu1 %v5262_v6  ;;  %1314 = vmax.xlane.f32.xlu0 %v5265_v8  ;;  %v5278_v19 = vadd.f32 %v3837_v30, %v5070_v55 }
 0x70e   :  { %v1278_v27 = vpop.f32.mrf.mxu1 }
 0x70f   :  { %v5273_v63 = vadd.f32 %v5063_v33, %v1278_v27 }
 0x711   :  { %1316 = vmax.xlane.f32.xlu1 %v5273_v63  ;;  %1318 = vmax.xlane.f32.xlu0 %v5270_v17 }
 0x715   :  { %1320 = vmax.xlane.f32.xlu1 %v5278_v19 }
 0x77e   :  { %v1291_v61 = vpop.xlane.xlu0 %1290 }
 0x77f   :  { %v1322_v23 = vsub.f32 %v1228_v31, %v1291_v61 }
 0x781   :  { %v1338_v15 = vmul.f32 1.442695, %v1322_v23 }
 0x782   :  { %v1293_v1 = vpop.xlane.xlu1 %1292  ;;  %v1295_v51 = vpop.xlane.xlu0 %1294 }
 0x783   :  { %4381 = vpow2.f32 %v1338_v15  ;;  %v1323_v48 = vsub.f32 %v1231_v45, %v1293_v1  ;;  %v1324_v20 = vsub.f32 %v1236_v11, %v1295_v51 }
 0x785   :  { %v1340_v29 = vmul.f32 1.442695, %v1323_v48  ;;  %v1342_v37 = vmul.f32 1.442695, %v1324_v20 }
 0x786   :  { %v1297_v52 = vpop.xlane.xlu1 %1296  ;;  %v1299_v53 = vpop.xlane.xlu0 %1298 }
 0x787   :  { %4383 = vpow2.f32 %v1340_v29  ;;  %v1325_v34 = vsub.f32 %v1239_v42, %v1297_v52  ;;  %v1326_v25 = vsub.f32 %v1244_v59, %v1299_v53 }
 0x788   :  { %4385 = vpow2.f32 %v1342_v37 }
 0x789   :  { %v1344_v60 = vmul.f32 1.442695, %v1325_v34  ;;  %v1346_v3 = vmul.f32 1.442695, %v1326_v25 }
 0x78a   :  { %v1301_v56 = vpop.xlane.xlu1 %1300  ;;  %v1303_v62 = vpop.xlane.xlu0 %1302 }
 0x78b   :  { %4387 = vpow2.f32 %v1344_v60  ;;  %v1327_v57 = vsub.f32 %v1247_v46, %v1301_v56  ;;  %v1328_v31 = vsub.f32 %v1252_v13, %v1303_v62 }
 0x78c   :  { %4389 = vpow2.f32 %v1346_v3 }
 0x78d   :  { %v1348_v49 = vmul.f32 1.442695, %v1327_v57  ;;  %v1350_v58 = vmul.f32 1.442695, %v1328_v31 }
 0x78e   :  { %v1305_v45 = vpop.xlane.xlu1 %1304  ;;  %v1307_v11 = vpop.xlane.xlu0 %1306 }
 0x78f   :  { %4391 = vpow2.f32 %v1348_v49  ;;  %v1329_v24 = vsub.f32 %v1255_v54, %v1305_v45  ;;  %v1330_v10 = vsub.f32 %v1260_v40, %v1307_v11 }
 0x790   :  { %v4382_v5 = vpop.eup %4381  ;;  %4393 = vpow2.f32 %v1350_v58 }
 0x791   :  { %v1352_v42 = vmul.f32 1.442695, %v1329_v24  ;;  %v1354_v59 = vmul.f32 1.442695, %v1330_v10  ;;  %1370 = vadd.xlane.f32.xlu0 %v4382_v5  ;;  %v4180_v10 = vld [vmem:[#allocation9 + $0x78] sm:$0xff]  }
 0x792   :  { %v1309_v18 = vpop.xlane.xlu1 %1308  ;;  %v1311_v4 = vpop.xlane.xlu0 %1310  ;;  %3870 = vmatprep.subr.bf16.mxu0 %v4180_v10 }
 0x793   :  { %4395 = vpow2.f32 %v1352_v42  ;;  %v1331_v38 = vsub.f32 %v1263_v43, %v1309_v18  ;;  %v1332_v46 = vsub.f32 %v5257_v22, %v1311_v4  ;;  %v4182_v42 = vld [vmem:[#allocation9 + $0x68] sm:$0xff]   ;;  %v4184_v18 = vld [vmem:[#allocation9 + $0x58] sm:$0xff]   ;;  %v4185_v4 = vld [vmem:[#allocation9 + $0x50] sm:$0xff]  }
 0x794   :  { %v4384_v13 = vpop.eup %4383  ;;  %4397 = vpow2.f32 %v1354_v59  ;;  %v4183_v59 = vld [vmem:[#allocation9 + $0x60] sm:$0xff]  }
 0x795   :  { %v4386_v36 = vpop.eup %4385  ;;  %v1356_v41 = vmul.f32 1.442695, %v1331_v38  ;;  %v1358_v35 = vmul.f32 1.442695, %v1332_v46  ;;  %1372 = vadd.xlane.f32.xlu1 %v4384_v13  ;;  %v1418_v12 = vpack.c.bf16 %v4384_v13, %v4382_v5  ;;  %v4181_v5 = vld [vmem:[#allocation9 + $0x70] sm:$0xff]   ;;  %v4186_v38 = vld [vmem:[#allocation9 + $0x48] sm:$0xff]  }
 0x796   :  { %1374 = vadd.xlane.f32.xlu0 %v4386_v36  ;;  %v1313_v54 = vpop.xlane.xlu1 %1312  ;;  %v1315_v40 = vpop.xlane.xlu0 %1314  ;;  %v4187_v46 = vld [vmem:[#allocation9 + $0x40] sm:$0xff]  }
 0x797   :  { %4399 = vpow2.f32 %v1356_v41  ;;  %v1333_v30 = vsub.f32 %v5262_v6, %v1313_v54  ;;  %v1334_v27 = vsub.f32 %v5265_v8, %v1315_v40  ;;  %3854 = vmatprep.mubr.bf16.mxu0 %v1418_v12 }
 0x798   :  { %v4388_v61 = vpop.eup %4387  ;;  %4401 = vpow2.f32 %v1358_v35 }
 0x799   :  { %v4390_v43 = vpop.eup %4389  ;;  %v1360_v22 = vmul.f32 1.442695, %v1333_v30  ;;  %v1362_v23 = vmul.f32 1.442695, %v1334_v27  ;;  %1376 = vadd.xlane.f32.xlu1 %v4388_v61  ;;  %v1419_v15 = vpack.c.bf16 %v4388_v61, %v4386_v36 }
 0x79a   :  { %1378 = vadd.xlane.f32.xlu0 %v4390_v43  ;;  %v1317_v1 = vpop.xlane.xlu1 %1316  ;;  %v1319_v51 = vpop.xlane.xlu0 %1318 }
 0x79b   :  { %4403 = vpow2.f32 %v1360_v22  ;;  %v1335_v48 = vsub.f32 %v5273_v63, %v1317_v1  ;;  %v1336_v20 = vsub.f32 %v5270_v17, %v1319_v51  ;;  %3855 = vmatmul.mubr.bf16.vlgmr.msra.gmra.mxu0 %v1419_v15 }
 0x79c   :  { %v4392_v6 = vpop.eup %4391  ;;  %4405 = vpow2.f32 %v1362_v23  ;;  %3871 = vmatpush3.bf16.msra.mxu0 %v4180_v10 }
 0x79d   :  { %v4394_v8 = vpop.eup %4393  ;;  %v1364_v29 = vmul.f32 1.442695, %v1335_v48  ;;  %v1366_v37 = vmul.f32 1.442695, %v1336_v20  ;;  %1380 = vadd.xlane.f32.xlu1 %v4392_v6  ;;  %v1420_v52 = vpack.c.bf16 %v4392_v6, %v4390_v43  ;;  %3872 = vmatprep.subr.bf16.mxu0 %v4181_v5 }
 0x79e   :  { %1382 = vadd.xlane.f32.xlu0 %v4394_v8  ;;  %v1321_v53 = vpop.xlane.xlu1 %1320 }
 0x79f   :  { %4407 = vpow2.f32 %v1364_v29  ;;  %v1337_v34 = vsub.f32 %v5278_v19, %v1321_v53  ;;  %3858 = vmatprep.mubr.bf16.mxu0 %v1420_v52 }
 0x7a0   :  { %v4396_v25 = vpop.eup %4395  ;;  %4409 = vpow2.f32 %v1366_v37  ;;  %3873 = vmatpush3.bf16.msra.mxu0 %v4181_v5 }
 0x7a1   :  { %v4398_v60 = vpop.eup %4397  ;;  %v1368_v63 = vmul.f32 1.442695, %v1337_v34  ;;  %1384 = vadd.xlane.f32.xlu1 %v4396_v25  ;;  %v1421_v17 = vpack.c.bf16 %v4396_v25, %v4394_v8  ;;  %3874 = vmatprep.subr.bf16.mxu0 %v4182_v42 }
 0x7a2   :  { %1386 = vadd.xlane.f32.xlu0 %v4398_v60 }
 0x7a3   :  { %4411 = vpow2.f32 %v1368_v63  ;;  %3859 = vmatmul.mubr.bf16.gmra.mxu0 %v1421_v17 }
 0x7a4   :  { %v4400_v3 = vpop.eup %4399  ;;  %3875 = vmatpush3.bf16.msra.mxu0 %v4182_v42 }
 0x7a5   :  { %v4402_v56 = vpop.eup %4401  ;;  %1388 = vadd.xlane.f32.xlu1 %v4400_v3  ;;  %v1422_v62 = vpack.c.bf16 %v4400_v3, %v4398_v60  ;;  %3876 = vmatprep.subr.bf16.mxu0 %v4183_v59 }
 0x7a6   :  { %1390 = vadd.xlane.f32.xlu0 %v4402_v56 }
 0x7a7   :  { %3862 = vmatprep.mubr.bf16.mxu0 %v1422_v62 }
 0x7a8   :  { %v4404_v57 = vpop.eup %4403  ;;  %3877 = vmatpush3.bf16.msra.mxu0 %v4183_v59 }
 0x7a9   :  { %v4406_v31 = vpop.eup %4405  ;;  %1392 = vadd.xlane.f32.xlu1 %v4404_v57  ;;  %v1423_v19 = vpack.c.bf16 %v4404_v57, %v4402_v56  ;;  %3878 = vmatprep.subr.bf16.mxu0 %v4184_v18 }
 0x7aa   :  { %1394 = vadd.xlane.f32.xlu0 %v4406_v31 }
 0x7ab   :  { %3863 = vmatmul.mubr.bf16.gmra.mxu0 %v1423_v19 }
 0x7ac   :  { %v4408_v49 = vpop.eup %4407  ;;  %3879 = vmatpush3.bf16.msra.mxu0 %v4184_v18 }
 0x7ad   :  { %v4410_v58 = vpop.eup %4409  ;;  %1396 = vadd.xlane.f32.xlu1 %v4408_v49  ;;  %v1424_v45 = vpack.c.bf16 %v4408_v49, %v4406_v31  ;;  %3880 = vmatprep.subr.bf16.mxu0 %v4185_v4 }
 0x7ae   :  { %1398 = vadd.xlane.f32.xlu0 %v4410_v58 }
 0x7af   :  { %3866 = vmatprep.mubr.bf16.mxu0 %v1424_v45 }
 0x7b0   :  { %v4412_v11 = vpop.eup %4411  ;;  %3881 = vmatpush3.bf16.msra.mxu0 %v4185_v4 }
 0x7b1   :  { %1400 = vadd.xlane.f32.xlu1 %v4412_v11  ;;  %v1425_v24 = vpack.c.bf16 %v4412_v11, %v4410_v58  ;;  %3882 = vmatprep.subr.bf16.mxu0 %v4186_v38 }
 0x7b3   :  { %3867 = vmatmul.mubr.bf16.gmra.mxu0 %v1425_v24 }
 0x7b4   :  { %3883 = vmatpush3.bf16.msra.mxu0 %v4186_v38 }
 0x7b5   :  { %3884 = vmatprep.subr.bf16.mxu0 %v4187_v46 }
 0x7b8   :  { %3885 = vmatpush3.bf16.msra.mxu0 %v4187_v46 }
 0x81a   :  { %v1371_v36 = vpop.xlane.xlu0 %1370 }
 0x81b   :  { %4413 = vrcp.f32 %v1371_v36 }
 0x81e   :  { %v1373_v13 = vpop.xlane.xlu1 %1372 }
 0x81f   :  { %v1375_v35 = vpop.xlane.xlu0 %1374 }
 0x822   :  { %v1377_v41 = vpop.xlane.xlu1 %1376 }
 0x823   :  { %v1379_v54 = vpop.xlane.xlu0 %1378  ;;  %4415 = vrcp.f32 %v1377_v41 }
 0x824   :  { %4417 = vrcp.f32 %v1373_v13 }
 0x825   :  { %4419 = vrcp.f32 %v1375_v35 }
 0x826   :  { %v1381_v12 = vpop.xlane.xlu1 %1380  ;;  %4421 = vrcp.f32 %v1379_v54 }
 0x827   :  { %v1383_v30 = vpop.xlane.xlu0 %1382 }
 0x828   :  { %v4414_v1 = vpop.eup %4413 }
 0x82a   :  { %v1385_v40 = vpop.xlane.xlu1 %1384 }
 0x82b   :  { %v1387_v61 = vpop.xlane.xlu0 %1386  ;;  %4423 = vrcp.f32 %v1385_v40 }
 0x82c   :  { %4425 = vrcp.f32 %v1381_v12 }
 0x82d   :  { %4427 = vrcp.f32 %v1383_v30 }
 0x82e   :  { %v1389_v27 = vpop.xlane.xlu1 %1388  ;;  %4429 = vrcp.f32 %v1387_v61 }
 0x82f   :  { %v1391_v15 = vpop.xlane.xlu0 %1390 }
 0x830   :  { %v4416_v48 = vpop.eup %4415 }
 0x831   :  { %v4418_v20 = vpop.eup %4417 }
 0x832   :  { %v1393_v22 = vpop.xlane.xlu1 %1392  ;;  %v4420_v29 = vpop.eup %4419 }
 0x833   :  { %4431 = vrcp.f32 %v1393_v22  ;;  %v1395_v60 = vpop.xlane.xlu0 %1394  ;;  %v4422_v56 = vpop.eup %4421 }
 0x834   :  { %4433 = vrcp.f32 %v1389_v27 }
 0x835   :  { %4435 = vrcp.f32 %v1391_v15 }
 0x836   :  { %v1397_v37 = vpop.xlane.xlu1 %1396  ;;  %4437 = vrcp.f32 %v1395_v60 }
 0x837   :  { %v1399_v11 = vpop.xlane.xlu0 %1398 }
 0x838   :  { %v4424_v57 = vpop.eup %4423 }
 0x839   :  { %v4426_v19 = vpop.eup %4425 }
 0x83a   :  { %v1401_v31 = vpop.xlane.xlu1 %1400  ;;  %v4428_v45 = vpop.eup %4427 }
 0x83b   :  { %4439 = vrcp.f32 %v1401_v31  ;;  %v4430_v38 = vpop.eup %4429 }
 0x83c   :  { %4441 = vrcp.f32 %v1397_v37 }
 0x83d   :  { %4443 = vrcp.f32 %v1399_v11 }
 0x840   :  { %v4432_v13 = vpop.eup %4431 }
 0x841   :  { %v4434_v36 = vpop.eup %4433 }
 0x842   :  { %v4436_v12 = vpop.eup %4435 }
 0x85b   :  { %v3856_v43 = vpop.f32.mrf.mxu0 }
 0x85c   :  { %v1533_v34 = vmul.f32 %v4420_v29, %v3856_v43 }
 0x85d   :  { %v1468_v23 = vpop.f32.mrf.mxu0 }
 0x85e   :  { %v1531_v52 = vmul.f32 %v4414_v1, %v1468_v23  ;;  %v4438_v23 = vpop.eup %4437 }
 0x85f   :  { %v3857_v51 = vpop.f32.mrf.mxu0  ;;  %v4440_v1 = vpop.eup %4439 }
 0x860   :  { %v1534_v6 = vmul.f32 %v4416_v48, %v3857_v51  ;;  %v4442_v51 = vpop.eup %4441 }
 0x861   :  { %v1471_v8 = vpop.f32.mrf.mxu0 }
 0x862   :  { %v1532_v53 = vmul.f32 %v4418_v20, %v1471_v8  ;;  %v1548_v17 = vpack.c.bf16 %v1534_v6, %v1533_v34  ;;  %v4444_v6 = vpop.eup %4443 }
 0x863   :  { %v3860_v25 = vpop.f32.mrf.mxu0 }
 0x864   :  { %v1547_v63 = vpack.c.bf16 %v1532_v53, %v1531_v52  ;;  %v1537_v5 = vmul.f32 %v4428_v45, %v3860_v25 }
 0x865   :  { %v1484_v3 = vpop.f32.mrf.mxu0 }
 0x866   :  { %3886 = vmatprep.mubr.bf16.mxu0 %v1547_v63  ;;  %v1535_v24 = vmul.f32 %v4422_v56, %v1484_v3 }
 0x867   :  { %v3861_v62 = vpop.f32.mrf.mxu0  ;;  %3887 = vmatmul.mubr.bf16.vlgmr.msra.gmra.mxu0 %v1548_v17 }
 0x868   :  { %v1538_v49 = vmul.f32 %v4424_v57, %v3861_v62 }
 0x869   :  { %v1487_v58 = vpop.f32.mrf.mxu0 }
 0x86a   :  { %v1536_v10 = vmul.f32 %v4426_v19, %v1487_v58  ;;  %v1550_v18 = vpack.c.bf16 %v1538_v49, %v1537_v5  ;;  %v3305_v58 = vld [vmem:[%s5594_s8 + $0x1] ss:$0 sm:$0xff] }
 0x86b   :  { %v3864_v42 = vpop.f32.mrf.mxu0 }
 0x86c   :  { %v1549_v59 = vpack.c.bf16 %v1536_v10, %v1535_v24  ;;  %v1541_v30 = vmul.f32 %v4436_v12, %v3864_v42 }
 0x86d   :  { %v1500_v4 = vpop.f32.mrf.mxu0 }
 0x86e   :  { %3890 = vmatprep.mubr.bf16.mxu0 %v1549_v59  ;;  %v1539_v54 = vmul.f32 %v4430_v38, %v1500_v4 }
 0x86f   :  { %v3865_v46 = vpop.f32.mrf.mxu0  ;;  %3891 = vmatmul.mubr.bf16.gmra.mxu0 %v1550_v18 }
 0x870   :  { %v1542_v41 = vmul.f32 %v4432_v13, %v3865_v46 }
 0x871   :  { %v1503_v35 = vpop.f32.mrf.mxu0 }
 0x872   :  { %v1540_v40 = vmul.f32 %v4434_v36, %v1503_v35  ;;  %v1552_v43 = vpack.c.bf16 %v1542_v41, %v1541_v30 }
 0x873   :  { %v3868_v27 = vpop.f32.mrf.mxu0 }
 0x874   :  { %v1551_v61 = vpack.c.bf16 %v1540_v40, %v1539_v54  ;;  %v1545_v37 = vmul.f32 %v4444_v6, %v3868_v27 }
 0x875   :  { %v1516_v22 = vpop.f32.mrf.mxu0 }
 0x876   :  { %3894 = vmatprep.mubr.bf16.mxu0 %v1551_v61  ;;  %v1543_v8 = vmul.f32 %v4438_v23, %v1516_v22 }
 0x877   :  { %v3869_v15 = vpop.f32.mrf.mxu0  ;;  %3895 = vmatmul.mubr.bf16.gmra.mxu0 %v1552_v43 }
 0x878   :  { %v1546_v48 = vmul.f32 %v4440_v1, %v3869_v15 }
 0x879   :  { %v1519_v20 = vpop.f32.mrf.mxu0 }
 0x87a   :  { %v1544_v29 = vmul.f32 %v4442_v51, %v1519_v20  ;;  %v1554_v53 = vpack.c.bf16 %v1546_v48, %v1545_v37 }
 0x87c   :  { %v1553_v52 = vpack.c.bf16 %v1544_v29, %v1543_v8 }
 0x87e   :  { %3898 = vmatprep.mubr.bf16.mxu0 %v1553_v52 }
 0x87f   :  { %3899 = vmatmul.mubr.bf16.gmra.mxu0 %v1554_v53 }
 0x927   :  { %v3888_v34 = vpop.f32.mrf.mxu0 }
 0x928   :  { %v5348_v29 = vadd.f32 %v3888_v34, %v3305_v58 }
 0x929   :  { %v5287_v25 = vpop.f32.mrf.mxu0 }
 0x92a   :  { %v1724_v34 = vmul.f32 %v5348_v29, %v5348_v29 }
 0x92b   :  { %v3889_v60 = vpop.f32.mrf.mxu0 }
 0x92c   :  { %v5352_v52 = vadd.f32 %v3889_v60, %v3305_v58 }
 0x92d   :  { %v5289_v63 = vpop.f32.mrf.mxu0 }
 0x92e   :  { %v2086_v60 = vpack.c.bf16 %v5352_v52, %v5348_v29 }
 0x92f   :  { %v3892_v17 = vpop.f32.mrf.mxu0 }
 0x930   :  { %v5328_v43 = vadd.f32 %v3892_v17, %v3305_v58 }
 0x931   :  { %v1675_v3 = vpop.f32.mrf.mxu0 }
 0x932   :  { %v5338_v51 = vadd.f32 %v3305_v58, %v1675_v3  ;;  %v1728_v48 = vmul.f32 %v5328_v43, %v5328_v43  ;;  %v5359_v3 = vadd.f32 %v3305_v58, %v5287_v25 }
 0x933   :  { %v3893_v56 = vpop.f32.mrf.mxu0 }
 0x934   :  { %v5332_v23 = vadd.f32 %v3893_v56, %v3305_v58  ;;  %v1726_v37 = vmul.f32 %v5338_v51, %v5338_v51  ;;  %v5364_v56 = vadd.f32 %v3305_v58, %v5289_v63  ;;  %v1722_v25 = vmul.f32 %v5359_v3, %v5359_v3 }
 0x935   :  { %v1678_v62 = vpop.f32.mrf.mxu0 }
 0x936   :  { %v5342_v20 = vadd.f32 %v3305_v58, %v1678_v62  ;;  %v2088_v6 = vpack.c.bf16 %v5332_v23, %v5328_v43  ;;  %v1729_v8 = vmul.f32 %v5332_v23, %v5332_v23  ;;  %v1725_v62 = vmul.f32 %v5352_v52, %v5352_v52 }
 0x937   :  { %v3896_v57 = vpop.f32.mrf.mxu0  ;;  %v1723_v63 = vmul.f32 %v5364_v56, %v5364_v56 }
 0x938   :  { %v5308_v13 = vadd.f32 %v3896_v57, %v3305_v58  ;;  %v2087_v53 = vpack.c.bf16 %v5342_v20, %v5338_v51  ;;  %v1727_v17 = vmul.f32 %v5342_v20, %v5342_v20  ;;  %v2085_v57 = vpack.c.bf16 %v5364_v56, %v5359_v3 }
 0x939   :  { %v1691_v31 = vpop.f32.mrf.mxu0 }
 0x93a   :  { %v5318_v54 = vadd.f32 %v3305_v58, %v1691_v31  ;;  %v1732_v40 = vmul.f32 %v5308_v13, %v5308_v13 }
 0x93b   :  { %v3897_v19 = vpop.f32.mrf.mxu0 }
 0x93c   :  { %v5312_v41 = vadd.f32 %v3897_v19, %v3305_v58  ;;  %v1730_v22 = vmul.f32 %v5318_v54, %v5318_v54 }
 0x93d   :  { %v1694_v49 = vpop.f32.mrf.mxu0 }
 0x93e   :  { %v5322_v30 = vadd.f32 %v3305_v58, %v1694_v49  ;;  %v2090_v27 = vpack.c.bf16 %v5312_v41, %v5308_v13  ;;  %v1733_v61 = vmul.f32 %v5312_v41, %v5312_v41 }
 0x93f   :  { %v3900_v45 = vpop.f32.mrf.mxu0 }
 0x940   :  { %v5294_v11 = vadd.f32 %v3900_v45, %v3305_v58  ;;  %v2089_v15 = vpack.c.bf16 %v5322_v30, %v5318_v54  ;;  %v1731_v1 = vmul.f32 %v5322_v30, %v5322_v30 }
 0x941   :  { %v1707_v24 = vpop.f32.mrf.mxu0 }
 0x942   :  { %v1736_v10 = vmul.f32 %v5294_v11, %v5294_v11  ;;  %v5298_v5 = vadd.f32 %v3305_v58, %v1707_v24 }
 0x943   :  { %v3901_v42 = vpop.f32.mrf.mxu0 }
 0x944   :  { %v5300_v59 = vadd.f32 %v3901_v42, %v3305_v58  ;;  %1766 = vadd.xlane.f32.xlu0 %v1736_v10  ;;  %v1734_v36 = vmul.f32 %v5298_v5, %v5298_v5 }
 0x945   :  { %v1710_v18 = vpop.f32.mrf.mxu0 }
 0x946   :  { %v5302_v4 = vadd.f32 %v3305_v58, %v1710_v18  ;;  %v2092_v38 = vpack.c.bf16 %v5300_v59, %v5294_v11  ;;  %v1737_v46 = vmul.f32 %v5300_v59, %v5300_v59 }
 0x948   :  { %3934 = vmatprep.subr.bf16.mxu0 %v2092_v38  ;;  %1768 = vadd.xlane.f32.xlu1 %v1737_v46  ;;  %v2091_v35 = vpack.c.bf16 %v5302_v4, %v5298_v5  ;;  %v1735_v12 = vmul.f32 %v5302_v4, %v5302_v4 }
 0x949   :  { %1762 = vadd.xlane.f32.xlu0 %v1734_v36  ;;  %3935 = vmatpush3.bf16.msra.mxu0 %v2092_v38 }
 0x94a   :  { %3936 = vmatprep.subr.bf16.mxu0 %v2091_v35 }
 0x94c   :  { %1764 = vadd.xlane.f32.xlu1 %v1735_v12 }
 0x94d   :  { %1758 = vadd.xlane.f32.xlu0 %v1732_v40  ;;  %3937 = vmatpush3.bf16.msra.mxu0 %v2091_v35 }
 0x94e   :  { %3938 = vmatprep.subr.bf16.mxu0 %v2090_v27 }
 0x950   :  { %1760 = vadd.xlane.f32.xlu1 %v1733_v61 }
 0x951   :  { %1754 = vadd.xlane.f32.xlu0 %v1730_v22  ;;  %3939 = vmatpush3.bf16.msra.mxu0 %v2090_v27 }
 0x952   :  { %3940 = vmatprep.subr.bf16.mxu0 %v2089_v15 }
 0x954   :  { %1756 = vadd.xlane.f32.xlu1 %v1731_v1 }
 0x955   :  { %1750 = vadd.xlane.f32.xlu0 %v1728_v48  ;;  %3941 = vmatpush3.bf16.msra.mxu0 %v2089_v15 }
 0x956   :  { %3942 = vmatprep.subr.bf16.mxu0 %v2088_v6 }
 0x958   :  { %1752 = vadd.xlane.f32.xlu1 %v1729_v8 }
 0x959   :  { %1746 = vadd.xlane.f32.xlu0 %v1726_v37  ;;  %3943 = vmatpush3.bf16.msra.mxu0 %v2088_v6  ;;  %v5377_v6 = vstv %s3314_s26 }
 0x95a   :  { %3944 = vmatprep.subr.bf16.mxu0 %v2087_v53 }
 0x95c   :  { %1748 = vadd.xlane.f32.xlu1 %v1727_v17 }
 0x95d   :  { %1742 = vadd.xlane.f32.xlu0 %v1724_v34  ;;  %3945 = vmatpush3.bf16.msra.mxu0 %v2087_v53 }
 0x95e   :  { %3946 = vmatprep.subr.bf16.mxu0 %v2086_v60 }
 0x960   :  { %1744 = vadd.xlane.f32.xlu1 %v1725_v62 }
 0x961   :  { %1738 = vadd.xlane.f32.xlu0 %v1722_v25  ;;  %3947 = vmatpush3.bf16.msra.mxu0 %v2086_v60 }
 0x962   :  { %3948 = vmatprep.subr.bf16.mxu0 %v2085_v57 }
 0x964   :  { %1740 = vadd.xlane.f32.xlu1 %v1723_v63 }
 0x965   :  { %3949 = vmatpush3.bf16.msra.mxu0 %v2085_v57 }
 0x9cd   :  { %v1767_v31 = vpop.xlane.xlu0 %1766 }
 0x9ce   :  { %v1784_v19 = vmax.f32 %v1767_v31, 1e-24 }
 0x9d0   :  { %4445 = vrsqrt.f32 %v1784_v19 }
 0x9d1   :  { %v1769_v49 = vpop.xlane.xlu1 %1768 }
 0x9d2   :  { %v1785_v58 = vmax.f32 %v1769_v49, 1e-24  ;;  %v1763_v45 = vpop.xlane.xlu0 %1762 }
 0x9d3   :  { %v1782_v24 = vmax.f32 %v1763_v45, 1e-24 }
 0x9d4   :  { %4447 = vrsqrt.f32 %v1785_v58 }
 0x9d5   :  { %4449 = vrsqrt.f32 %v1782_v24  ;;  %v1765_v10 = vpop.xlane.xlu1 %1764 }
 0x9d6   :  { %v1783_v42 = vmax.f32 %v1765_v10, 1e-24  ;;  %v1759_v18 = vpop.xlane.xlu0 %1758 }
 0x9d7   :  { %v1780_v38 = vmax.f32 %v1759_v18, 1e-24 }
 0x9d8   :  { %4451 = vrsqrt.f32 %v1783_v42 }
 0x9d9   :  { %4453 = vrsqrt.f32 %v1780_v38  ;;  %v1761_v46 = vpop.xlane.xlu1 %1760 }
 0x9da   :  { %v1781_v36 = vmax.f32 %v1761_v46, 1e-24  ;;  %v1755_v35 = vpop.xlane.xlu0 %1754 }
 0x9db   :  { %v1778_v22 = vmax.f32 %v1755_v35, 1e-24 }
 0x9dc   :  { %4455 = vrsqrt.f32 %v1781_v36 }
 0x9dd   :  { %v4446_v12 = vpop.eup %4445  ;;  %v1757_v40 = vpop.xlane.xlu1 %1756 }
 0x9de   :  { %v1779_v27 = vmax.f32 %v1757_v40, 1e-24  ;;  %v1751_v61 = vpop.xlane.xlu0 %1750  ;;  %v1816_v15 = vmul.f32 %v4446_v12, %v5294_v11 }
 0x9df   :  { %v1776_v49 = vmax.f32 %v1751_v61, 1e-24 }
 0x9e0   :  { %4457 = vrsqrt.f32 %v1779_v27  ;;  %v5382_v60 = vmul.f32 %v5377_v6, %v1816_v15 }
 0x9e1   :  { %v4448_v1 = vpop.eup %4447  ;;  %v1753_v48 = vpop.xlane.xlu1 %1752  ;;  %4459 = vrsqrt.f32 %v1778_v22 }
 0x9e2   :  { %v4450_v8 = vpop.eup %4449  ;;  %v1747_v37 = vpop.xlane.xlu0 %1746  ;;  %v1817_v53 = vmul.f32 %v4448_v1, %v5300_v59  ;;  %v1777_v63 = vmax.f32 %v1753_v48, 1e-24 }
 0x9e3   :  { %v1814_v34 = vmul.f32 %v4450_v8, %v5298_v5 }
 0x9e4   :  { %v1851_v17 = vpack.c.bf16 %v1817_v53, %v1816_v15  ;;  %v5385_v62 = vmul.f32 %v5377_v6, %v1817_v53  ;;  %4461 = vrsqrt.f32 %v1777_v63  ;;  %v1774_v15 = vmax.f32 %v1747_v37, 1e-24 }
 0x9e5   :  { %v4452_v11 = vpop.eup %4451  ;;  %v1749_v25 = vpop.xlane.xlu1 %1748  ;;  %v5392_v45 = vmul.f32 %v5377_v6, %v1814_v34  ;;  %4463 = vrsqrt.f32 %v1776_v49 }
 0x9e6   :  { %v4454_v57 = vpop.eup %4453  ;;  %v1743_v31 = vpop.xlane.xlu0 %1742  ;;  %3902 = vmatprep.subr.bf16.mxu1 %v1851_v17  ;;  %v1815_v19 = vmul.f32 %v4452_v11, %v5302_v4  ;;  %v1843_v59 = vpack.c.bf16 %v5385_v62, %v5382_v60  ;;  %v1775_v12 = vmax.f32 %v1749_v25, 1e-24 }
 0x9e7   :  { %3903 = vmatpush3.bf16.xpose.msra.mxu1 %v1851_v17  ;;  %v1812_v58 = vmul.f32 %v4454_v57, %v5308_v13 }
 0x9e8   :  { %v1850_v5 = vpack.c.bf16 %v1815_v19, %v1814_v34  ;;  %v5395_v24 = vmul.f32 %v5377_v6, %v1815_v19  ;;  %v1772_v34 = vmax.f32 %v1743_v31, 1e-24 }
 0x9e9   :  { %v4456_v10 = vpop.eup %4455  ;;  %v1745_v42 = vpop.xlane.xlu1 %1744  ;;  %v5401_v13 = vmul.f32 %v5377_v6, %v1812_v58 }
 0x9ea   :  { %v1739_v18 = vpop.xlane.xlu0 %1738  ;;  %3904 = vmatprep.subr.bf16.mxu1 %v1850_v5  ;;  %v1813_v4 = vmul.f32 %v4456_v10, %v5312_v41  ;;  %v1842_v38 = vpack.c.bf16 %v5395_v24, %v5392_v45  ;;  %v1773_v8 = vmax.f32 %v1745_v42, 1e-24 }
 0x9eb   :  { %v1770_v46 = vmax.f32 %v1739_v18, 1e-24 }
 0x9ec   :  { %v5404_v36 = vmul.f32 %v5377_v6, %v1813_v4  ;;  %v1849_v27 = vpack.c.bf16 %v1813_v4, %v1812_v58 }
 0x9ed   :  { %4465 = vrsqrt.f32 %v1770_v46  ;;  %v1741_v35 = vpop.xlane.xlu1 %1740  ;;  %v4458_v41 = vpop.eup %4457 }
 0x9ee   :  { %v1771_v40 = vmax.f32 %v1741_v35, 1e-24  ;;  %v1841_v61 = vpack.c.bf16 %v5404_v36, %v5401_v13  ;;  %v4460_v22 = vpop.eup %4459  ;;  %v1811_v1 = vmul.f32 %v4458_v41, %v5322_v30 }
 0x9ef   :  { %3905 = vmatpush3.bf16.xpose.msra.mxu1 %v1850_v5  ;;  %v1810_v48 = vmul.f32 %v4460_v22, %v5318_v54 }
 0x9f0   :  { %4467 = vrsqrt.f32 %v1771_v40  ;;  %3906 = vmatprep.subr.bf16.mxu1 %v1849_v27 }
 0x9f1   :  { %4469 = vrsqrt.f32 %v1775_v12  ;;  %v1848_v53 = vpack.c.bf16 %v1811_v1, %v1810_v48  ;;  %v4462_v17 = vpop.eup %4461 }
 0x9f2   :  { %4471 = vrsqrt.f32 %v1774_v15  ;;  %v4464_v11 = vpop.eup %4463  ;;  %v1809_v57 = vmul.f32 %v4462_v17, %v5332_v23  ;;  %v1828_v15 = vmul.f32 %v5377_v6, %v1810_v48 }
 0x9f3   :  { %4473 = vrsqrt.f32 %v1773_v8  ;;  %v1808_v37 = vmul.f32 %v4464_v11, %v5328_v43 }
 0x9f4   :  { %4475 = vrsqrt.f32 %v1772_v34 }
 0x9f5   :  { %v1847_v19 = vpack.c.bf16 %v1809_v57, %v1808_v37  ;;  %v1826_v22 = vmul.f32 %v5377_v6, %v1808_v37 }
 0x9f7   :  { %3907 = vmatpush3.bf16.xpose.msra.mxu1 %v1849_v27 }
 0x9f8   :  { %3908 = vmatprep.subr.bf16.mxu1 %v1848_v53 }
 0x9fa   :  { %v4466_v25 = vpop.eup %4465 }
 0x9fb   :  { %v1802_v63 = vmul.f32 %v4466_v25, %v5359_v3 }
 0x9fd   :  { %v4468_v30 = vpop.eup %4467  ;;  %v1820_v31 = vmul.f32 %v5377_v6, %v1802_v63 }
 0x9fe   :  { %v1803_v54 = vmul.f32 %v4468_v30, %v5364_v56  ;;  %v4470_v49 = vpop.eup %4469 }
 0x9ff   :  { %3909 = vmatpush3.bf16.xpose.msra.mxu1 %v1848_v53  ;;  %v4472_v58 = vpop.eup %4471  ;;  %v1807_v23 = vmul.f32 %v4470_v49, %v5342_v20 }
 0xa00   :  { %3910 = vmatprep.subr.bf16.mxu1 %v1847_v19  ;;  %v1821_v5 = vmul.f32 %v5377_v6, %v1803_v54  ;;  %v1806_v43 = vmul.f32 %v4472_v58, %v5338_v51  ;;  %v4474_v3 = vpop.eup %4473  ;;  %v1844_v35 = vpack.c.bf16 %v1803_v54, %v1802_v63 }
 0xa01   :  { %v4476_v18 = vpop.eup %4475  ;;  %v1805_v56 = vmul.f32 %v4474_v3, %v5352_v52  ;;  %v1825_v51 = vmul.f32 %v5377_v6, %v1807_v23  ;;  %v1829_v52 = vmul.f32 %v5377_v6, %v1811_v1 }
 0xa02   :  { %v1836_v10 = vpack.c.bf16 %v1821_v5, %v1820_v31  ;;  %v1846_v42 = vpack.c.bf16 %v1807_v23, %v1806_v43  ;;  %v1804_v4 = vmul.f32 %v4476_v18, %v5348_v29  ;;  %v1824_v40 = vmul.f32 %v5377_v6, %v1806_v43 }
 0xa03   :  { %v1823_v20 = vmul.f32 %v5377_v6, %v1805_v56  ;;  %v1827_v29 = vmul.f32 %v5377_v6, %v1809_v57  ;;  %v1840_v53 = vpack.c.bf16 %v1829_v52, %v1828_v15 }
 0xa04   :  { %3918 = vmatprep.mubr.bf16.mxu1 %v1836_v10  ;;  %v1845_v46 = vpack.c.bf16 %v1805_v56, %v1804_v4  ;;  %v1822_v12 = vmul.f32 %v5377_v6, %v1804_v4  ;;  %v1838_v41 = vpack.c.bf16 %v1825_v51, %v1824_v40 }
 0xa05   :  { %v1839_v8 = vpack.c.bf16 %v1827_v29, %v1826_v22 }
 0xa06   :  { %v1837_v27 = vpack.c.bf16 %v1823_v20, %v1822_v12 }
 0xa07   :  { %3911 = vmatpush3.bf16.xpose.msra.mxu1 %v1847_v19 }
 0xa08   :  { %3912 = vmatprep.subr.bf16.mxu1 %v1846_v42 }
 0xa0f   :  { %3913 = vmatpush3.bf16.xpose.msra.mxu1 %v1846_v42 }
 0xa10   :  { %3914 = vmatprep.subr.bf16.mxu1 %v1845_v46 }
 0xa17   :  { %3915 = vmatpush3.bf16.xpose.msra.mxu1 %v1845_v46 }
 0xa18   :  { %3916 = vmatprep.subr.bf16.mxu1 %v1844_v35 }
 0xa1f   :  { %3917 = vmatpush3.bf16.xpose.msra.mxu1 %v1844_v35 }
 0xa26   :  { %3919 = vmatmul.mubr.bf16.vlgmr.msra.gmra.mxu1 %v1837_v27 }
 0xa27   :  { %3922 = vmatprep.mubr.bf16.mxu1 %v1838_v41 }
 0xa2e   :  { %3923 = vmatmul.mubr.bf16.gmra.mxu1 %v1839_v8 }
 0xa2f   :  { %3926 = vmatprep.mubr.bf16.mxu1 %v1840_v53 }
 0xa36   :  { %3927 = vmatmul.mubr.bf16.gmra.mxu1 %v1841_v61 }
 0xa37   :  { %3930 = vmatprep.mubr.bf16.mxu1 %v1842_v38 }
 0xa3e   :  { %3931 = vmatmul.mubr.bf16.gmra.mxu1 %v1843_v59 }
 0xae6   :  { %v3920_v1 = vpop.f32.mrf.mxu1 }
 0xae7   :  { %v1895_v11 = vadd.f32 %v3920_v1, %v4987_v39 }
 0xae8   :  { %v1886_v17 = vpop.f32.mrf.mxu1 }
 0xae9   :  { %v1887_v6 = vadd.f32 %v4985_v32, %v1886_v17 }
 0xaea   :  { %v3921_v48 = vpop.f32.mrf.mxu1 }
 0xaeb   :  { %1949 = vmax.xlane.f32.xlu0 %v1887_v6  ;;  %v1898_v24 = vadd.f32 %v3921_v48, %v4998_v44 }
 0xaec   :  { %v1889_v34 = vpop.f32.mrf.mxu1 }
 0xaed   :  { %v1890_v13 = vadd.f32 %v4992_v2, %v1889_v34 }
 0xaee   :  { %v3924_v36 = vpop.f32.mrf.mxu1 }
 0xaef   :  { %1951 = vmax.xlane.f32.xlu1 %v1890_v13  ;;  %1953 = vmax.xlane.f32.xlu0 %v1895_v11  ;;  %v1911_v32 = vadd.f32 %v3924_v36, %v5010_v7 }
 0xaf0   :  { %v1902_v45 = vpop.f32.mrf.mxu1 }
 0xaf1   :  { %v1903_v60 = vadd.f32 %v5003_v0, %v1902_v45 }
 0xaf2   :  { %v3925_v62 = vpop.f32.mrf.mxu1 }
 0xaf3   :  { %1955 = vmax.xlane.f32.xlu1 %v1898_v24  ;;  %1957 = vmax.xlane.f32.xlu0 %v1903_v60  ;;  %v1914_v2 = vadd.f32 %v3925_v62, %v5022_v14 }
 0xaf4   :  { %v1905_v59 = vpop.f32.mrf.mxu1 }
 0xaf5   :  { %v1906_v38 = vadd.f32 %v5015_v9, %v1905_v59 }
 0xaf6   :  { %v3928_v61 = vpop.f32.mrf.mxu1 }
 0xaf7   :  { %1959 = vmax.xlane.f32.xlu1 %v1906_v38  ;;  %1961 = vmax.xlane.f32.xlu0 %v1911_v32  ;;  %v5447_v0 = vadd.f32 %v3928_v61, %v5034_v21 }
 0xaf8   :  { %v1918_v39 = vpop.f32.mrf.mxu1 }
 0xaf9   :  { %v1919_v25 = vadd.f32 %v5027_v16, %v1918_v39 }
 0xafa   :  { %v3929_v57 = vpop.f32.mrf.mxu1 }
 0xafb   :  { %1963 = vmax.xlane.f32.xlu1 %v1914_v2  ;;  %1965 = vmax.xlane.f32.xlu0 %v1919_v25  ;;  %v5452_v63 = vadd.f32 %v3929_v57, %v5046_v26 }
 0xafc   :  { %v1921_v44 = vpop.f32.mrf.mxu1 }
 0xafd   :  { %v1922_v37 = vadd.f32 %v5039_v47, %v1921_v44 }
 0xafe   :  { %v3932_v7 = vpop.f32.mrf.mxu1 }
 0xaff   :  { %1967 = vmax.xlane.f32.xlu1 %v1922_v37  ;;  %1969 = vmax.xlane.f32.xlu0 %v5447_v0  ;;  %v5460_v30 = vadd.f32 %v3932_v7, %v5058_v50 }
 0xb00   :  { %v1934_v9 = vpop.f32.mrf.mxu1 }
 0xb01   :  { %v5455_v14 = vadd.f32 %v5051_v28, %v1934_v9 }
 0xb02   :  { %v3933_v16 = vpop.f32.mrf.mxu1 }
 0xb03   :  { %1971 = vmax.xlane.f32.xlu1 %v5452_v63  ;;  %1973 = vmax.xlane.f32.xlu0 %v5455_v14  ;;  %v5468_v26 = vadd.f32 %v3933_v16, %v5070_v55 }
 0xb04   :  { %v1937_v21 = vpop.f32.mrf.mxu1 }
 0xb05   :  { %v5463_v47 = vadd.f32 %v5063_v33, %v1937_v21 }
 0xb07   :  { %1975 = vmax.xlane.f32.xlu1 %v5463_v47  ;;  %1977 = vmax.xlane.f32.xlu0 %v5460_v30 }
 0xb0b   :  { %1979 = vmax.xlane.f32.xlu1 %v5468_v26 }
 0xb74   :  { %v1950_v28 = vpop.xlane.xlu0 %1949 }
 0xb75   :  { %v1981_v19 = vsub.f32 %v1887_v6, %v1950_v28 }
 0xb77   :  { %v1997_v54 = vmul.f32 1.442695, %v1981_v19 }
 0xb78   :  { %v1952_v49 = vpop.xlane.xlu1 %1951  ;;  %v1954_v31 = vpop.xlane.xlu0 %1953 }
 0xb79   :  { %4477 = vpow2.f32 %v1997_v54  ;;  %v1982_v50 = vsub.f32 %v1890_v13, %v1952_v49  ;;  %v1983_v5 = vsub.f32 %v1895_v11, %v1954_v31 }
 0xb7b   :  { %v1999_v58 = vmul.f32 1.442695, %v1982_v50  ;;  %v2001_v33 = vmul.f32 1.442695, %v1983_v5 }
 0xb7c   :  { %v1956_v10 = vpop.xlane.xlu1 %1955  ;;  %v1958_v23 = vpop.xlane.xlu0 %1957 }
 0xb7d   :  { %4479 = vpow2.f32 %v1999_v58  ;;  %v1984_v43 = vsub.f32 %v1898_v24, %v1956_v10  ;;  %v1985_v42 = vsub.f32 %v1903_v60, %v1958_v23  ;;  %v4189_v10 = vld [vmem:[#allocation9 + $0xb0] sm:$0xff]   ;;  %v4190_v23 = vld [vmem:[#allocation9 + $0xa8] sm:$0xff]  }
 0xb7e   :  { %4481 = vpow2.f32 %v2001_v33  ;;  %v4188_v33 = vld [vmem:[#allocation9 + $0xb8] sm:$0xff]  }
 0xb7f   :  { %v2003_v55 = vmul.f32 1.442695, %v1984_v43  ;;  %v2005_v3 = vmul.f32 1.442695, %v1985_v42  ;;  %3966 = vmatprep.subr.bf16.mxu0 %v4188_v33  ;;  %v4191_v43 = vld [vmem:[#allocation9 + $0xa0] sm:$0xff]   ;;  %v4192_v42 = vld [vmem:[#allocation9 + $0x98] sm:$0xff]  }
 0xb80   :  { %v1960_v18 = vpop.xlane.xlu1 %1959  ;;  %v1962_v56 = vpop.xlane.xlu0 %1961 }
 0xb81   :  { %4483 = vpow2.f32 %v2003_v55  ;;  %v1986_v4 = vsub.f32 %v1906_v38, %v1960_v18  ;;  %v1987_v46 = vsub.f32 %v1911_v32, %v1962_v56  ;;  %v4193_v55 = vld [vmem:[#allocation9 + $0x90] sm:$0xff]   ;;  %v4195_v18 = vld [vmem:[#allocation9 + $0x80] sm:$0xff]   ;;  %v2407_v56 = vld [vmem:[%s5589_s3 + $0x8] sm:$0xff] }
 0xb82   :  { %4485 = vpow2.f32 %v2005_v3  ;;  %v4194_v3 = vld [vmem:[#allocation9 + $0x88] sm:$0xff]  }
 0xb83   :  { %v2007_v35 = vmul.f32 1.442695, %v1986_v4  ;;  %v2009_v20 = vmul.f32 1.442695, %v1987_v46  ;;  %v4716_v4 = vmov 0   ;;  %v2406_v46 = vld [vmem:[%s5589_s3] sm:$0xff] }
 0xb84   :  { %v1964_v51 = vpop.xlane.xlu1 %1963  ;;  %v1966_v12 = vpop.xlane.xlu0 %1965  ;;  %4155 = vset.pattern.permute.xlu1 %v4716_v4  ;;  %4154 = vset.pattern.permute.xlu0 %v4716_v4 }
 0xb85   :  { %4487 = vpow2.f32 %v2007_v35  ;;  %v1988_v40 = vsub.f32 %v1914_v2, %v1964_v51  ;;  %v1989_v27 = vsub.f32 %v1919_v25, %v1966_v12  ;;  %v2391_v35 = vld [vmem:[%s5588_s2] sm:$0xff] }
 0xb86   :  { %v4478_v41 = vpop.eup %4477  ;;  %4489 = vpow2.f32 %v2009_v20  ;;  %v2392_v20 = vld [vmem:[%s5588_s2 + $0x8] sm:$0xff] }
 0xb87   :  { %v2011_v29 = vmul.f32 1.442695, %v1988_v40  ;;  %v2013_v52 = vmul.f32 1.442695, %v1989_v27  ;;  %2029 = vadd.xlane.f32.xlu0 %v4478_v41 }
 0xb88   :  { %v1968_v22 = vpop.xlane.xlu1 %1967  ;;  %v1970_v15 = vpop.xlane.xlu0 %1969 }
 0xb89   :  { %4491 = vpow2.f32 %v2011_v29  ;;  %v1990_v8 = vsub.f32 %v1922_v37, %v1968_v22  ;;  %v1991_v53 = vsub.f32 %v5447_v0, %v1970_v15 }
 0xb8a   :  { %v4480_v1 = vpop.eup %4479  ;;  %4493 = vpow2.f32 %v2013_v52 }
 0xb8b   :  { %v4482_v17 = vpop.eup %4481  ;;  %v2015_v6 = vmul.f32 1.442695, %v1990_v8  ;;  %v2017_v48 = vmul.f32 1.442695, %v1991_v53  ;;  %2031 = vadd.xlane.f32.xlu1 %v4480_v1  ;;  %v2077_v34 = vpack.c.bf16 %v4480_v1, %v4478_v41 }
 0xb8c   :  { %2033 = vadd.xlane.f32.xlu0 %v4482_v17  ;;  %v1972_v11 = vpop.xlane.xlu1 %1971  ;;  %v1974_v13 = vpop.xlane.xlu0 %1973 }
 0xb8d   :  { %4495 = vpow2.f32 %v2015_v6  ;;  %v1992_v36 = vsub.f32 %v5452_v63, %v1972_v11  ;;  %v1993_v45 = vsub.f32 %v5455_v14, %v1974_v13  ;;  %3950 = vmatprep.mubr.bf16.mxu0 %v2077_v34 }
 0xb8e   :  { %v4484_v24 = vpop.eup %4483  ;;  %4497 = vpow2.f32 %v2017_v48 }
 0xb8f   :  { %v4486_v60 = vpop.eup %4485  ;;  %v2019_v62 = vmul.f32 1.442695, %v1992_v36  ;;  %v2021_v59 = vmul.f32 1.442695, %v1993_v45  ;;  %2035 = vadd.xlane.f32.xlu1 %v4484_v24  ;;  %v2078_v32 = vpack.c.bf16 %v4484_v24, %v4482_v17 }
 0xb90   :  { %2037 = vadd.xlane.f32.xlu0 %v4486_v60  ;;  %v1976_v38 = vpop.xlane.xlu1 %1975  ;;  %v1978_v61 = vpop.xlane.xlu0 %1977 }
 0xb91   :  { %4499 = vpow2.f32 %v2019_v62  ;;  %v1994_v39 = vsub.f32 %v5463_v47, %v1976_v38  ;;  %v1995_v2 = vsub.f32 %v5460_v30, %v1978_v61  ;;  %3951 = vmatmul.mubr.bf16.vlgmr.msra.gmra.mxu0 %v2078_v32 }
 0xb92   :  { %v4488_v25 = vpop.eup %4487  ;;  %4501 = vpow2.f32 %v2021_v59  ;;  %3967 = vmatpush3.bf16.msra.mxu0 %v4188_v33 }
 0xb93   :  { %v4490_v57 = vpop.eup %4489  ;;  %v2023_v44 = vmul.f32 1.442695, %v1994_v39  ;;  %v2025_v0 = vmul.f32 1.442695, %v1995_v2  ;;  %2039 = vadd.xlane.f32.xlu1 %v4488_v25  ;;  %v2079_v37 = vpack.c.bf16 %v4488_v25, %v4486_v60  ;;  %3968 = vmatprep.subr.bf16.mxu0 %v4189_v10 }
 0xb94   :  { %2041 = vadd.xlane.f32.xlu0 %v4490_v57  ;;  %v1980_v7 = vpop.xlane.xlu1 %1979 }
 0xb95   :  { %4503 = vpow2.f32 %v2023_v44  ;;  %v1996_v9 = vsub.f32 %v5468_v26, %v1980_v7  ;;  %3954 = vmatprep.mubr.bf16.mxu0 %v2079_v37 }
 0xb96   :  { %v4492_v63 = vpop.eup %4491  ;;  %4505 = vpow2.f32 %v2025_v0  ;;  %3969 = vmatpush3.bf16.msra.mxu0 %v4189_v10 }
 0xb97   :  { %v4494_v14 = vpop.eup %4493  ;;  %v2027_v16 = vmul.f32 1.442695, %v1996_v9  ;;  %2043 = vadd.xlane.f32.xlu1 %v4492_v63  ;;  %v2080_v21 = vpack.c.bf16 %v4492_v63, %v4490_v57  ;;  %3970 = vmatprep.subr.bf16.mxu0 %v4190_v23 }
 0xb98   :  { %2045 = vadd.xlane.f32.xlu0 %v4494_v14 }
 0xb99   :  { %4507 = vpow2.f32 %v2027_v16  ;;  %3955 = vmatmul.mubr.bf16.gmra.mxu0 %v2080_v21 }
 0xb9a   :  { %v4496_v30 = vpop.eup %4495  ;;  %3971 = vmatpush3.bf16.msra.mxu0 %v4190_v23 }
 0xb9b   :  { %v4498_v47 = vpop.eup %4497  ;;  %2047 = vadd.xlane.f32.xlu1 %v4496_v30  ;;  %v2081_v28 = vpack.c.bf16 %v4496_v30, %v4494_v14  ;;  %3972 = vmatprep.subr.bf16.mxu0 %v4191_v43 }
 0xb9c   :  { %2049 = vadd.xlane.f32.xlu0 %v4498_v47 }
 0xb9d   :  { %3958 = vmatprep.mubr.bf16.mxu0 %v2081_v28 }
 0xb9e   :  { %v4500_v19 = vpop.eup %4499  ;;  %3973 = vmatpush3.bf16.msra.mxu0 %v4191_v43 }
 0xb9f   :  { %v4502_v54 = vpop.eup %4501  ;;  %2051 = vadd.xlane.f32.xlu1 %v4500_v19  ;;  %v2082_v26 = vpack.c.bf16 %v4500_v19, %v4498_v47  ;;  %3974 = vmatprep.subr.bf16.mxu0 %v4192_v42 }
 0xba0   :  { %2053 = vadd.xlane.f32.xlu0 %v4502_v54 }
 0xba1   :  { %3959 = vmatmul.mubr.bf16.gmra.mxu0 %v2082_v26 }
 0xba2   :  { %v4504_v49 = vpop.eup %4503  ;;  %3975 = vmatpush3.bf16.msra.mxu0 %v4192_v42 }
 0xba3   :  { %v4506_v31 = vpop.eup %4505  ;;  %2055 = vadd.xlane.f32.xlu1 %v4504_v49  ;;  %v2083_v50 = vpack.c.bf16 %v4504_v49, %v4502_v54  ;;  %3976 = vmatprep.subr.bf16.mxu0 %v4193_v55 }
 0xba4   :  { %2057 = vadd.xlane.f32.xlu0 %v4506_v31 }
 0xba5   :  { %3962 = vmatprep.mubr.bf16.mxu0 %v2083_v50 }
 0xba6   :  { %v4508_v5 = vpop.eup %4507  ;;  %3977 = vmatpush3.bf16.msra.mxu0 %v4193_v55 }
 0xba7   :  { %2059 = vadd.xlane.f32.xlu1 %v4508_v5  ;;  %v2084_v58 = vpack.c.bf16 %v4508_v5, %v4506_v31  ;;  %3978 = vmatprep.subr.bf16.mxu0 %v4194_v3 }
 0xba9   :  { %3963 = vmatmul.mubr.bf16.gmra.mxu0 %v2084_v58 }
 0xbaa   :  { %3979 = vmatpush3.bf16.msra.mxu0 %v4194_v3 }
 0xbab   :  { %3980 = vmatprep.subr.bf16.mxu0 %v4195_v18 }
 0xbae   :  { %3981 = vmatpush3.bf16.msra.mxu0 %v4195_v18 }
 0xbb8   :  { %2412 = vperm.xlu1 %4155, %v2407_v56  }
 0xbba   :  { %2409 = vperm.xlu0 %4154, %v2406_v46  }
 0xbbc   :  { %2394 = vperm.xlu1 %4155, %v2391_v35  }
 0xbc0   :  { %2397 = vperm.xlu1 %4155, %v2392_v20  }
 0xc10   :  { %v2030_v12 = vpop.xlane.xlu0 %2029 }
 0xc11   :  { %4509 = vrcp.f32 %v2030_v12 }
 0xc14   :  { %v2032_v51 = vpop.xlane.xlu1 %2031 }
 0xc15   :  { %v2034_v27 = vpop.xlane.xlu0 %2033 }
 0xc18   :  { %v2036_v40 = vpop.xlane.xlu1 %2035 }
 0xc19   :  { %v2038_v29 = vpop.xlane.xlu0 %2037  ;;  %4511 = vrcp.f32 %v2036_v40 }
 0xc1a   :  { %4513 = vrcp.f32 %v2032_v51 }
 0xc1b   :  { %4515 = vrcp.f32 %v2034_v27 }
 0xc1c   :  { %v2040_v41 = vpop.xlane.xlu1 %2039  ;;  %4517 = vrcp.f32 %v2038_v29 }
 0xc1d   :  { %v2042_v22 = vpop.xlane.xlu0 %2041 }
 0xc1e   :  { %v4510_v48 = vpop.eup %4509 }
 0xc20   :  { %v2044_v52 = vpop.xlane.xlu1 %2043 }
 0xc21   :  { %v2046_v8 = vpop.xlane.xlu0 %2045  ;;  %4519 = vrcp.f32 %v2044_v52 }
 0xc22   :  { %4521 = vrcp.f32 %v2040_v41 }
 0xc23   :  { %4523 = vrcp.f32 %v2042_v22 }
 0xc24   :  { %v2048_v15 = vpop.xlane.xlu1 %2047  ;;  %4525 = vrcp.f32 %v2046_v8 }
 0xc25   :  { %v2050_v6 = vpop.xlane.xlu0 %2049 }
 0xc26   :  { %v4512_v11 = vpop.eup %4511 }
 0xc27   :  { %v4514_v13 = vpop.eup %4513 }
 0xc28   :  { %v2052_v1 = vpop.xlane.xlu1 %2051  ;;  %v4516_v24 = vpop.eup %4515 }
 0xc29   :  { %4527 = vrcp.f32 %v2052_v1  ;;  %v2054_v61 = vpop.xlane.xlu0 %2053  ;;  %v4518_v57 = vpop.eup %4517 }
 0xc2a   :  { %4529 = vrcp.f32 %v2048_v15  ;;  %v4717_v15 = vmov 0.0  }
 0xc2b   :  { %4531 = vrcp.f32 %v2050_v6  ;;  %3998 = vmatprep.subr.bf16.mxu1 %v4717_v15  ;;  %4018 = vmatprep.subr.bf16.mxu0 %v4717_v15 }
 0xc2c   :  { %v2056_v60 = vpop.xlane.xlu1 %2055  ;;  %4533 = vrcp.f32 %v2054_v61  ;;  %4014 = vmatprep.mubr.msk.bf16.mxu1 %vm4718_vm0, %v4717_v15 }
 0xc2d   :  { %v2058_v16 = vpop.xlane.xlu0 %2057 }
 0xc2e   :  { %v4520_v0 = vpop.eup %4519 }
 0xc2f   :  { %v4522_v7 = vpop.eup %4521 }
 0xc30   :  { %v2060_v37 = vpop.xlane.xlu1 %2059  ;;  %v4524_v14 = vpop.eup %4523 }
 0xc31   :  { %4535 = vrcp.f32 %v2060_v37  ;;  %v4526_v49 = vpop.eup %4525 }
 0xc32   :  { %4537 = vrcp.f32 %v2056_v60 }
 0xc33   :  { %4539 = vrcp.f32 %v2058_v16 }
 0xc36   :  { %v4528_v50 = vpop.eup %4527 }
 0xc37   :  { %v4530_v5 = vpop.eup %4529 }
 0xc38   :  { %v4532_v10 = vpop.eup %4531 }
 0xc39   :  { %v4534_v4 = vpop.eup %4533 }
 0xc3e   :  { %v4536_v35 = vpop.eup %4535 }
 0xc3f   :  { %v4538_v20 = vpop.eup %4537 }
 0xc40   :  { %v4540_v40 = vpop.eup %4539 }
 0xc51   :  { %v3952_v53 = vpop.f32.mrf.mxu0 }
 0xc52   :  { %v2192_v32 = vmul.f32 %v4516_v24, %v3952_v53 }
 0xc53   :  { %v2127_v17 = vpop.f32.mrf.mxu0 }
 0xc54   :  { %v2190_v62 = vmul.f32 %v4510_v48, %v2127_v17 }
 0xc55   :  { %v3953_v34 = vpop.f32.mrf.mxu0 }
 0xc56   :  { %v2193_v36 = vmul.f32 %v4512_v11, %v3953_v34 }
 0xc57   :  { %v2130_v45 = vpop.f32.mrf.mxu0 }
 0xc58   :  { %v2191_v59 = vmul.f32 %v4514_v13, %v2130_v45  ;;  %v2207_v2 = vpack.c.bf16 %v2193_v36, %v2192_v32 }
 0xc59   :  { %v3956_v38 = vpop.f32.mrf.mxu0 }
 0xc5a   :  { %v2206_v39 = vpack.c.bf16 %v2191_v59, %v2190_v62  ;;  %v2196_v47 = vmul.f32 %v4524_v14, %v3956_v38  ;;  %v3315_v59 = vld [vmem:[%s5594_s8 + $0x2] ss:$0 sm:$0xff] }
 0xc5b   :  { %v2143_v25 = vpop.f32.mrf.mxu0 }
 0xc5c   :  { %3982 = vmatprep.mubr.bf16.mxu0 %v2206_v39  ;;  %v2194_v21 = vmul.f32 %v4518_v57, %v2143_v25 }
 0xc5d   :  { %v3957_v44 = vpop.f32.mrf.mxu0  ;;  %3983 = vmatmul.mubr.bf16.vlgmr.msra.gmra.mxu0 %v2207_v2 }
 0xc5e   :  { %v2197_v9 = vmul.f32 %v4520_v0, %v3957_v44 }
 0xc5f   :  { %v2146_v63 = vpop.f32.mrf.mxu0 }
 0xc60   :  { %v2195_v30 = vmul.f32 %v4522_v7, %v2146_v63  ;;  %v2209_v54 = vpack.c.bf16 %v2197_v9, %v2196_v47 }
 0xc61   :  { %v3960_v28 = vpop.f32.mrf.mxu0 }
 0xc62   :  { %v2208_v19 = vpack.c.bf16 %v2195_v30, %v2194_v21  ;;  %v2200_v42 = vmul.f32 %v4532_v10, %v3960_v28  ;;  %v2413_v21 = vpop.permute.xlu1 %2412 }
 0xc63   :  { %v2159_v26 = vpop.f32.mrf.mxu0 }
 0xc64   :  { %3986 = vmatprep.mubr.bf16.mxu0 %v2208_v19  ;;  %v2198_v23 = vmul.f32 %v4526_v49, %v2159_v26 }
 0xc65   :  { %v3961_v31 = vpop.f32.mrf.mxu0  ;;  %3987 = vmatmul.mubr.bf16.gmra.mxu0 %v2209_v54 }
 0xc66   :  { %v2201_v58 = vmul.f32 %v4528_v50, %v3961_v31  ;;  %v2395_v54 = vpop.permute.xlu1 %2394  ;;  %v2389_v31 = vlaneseq }
 0xc67   :  { %v2162_v33 = vpop.f32.mrf.mxu0 }
 0xc68   :  { %v2199_v43 = vmul.f32 %v4530_v5, %v2162_v33  ;;  %v2211_v18 = vpack.c.bf16 %v2201_v58, %v2200_v42  ;;  %v2390_v33 = vand.u32 127, %v2389_v31  ;;  %v4196_v42 = vld [vmem:[#allocation12 + $0x78] sm:$0xff]   ;;  %v3333_v31 = vld [vmem:[%s5598_s12] ss:$0 sm:$0xff] }
 0xc69   :  { %v3964_v55 = vpop.f32.mrf.mxu0 }
 0xc6a   :  { %v2210_v3 = vpack.c.bf16 %v2199_v43, %v2198_v23  ;;  %v2204_v29 = vmul.f32 %v4540_v40, %v3964_v55  ;;  %v2398_v10 = vpop.permute.xlu1 %2397  ;;  %v2410_v43 = vpop.permute.xlu0 %2409  ;;  %vm2399_vm1 = vcmp.eq.s32.totalorder %v2390_v33, %v2395_v54  ;;  %vm2415_vm3 = vcmp.eq.s32.totalorder %v2390_v33, %v2413_v21  ;;  %v4205_v40 = vld [vmem:[#allocation12 + $0x60] sm:$0xff]   ;;  %v4227_v21 = vld [vmem:[#allocation13 + $0x8] sm:$0xff]  }
 0xc6b   :  { %v2175_v56 = vpop.f32.mrf.mxu0  ;;  %vm2400_vm2 = vcmp.eq.s32.totalorder %v2390_v33, %v2398_v10  ;;  %vm2414_vm4 = vcmp.eq.s32.totalorder %v2390_v33, %v2410_v43  ;;  %v4232_v54 = vld [vmem:[#allocation13 + $0x60] sm:$0xff]  }
 0xc6c   :  { %3990 = vmatprep.mubr.bf16.mxu0 %v2210_v3  ;;  %v2202_v27 = vmul.f32 %v4534_v4, %v2175_v56  ;;  %v4197_v3 = vld [vmem:[#allocation12 + $0x38] sm:$0xff]   ;;  %vm3328_vm5 = vmpackc.low %vm2400_vm2, %vm2399_vm1  ;;  %v4199_v56 = vld [vmem:[#allocation12 + $0x70] sm:$0xff]   ;;  %v4719_v4 = vmov 1.0|1.0  }
 0xc6d   :  { %v3965_v46 = vpop.f32.mrf.mxu0  ;;  %3991 = vmatmul.mubr.bf16.gmra.mxu0 %v2211_v18  ;;  %v4198_v18 = vld [vmem:[#allocation12 + $0xb8] sm:$0xff]   ;;  %vm3330_vm6 = vmpackc.low %vm2415_vm3, %vm2414_vm4 }
 0xc6e   :  { %v2205_v51 = vmul.f32 %v4536_v35, %v3965_v46  ;;  %v4200_v46 = vld [vmem:[#allocation12 + $0x30] sm:$0xff]  }
 0xc6f   :  { %v2178_v12 = vpop.f32.mrf.mxu0  ;;  %v4201_v35 = vld [vmem:[#allocation12 + $0xb0] sm:$0xff]  }
 0xc70   :  { %v2203_v41 = vmul.f32 %v4538_v20, %v2178_v12  ;;  %v2213_v22 = vpack.c.bf16 %v2205_v51, %v2204_v29  ;;  %v4202_v20 = vld [vmem:[#allocation12 + $0x68] sm:$0xff]   ;;  %v4208_v29 = vld [vmem:[#allocation12 + $0x58] sm:$0xff]  }
 0xc71   :  { %v4203_v51 = vld [vmem:[#allocation12 + $0x28] sm:$0xff]  }
 0xc72   :  { %v2212_v52 = vpack.c.bf16 %v2203_v41, %v2202_v27  ;;  %v4204_v12 = vld [vmem:[#allocation12 + $0xa8] sm:$0xff]   ;;  %v4206_v27 = vld [vmem:[#allocation12 + $0x20] sm:$0xff]  }
 0xc73   :  { %v4207_v41 = vld [vmem:[#allocation12 + $0xa0] sm:$0xff]  }
 0xc74   :  { %3994 = vmatprep.mubr.bf16.mxu0 %v2212_v52  ;;  %v4209_v52 = vld [vmem:[#allocation12 + $0x18] sm:$0xff]  }
 0xc75   :  { %3995 = vmatmul.mubr.bf16.gmra.mxu0 %v2213_v22  ;;  %v4210_v22 = vld [vmem:[#allocation12 + $0x98] sm:$0xff]  }
 0xc76   :  { %4034 = vmatprep.mubr.msk.bf16.mxu0 %vm4718_vm0, %v4717_v15 }
 0xd1d   :  { %v3984_v8 = vpop.f32.mrf.mxu0 }
 0xd1e   :  { %v2327_v50 = vadd.f32 %v3984_v8, %v3315_v59  ;;  %v4211_v8 = vld [vmem:[#allocation12 + $0x50] sm:$0xff]  }
 0xd1f   :  { %v5495_v53 = vpop.f32.mrf.mxu0 }
 0xd20   :  { %v2319_v23 = vadd.f32 %v3315_v59, %v5495_v53  ;;  %v4212_v53 = vld [vmem:[#allocation12 + $0x10] sm:$0xff]  }
 0xd21   :  { %v3985_v1 = vpop.f32.mrf.mxu0 }
 0xd22   :  { %v2330_v26 = vadd.f32 %v3985_v1, %v3315_v59  ;;  %v4213_v1 = vld [vmem:[#allocation12 + $0x90] sm:$0xff]  }
 0xd23   :  { %v2321_v17 = vpop.f32.mrf.mxu0 }
 0xd24   :  { %v2382_v5 = vpack.c.bf16 %v2330_v26, %v2327_v50  ;;  %v2322_v58 = vadd.f32 %v3315_v59, %v2321_v17  ;;  %v4214_v17 = vld [vmem:[#allocation12 + $0x48] sm:$0xff]   ;;  %v4233_v26 = vld [vmem:[#allocation13 + $0x58] sm:$0xff]  }
 0xd25   :  { %v3988_v6 = vpop.f32.mrf.mxu0 }
 0xd26   :  { %v2343_v30 = vadd.f32 %v3988_v6, %v3315_v59  ;;  %v2381_v55 = vpack.c.bf16 %v2322_v58, %v2319_v23  ;;  %v4215_v6 = vld [vmem:[#allocation12 + $0x8] sm:$0xff]  }
 0xd27   :  { %v2334_v48 = vpop.f32.mrf.mxu0 }
 0xd28   :  { %v2335_v19 = vadd.f32 %v3315_v59, %v2334_v48  ;;  %v4216_v48 = vld [vmem:[#allocation12 + $0x88] sm:$0xff]  }
 0xd29   :  { %v3989_v34 = vpop.f32.mrf.mxu0 }
 0xd2a   :  { %v2346_v14 = vadd.f32 %v3989_v34, %v3315_v59  ;;  %v4217_v34 = vld [vmem:[#allocation12 + $0x40] sm:$0xff]  }
 0xd2b   :  { %v2337_v11 = vpop.f32.mrf.mxu0 }
 0xd2c   :  { %v2384_v47 = vpack.c.bf16 %v2346_v14, %v2343_v30  ;;  %v2338_v28 = vadd.f32 %v3315_v59, %v2337_v11  ;;  %v4218_v11 = vld [vmem:[#allocation12] sm:$0xff]  }
 0xd2d   :  { %v3992_v13 = vpop.f32.mrf.mxu0  ;;  %v4228_v30 = vld [vmem:[#allocation13] sm:$0xff]  }
 0xd2e   :  { %v2359_v37 = vadd.f32 %v3992_v13, %v3315_v59  ;;  %v2383_v49 = vpack.c.bf16 %v2338_v28, %v2335_v19  ;;  %v4219_v13 = vld [vmem:[#allocation12 + $0x80] sm:$0xff]   ;;  %v4230_v28 = vld [vmem:[#allocation13 + $0x70] sm:$0xff]   ;;  %v4231_v19 = vld [vmem:[#allocation13 + $0x68] sm:$0xff]  }
 0xd2f   :  { %v2350_v36 = vpop.f32.mrf.mxu0 }
 0xd30   :  { %v2351_v63 = vadd.f32 %v3315_v59, %v2350_v36  ;;  %v4220_v36 = vld [vmem:[%s5590_s4] sm:$0xff]  }
 0xd31   :  { %v3993_v45 = vpop.f32.mrf.mxu0 }
 0xd32   :  { %v2362_v44 = vadd.f32 %v3993_v45, %v3315_v59 }
 0xd33   :  { %v2353_v24 = vpop.f32.mrf.mxu0 }
 0xd34   :  { %v2386_v7 = vpack.c.bf16 %v2362_v44, %v2359_v37  ;;  %v2354_v9 = vadd.f32 %v3315_v59, %v2353_v24  ;;  %v4223_v44 = vld [vmem:[#allocation13 + $0x28] sm:$0xff]  }
 0xd35   :  { %v3996_v60 = vpop.f32.mrf.mxu0 }
 0xd36   :  { %v2375_v38 = vadd.f32 %v3996_v60, %v3315_v59  ;;  %v2385_v16 = vpack.c.bf16 %v2354_v9, %v2351_v63  ;;  %v4225_v9 = vld [vmem:[#allocation13 + $0x18] sm:$0xff]  }
 0xd37   :  { %v2366_v62 = vpop.f32.mrf.mxu0 }
 0xd38   :  { %v2367_v57 = vadd.f32 %v3315_v59, %v2366_v62 }
 0xd39   :  { %v3997_v32 = vpop.f32.mrf.mxu0 }
 0xd3a   :  { %v2378_v61 = vadd.f32 %v3997_v32, %v3315_v59 }
 0xd3b   :  { %v2369_v39 = vpop.f32.mrf.mxu0 }
 0xd3c   :  { %v2388_v2 = vpack.c.bf16 %v2378_v61, %v2375_v38  ;;  %v2370_v25 = vadd.f32 %v3315_v59, %v2369_v39  ;;  %v4221_v39 = vld [vmem:[#allocation13 + $0x38] sm:$0xff]  }
 0xd3e   :  { %3999 = vmatpush3.bf16.msra.mxu1 %v2388_v2  ;;  %4019 = vmatpush3.bf16.msra.mxu0 %v2388_v2  ;;  %v2387_v0 = vpack.c.bf16 %v2370_v25, %v2367_v57  ;;  %v4222_v57 = vld [vmem:[#allocation13 + $0x30] sm:$0xff]  }
 0xd3f   :  { %4000 = vmatprep.subr.bf16.mxu1 %v4717_v15  ;;  %4020 = vmatprep.subr.bf16.mxu0 %v4717_v15 }
 0xd42   :  { %4001 = vmatpush3.bf16.msra.mxu1 %v2387_v0  ;;  %4021 = vmatpush3.bf16.msra.mxu0 %v2387_v0  ;;  %v4224_v0 = vld [vmem:[#allocation13 + $0x20] sm:$0xff]  }
 0xd43   :  { %4002 = vmatprep.subr.bf16.mxu1 %v4717_v15  ;;  %4022 = vmatprep.subr.bf16.mxu0 %v4717_v15 }
 0xd46   :  { %4003 = vmatpush3.bf16.msra.mxu1 %v2386_v7  ;;  %4023 = vmatpush3.bf16.msra.mxu0 %v2386_v7 }
 0xd47   :  { %4004 = vmatprep.subr.bf16.mxu1 %v4717_v15  ;;  %4024 = vmatprep.subr.bf16.mxu0 %v4717_v15 }
 0xd4a   :  { %4005 = vmatpush3.bf16.msra.mxu1 %v2385_v16  ;;  %4025 = vmatpush3.bf16.msra.mxu0 %v2385_v16  ;;  %v4226_v16 = vld [vmem:[#allocation13 + $0x10] sm:$0xff]  }
 0xd4b   :  { %4006 = vmatprep.subr.bf16.mxu1 %v4717_v15  ;;  %4026 = vmatprep.subr.bf16.mxu0 %v4717_v15 }
 0xd4e   :  { %4007 = vmatpush3.bf16.msra.mxu1 %v2384_v47  ;;  %4027 = vmatpush3.bf16.msra.mxu0 %v2384_v47  ;;  %v4229_v47 = vld [vmem:[#allocation13 + $0x78] sm:$0xff]  }
 0xd4f   :  { %4008 = vmatprep.subr.bf16.mxu1 %v4717_v15  ;;  %4028 = vmatprep.subr.bf16.mxu0 %v4717_v15 }
 0xd52   :  { %4009 = vmatpush3.bf16.msra.mxu1 %v2383_v49  ;;  %4029 = vmatpush3.bf16.msra.mxu0 %v2383_v49 }
 0xd53   :  { %4010 = vmatprep.subr.bf16.mxu1 %v4717_v15  ;;  %4030 = vmatprep.subr.bf16.mxu0 %v4717_v15 }
 0xd56   :  { %4011 = vmatpush3.bf16.msra.mxu1 %v2382_v5  ;;  %4031 = vmatpush3.bf16.msra.mxu0 %v2382_v5 }
 0xd57   :  { %4012 = vmatprep.subr.bf16.mxu1 %v4717_v15  ;;  %4032 = vmatprep.subr.bf16.mxu0 %v4717_v15 }
 0xd5a   :  { %4013 = vmatpush3.bf16.msra.mxu1 %v2381_v55  ;;  %4033 = vmatpush3.bf16.msra.mxu0 %v2381_v55 }
 0xd5b   :  { %3611 = vmatprep.subr.bf16.mxu1 %v4196_v42  ;;  %4038 = vmatprep.subr.bf16.mxu0 %v4717_v15 }
 0xd5d   :  { %4015 = vmatmul.mubr.msk.bf16.vlgmr.msra.gmra.mxu1 %vm3328_vm5, %v4719_v4  ;;  %4035 = vmatmul.mubr.msk.bf16.vlgmr.msra.gmra.mxu0 %vm3330_vm6, %v4719_v4 }
 0xd5e   :  { %3612 = vmatpush3.bf16.msra.mxu1 %v4197_v3  ;;  %4039 = vmatpush3.bf16.msra.mxu0 %v4198_v18 }
 0xd5f   :  { %3613 = vmatprep.subr.bf16.mxu1 %v4199_v56  ;;  %4040 = vmatprep.subr.bf16.mxu0 %v4717_v15 }
 0xd60   :  { %4054 = vmatprep.mubr.msk.bf16.mxu0 %vm4718_vm0, %v4717_v15 }
 0xd62   :  { %3614 = vmatpush3.bf16.msra.mxu1 %v4200_v46  ;;  %4041 = vmatpush3.bf16.msra.mxu0 %v4201_v35  ;;  %v4234_v35 = vld [vmem:[#allocation13 + $0x50] sm:$0xff]  }
 0xd63   :  { %3615 = vmatprep.subr.bf16.mxu1 %v4202_v20  ;;  %4042 = vmatprep.subr.bf16.mxu0 %v4717_v15  ;;  %v4235_v20 = vld [vmem:[#allocation13 + $0x48] sm:$0xff]  }
 0xd66   :  { %3616 = vmatpush3.bf16.msra.mxu1 %v4203_v51  ;;  %4043 = vmatpush3.bf16.msra.mxu0 %v4204_v12  ;;  %v4236_v51 = vld [vmem:[#allocation13 + $0x40] sm:$0xff]   ;;  %v4237_v12 = vld [vmem:[#allocation13 + $0xb8] sm:$0xff]  }
 0xd67   :  { %3617 = vmatprep.subr.bf16.mxu1 %v4205_v40  ;;  %4044 = vmatprep.subr.bf16.mxu0 %v4717_v15  ;;  %v4238_v40 = vld [vmem:[#allocation13 + $0xb0] sm:$0xff]  }
 0xd6a   :  { %3618 = vmatpush3.bf16.msra.mxu1 %v4206_v27  ;;  %4045 = vmatpush3.bf16.msra.mxu0 %v4207_v41  ;;  %v4239_v27 = vld [vmem:[#allocation13 + $0xa8] sm:$0xff]   ;;  %v4240_v41 = vld [vmem:[#allocation13 + $0xa0] sm:$0xff]  }
 0xd6b   :  { %3619 = vmatprep.subr.bf16.mxu1 %v4208_v29  ;;  %4046 = vmatprep.subr.bf16.mxu0 %v4717_v15  ;;  %v4241_v29 = vld [vmem:[#allocation13 + $0x98] sm:$0xff]  }
 0xd6e   :  { %3620 = vmatpush3.bf16.msra.mxu1 %v4209_v52  ;;  %4047 = vmatpush3.bf16.msra.mxu0 %v4210_v22  ;;  %v3358_v52 = vld [vmem:[%s5598_s12 + $0x1] ss:$0 sm:$0xff] }
 0xd6f   :  { %3621 = vmatprep.subr.bf16.mxu1 %v4211_v8  ;;  %4048 = vmatprep.subr.bf16.mxu0 %v4717_v15 }
 0xd72   :  { %3622 = vmatpush3.bf16.msra.mxu1 %v4212_v53  ;;  %4049 = vmatpush3.bf16.msra.mxu0 %v4213_v1 }
 0xd73   :  { %4050 = vmatprep.subr.bf16.mxu0 %v4717_v15  ;;  %3623 = vmatprep.subr.bf16.mxu1 %v4214_v17 }
 0xd76   :  { %3624 = vmatpush3.bf16.msra.mxu1 %v4215_v6  ;;  %4051 = vmatpush3.bf16.msra.mxu0 %v4216_v48 }
 0xd77   :  { %4052 = vmatprep.subr.bf16.mxu0 %v4717_v15  ;;  %3625 = vmatprep.subr.bf16.mxu1 %v4217_v34 }
 0xd7a   :  { %3626 = vmatpush3.bf16.msra.mxu1 %v4218_v11  ;;  %4053 = vmatpush3.bf16.msra.mxu0 %v4219_v13 }
 0xd7b   :  { %4058 = vmatprep.subr.bf16.mxu1 %v4717_v15  ;;  %4078 = vmatprep.subr.bf16.mxu0 %v4717_v15 }
 0xd7d   :  { %4055 = vmatmul.mubr.bf16.vlgmr.msra.gmra.mxu0 %v4220_v36 }
 0xd7e   :  { %4094 = vmatprep.mubr.msk.bf16.mxu0 %vm4718_vm0, %v4717_v15  ;;  %4079 = vmatpush3.bf16.msra.mxu0 %v4229_v47  ;;  %v4252_v47 = vld [vmem:[#allocation13 + $0xc0] sm:$0xff]  }
 0xd7f   :  { %4080 = vmatprep.subr.bf16.mxu0 %v4717_v15 }
 0xd82   :  { %4081 = vmatpush3.bf16.msra.mxu0 %v4230_v28  ;;  %v3376_v28 = vld [vmem:[%s5598_s12 + $0x3] ss:$0 sm:$0xff] }
 0xd83   :  { %4082 = vmatprep.subr.bf16.mxu0 %v4717_v15 }
 0xd86   :  { %4083 = vmatpush3.bf16.msra.mxu0 %v4231_v19 }
 0xd87   :  { %4084 = vmatprep.subr.bf16.mxu0 %v4717_v15 }
 0xd8a   :  { %4085 = vmatpush3.bf16.msra.mxu0 %v4232_v54 }
 0xd8b   :  { %4086 = vmatprep.subr.bf16.mxu0 %v4717_v15 }
 0xd8e   :  { %4087 = vmatpush3.bf16.msra.mxu0 %v4233_v26 }
 0xd8f   :  { %4088 = vmatprep.subr.bf16.mxu0 %v4717_v15 }
 0xd92   :  { %4089 = vmatpush3.bf16.msra.mxu0 %v4234_v35 }
 0xd93   :  { %4090 = vmatprep.subr.bf16.mxu0 %v4717_v15 }
 0xd96   :  { %4091 = vmatpush3.bf16.msra.mxu0 %v4235_v20 }
 0xd97   :  { %4092 = vmatprep.subr.bf16.mxu0 %v4717_v15 }
 0xd9a   :  { %4093 = vmatpush3.bf16.msra.mxu0 %v4236_v51 }
 0xd9b   :  { %4118 = vmatprep.subr.bf16.mxu0 %v4717_v15 }
 0xe1d   :  { %v2455_v45 = vpop.f32.mrf.mxu1  ;;  %v2496_v24 = vpop.f32.mrf.mxu0 }
 0xe1f   :  { %v4016_v60 = vpop.f32.mrf.mxu1  ;;  %v4036_v62 = vpop.f32.mrf.mxu0 }
 0xe20   :  { %v4244_v60 = vld [vmem:[#allocation13 + $0x80] sm:$0xff]   ;;  %v4245_v62 = vld [vmem:[#allocation13 + $0xf8] sm:$0xff]  }
 0xe21   :  { %v2458_v59 = vpop.f32.mrf.mxu1  ;;  %v2499_v32 = vpop.f32.mrf.mxu0 }
 0xe22   :  { %v2503_v38 = vpack.c.bf16 %v2458_v59, %v2455_v45  ;;  %v2504_v61 = vpack.c.bf16 %v2499_v32, %v2496_v24  ;;  %v4242_v45 = vld [vmem:[#allocation13 + $0x90] sm:$0xff]   ;;  %v4243_v24 = vld [vmem:[#allocation13 + $0x88] sm:$0xff]  }
 0xe23   :  { %v4017_v2 = vpop.f32.mrf.mxu1  ;;  %v4037_v25 = vpop.f32.mrf.mxu0  ;;  %v4246_v59 = vld [vmem:[#allocation13 + $0xf0] sm:$0xff]   ;;  %v4247_v32 = vld [vmem:[#allocation13 + $0xe8] sm:$0xff]  }
 0xe24   :  { %2742 = vmatprep.mubr.bf16.mxu1 %v2504_v61  ;;  %v4249_v61 = vld [vmem:[#allocation13 + $0xd8] sm:$0xff]  }
 0xe25   :  { %2743 = vmatmul.mubr.bf16.vlgmr.msra.gmra.mxu1 %v2503_v38  ;;  %v4248_v38 = vld [vmem:[#allocation13 + $0xe0] sm:$0xff]  }
 0xe26   :  { %4059 = vmatpush3.bf16.msra.mxu1 %v4221_v39  ;;  %4074 = vmatprep.mubr.msk.bf16.mxu1 %vm4718_vm0, %v4717_v15  ;;  %v3367_v39 = vld [vmem:[%s5598_s12 + $0x2] ss:$0 sm:$0xff] }
 0xe27   :  { %4060 = vmatprep.subr.bf16.mxu1 %v4717_v15 }
 0xe2a   :  { %4061 = vmatpush3.bf16.msra.mxu1 %v4222_v57 }
 0xe2b   :  { %4062 = vmatprep.subr.bf16.mxu1 %v4717_v15 }
 0xe2e   :  { %4063 = vmatpush3.bf16.msra.mxu1 %v4223_v44 }
 0xe2f   :  { %4064 = vmatprep.subr.bf16.mxu1 %v4717_v15 }
 0xe32   :  { %4065 = vmatpush3.bf16.msra.mxu1 %v4224_v0 }
 0xe33   :  { %4066 = vmatprep.subr.bf16.mxu1 %v4717_v15 }
 0xe36   :  { %4067 = vmatpush3.bf16.msra.mxu1 %v4225_v9 }
 0xe37   :  { %4068 = vmatprep.subr.bf16.mxu1 %v4717_v15 }
 0xe3a   :  { %4069 = vmatpush3.bf16.msra.mxu1 %v4226_v16 }
 0xe3b   :  { %4070 = vmatprep.subr.bf16.mxu1 %v4717_v15 }
 0xe3d   :  { %v2785_v37 = vpop.f32.mrf.mxu0 }
 0xe3e   :  { %4071 = vmatpush3.bf16.msra.mxu1 %v4227_v21  ;;  %v4250_v21 = vld [vmem:[#allocation13 + $0xd0] sm:$0xff]  }
 0xe3f   :  { %v4056_v7 = vpop.f32.mrf.mxu0  ;;  %4072 = vmatprep.subr.bf16.mxu1 %v4717_v15 }
 0xe41   :  { %v2788_v63 = vpop.f32.mrf.mxu0 }
 0xe42   :  { %4073 = vmatpush3.bf16.msra.mxu1 %v4228_v30  ;;  %v4251_v30 = vld [vmem:[#allocation13 + $0xc8] sm:$0xff]  }
 0xe43   :  { %v4057_v14 = vpop.f32.mrf.mxu0  ;;  %4098 = vmatprep.subr.bf16.mxu1 %v4717_v15 }
 0xee5   :  { %v3627_v49 = vpop.f32.mrf.mxu1 }
 0xee7   :  { %v3628_v50 = vpop.f32.mrf.mxu1 }
 0xee8   :  { %v3629_v5 = vadd.f32 %v3628_v50, %v3627_v49 }
 0xee9   :  { %v3630_v58 = vpop.f32.mrf.mxu1 }
 0xeea   :  { %v2745_v33 = vadd.f32 %v3629_v5, %v3333_v31 }
 0xeeb   :  { %v3631_v10 = vpop.f32.mrf.mxu1 }
 0xeec   :  { %v2786_v23 = vadd.f32 %v2785_v37, %v2745_v33  ;;  %v3632_v43 = vadd.f32 %v3631_v10, %v3630_v58 }
 0xeee   :  { %v2748_v42 = vadd.f32 %v3632_v43, %v3333_v31  ;;  %v2792_v55 = vmul.f32 0.1, %v2786_v23 }
 0xef0   :  { %v2789_v3 = vadd.f32 %v2788_v63, %v2748_v42  ;;  %v2794_v56 = vmax.f32 %v2786_v23, %v2792_v55 }
 0xef2   :  { %v2793_v18 = vmul.f32 0.1, %v2789_v3 }
 0xef4   :  { %v2795_v4 = vmax.f32 %v2789_v3, %v2793_v18 }
 0xef6   :  { %v2796_v46 = vpack.c.bf16 %v2795_v4, %v2794_v56 }
 0xef8   :  { %4075 = vmatmul.mubr.bf16.vlgmr.msra.gmra.mxu1 %v2796_v46 }
 0xef9   :  { %4114 = vmatprep.mubr.msk.bf16.mxu1 %vm4718_vm0, %v4717_v15  ;;  %4099 = vmatpush3.bf16.msra.mxu1 %v4237_v12 }
 0xefa   :  { %4100 = vmatprep.subr.bf16.mxu1 %v4717_v15 }
 0xefd   :  { %4101 = vmatpush3.bf16.msra.mxu1 %v4238_v40 }
 0xefe   :  { %4102 = vmatprep.subr.bf16.mxu1 %v4717_v15 }
 0xf01   :  { %4103 = vmatpush3.bf16.msra.mxu1 %v4239_v27 }
 0xf02   :  { %4104 = vmatprep.subr.bf16.mxu1 %v4717_v15 }
 0xf05   :  { %4105 = vmatpush3.bf16.msra.mxu1 %v4240_v41 }
 0xf06   :  { %4106 = vmatprep.subr.bf16.mxu1 %v4717_v15 }
 0xf09   :  { %4107 = vmatpush3.bf16.msra.mxu1 %v4241_v29 }
 0xf0a   :  { %4108 = vmatprep.subr.bf16.mxu1 %v4717_v15 }
 0xf0d   :  { %4109 = vmatpush3.bf16.msra.mxu1 %v4242_v45 }
 0xf0e   :  { %4110 = vmatprep.subr.bf16.mxu1 %v4717_v15 }
 0xf11   :  { %4111 = vmatpush3.bf16.msra.mxu1 %v4243_v24 }
 0xf12   :  { %4112 = vmatprep.subr.bf16.mxu1 %v4717_v15 }
 0xf15   :  { %4113 = vmatpush3.bf16.msra.mxu1 %v4244_v60 }
 0xfb8   :  { %v2900_v22 = vpop.f32.mrf.mxu1 }
 0xfb9   :  { %v2901_v8 = vadd.f32 %v3358_v52, %v2900_v22 }
 0xfba   :  { %v4076_v53 = vpop.f32.mrf.mxu1 }
 0xfbb   :  { %v2907_v17 = vmul.f32 0.1, %v2901_v8 }
 0xfbc   :  { %v2903_v1 = vpop.f32.mrf.mxu1 }
 0xfbd   :  { %v2904_v6 = vadd.f32 %v3358_v52, %v2903_v1  ;;  %v2909_v11 = vmax.f32 %v2901_v8, %v2907_v17 }
 0xfbe   :  { %v4077_v48 = vpop.f32.mrf.mxu1 }
 0xfbf   :  { %v2908_v34 = vmul.f32 0.1, %v2904_v6 }
 0xfc1   :  { %v2910_v13 = vmax.f32 %v2904_v6, %v2908_v34 }
 0xfc3   :  { %v2911_v36 = vpack.c.bf16 %v2910_v13, %v2909_v11 }
 0xfc5   :  { %4095 = vmatmul.mubr.bf16.vlgmr.msra.gmra.mxu0 %v2911_v36 }
 0xfc6   :  { %4134 = vmatprep.mubr.msk.bf16.mxu0 %vm4718_vm0, %v4717_v15  ;;  %4119 = vmatpush3.bf16.msra.mxu0 %v4245_v62 }
 0xfc7   :  { %4120 = vmatprep.subr.bf16.mxu0 %v4717_v15 }
 0xfca   :  { %4121 = vmatpush3.bf16.msra.mxu0 %v4246_v59 }
 0xfcb   :  { %4122 = vmatprep.subr.bf16.mxu0 %v4717_v15 }
 0xfce   :  { %4123 = vmatpush3.bf16.msra.mxu0 %v4247_v32 }
 0xfcf   :  { %4124 = vmatprep.subr.bf16.mxu0 %v4717_v15 }
 0xfd2   :  { %4125 = vmatpush3.bf16.msra.mxu0 %v4248_v38 }
 0xfd3   :  { %4126 = vmatprep.subr.bf16.mxu0 %v4717_v15 }
 0xfd6   :  { %4127 = vmatpush3.bf16.msra.mxu0 %v4249_v61 }
 0xfd7   :  { %4128 = vmatprep.subr.bf16.mxu0 %v4717_v15 }
 0xfda   :  { %4129 = vmatpush3.bf16.msra.mxu0 %v4250_v21 }
 0xfdb   :  { %4130 = vmatprep.subr.bf16.mxu0 %v4717_v15 }
 0xfde   :  { %4131 = vmatpush3.bf16.msra.mxu0 %v4251_v30 }
 0xfdf   :  { %4132 = vmatprep.subr.bf16.mxu0 %v4717_v15  ;;  %v3385_v15 = vld [vmem:[%s5598_s12 + $0x4] ss:$0 sm:$0xff] }
 0xfe2   :  { %4133 = vmatpush3.bf16.msra.mxu0 %v4252_v47 }
0x1085   :  { %v3016_v2 = vpop.f32.mrf.mxu0 }
0x1086   :  { %v3017_v25 = vadd.f32 %v3367_v39, %v3016_v2 }
0x1087   :  { %v4096_v57 = vpop.f32.mrf.mxu0 }
0x1088   :  { %v3023_v0 = vmul.f32 0.1, %v3017_v25 }
0x1089   :  { %v3019_v44 = vpop.f32.mrf.mxu0 }
0x108a   :  { %v3020_v37 = vadd.f32 %v3367_v39, %v3019_v44  ;;  %v3025_v63 = vmax.f32 %v3017_v25, %v3023_v0 }
0x108b   :  { %v4097_v7 = vpop.f32.mrf.mxu0 }
0x108c   :  { %v3024_v9 = vmul.f32 0.1, %v3020_v37 }
0x108e   :  { %v3026_v14 = vmax.f32 %v3020_v37, %v3024_v9 }
0x1090   :  { %v3027_v16 = vpack.c.bf16 %v3026_v14, %v3025_v63 }
0x1092   :  { %4115 = vmatmul.mubr.bf16.vlgmr.msra.gmra.mxu1 %v3027_v16 }
0x1152   :  { %v3132_v19 = vpop.f32.mrf.mxu1 }
0x1153   :  { %v3133_v54 = vadd.f32 %v3376_v28, %v3132_v19 }
0x1154   :  { %v4116_v26 = vpop.f32.mrf.mxu1 }
0x1155   :  { %v3139_v31 = vmul.f32 0.1, %v3133_v54 }
0x1156   :  { %v3135_v49 = vpop.f32.mrf.mxu1 }
0x1157   :  { %v3136_v50 = vadd.f32 %v3376_v28, %v3135_v49  ;;  %v3141_v33 = vmax.f32 %v3133_v54, %v3139_v31 }
0x1158   :  { %v4117_v5 = vpop.f32.mrf.mxu1 }
0x1159   :  { %v3140_v58 = vmul.f32 0.1, %v3136_v50 }
0x115b   :  { %v3142_v10 = vmax.f32 %v3136_v50, %v3140_v58 }
0x115d   :  { %v3143_v23 = vpack.c.bf16 %v3142_v10, %v3141_v33 }
0x115f   :  { %4135 = vmatmul.mubr.bf16.vlgmr.msra.gmra.mxu0 %v3143_v23 }
0x121f   :  { %v3248_v43 = vpop.f32.mrf.mxu0 }
0x1220   :  { %v3249_v42 = vadd.f32 %v3385_v15, %v3248_v43 }
0x1221   :  { %v4136_v55 = vpop.f32.mrf.mxu0 }
0x1222   :  { %3255 = vst [vmem:[#allocation15] sm:$0xff] %v3249_v42 }
0x1223   :  { %v3251_v3 = vpop.f32.mrf.mxu0 }
0x1224   :  { %v3252_v18 = vadd.f32 %v3385_v15, %v3251_v3 }
0x1225   :  { %v4137_v56 = vpop.f32.mrf.mxu0 }
0x1226   :  { %3256 = vst [vmem:[#allocation15 + $0x8] sm:$0xff] %v3252_v18 }
0x1227   :  { %4684 = shalt.err (!%p4681_p11)
}
0x1228   :  { %s4721_s24 = smov 128   ;;  %s4722_s12 = smov 8  }
0x1229   :  { %3268 = dma.vmem_to_hbm [thread:$0]  %s3263_s30, 256, %s5599_s13, [#allocation4], %s4721_s24, %s4721_s24, %s4722_s12  }
0x122a   :  { %4705 = dma.done.wait [#allocation4], 256  }
0x122b   :  { %4706 = vsyncadd [#allocation4], 4294967040 }
0x122c   :  { %3272 = vsyncpa [#allocation3], 1 }
0x122d   :  { %3273 = vsyncpa [#allocation7], 1 }
0x122e   :  { %3274 = vsyncpa [#allocation10], 1 }
0x122f   :  { %3275 = vsyncpa [#allocation14], 1 }
0x1230   :  { %3276 = vsyncpa [#allocation4], 1 }
0x1231   :  { %3277 = vsyncpa [#allocation5], 1 }

</bundles_post_ra>
